<compile_context>
chip_gen: v7x
topology: tpu7x:2x2x1
jax: 0.10.0
libtpu: 0.0.40
codegen_flags: <defaults>
</compile_context>

<pallas_src>
import jax
import jax.numpy as jnp
from jax import lax
from jax.experimental import pallas as pl
from jax.experimental.pallas import tpu as pltpu

# Module-consistent small sizes
N = 16              # nodes per graph
F_IN = 4            # num_node_features
HID = 8             # hidden_channels
HEADS = 8           # heads for conv1
OUT = 4             # output_channels (conv2, heads=1)
GB = 8              # graphs per grid block
R = GB * N          # 128 flattened rows per block
L1 = HEADS * N      # 128 lanes for the layer-1 logit slab
HC = HEADS * HID    # 64
NEG_SLOPE = 0.2     # GATConv leaky_relu slope
NEG_INF = -1e30


def _shift(v):
    assert v & (v - 1) == 0
    return v.bit_length() - 1


def _blk_eq(nr, nc, rseg, cseg):
    """[nr, nc] f32 mask: 1.0 where (r // rseg) == (c // cseg). Power-of-two segs only."""
    r = lax.broadcasted_iota(jnp.int32, (nr, nc), 0) >> _shift(rseg)
    c = lax.broadcasted_iota(jnp.int32, (nr, nc), 1) >> _shift(cseg)
    return (r == c).astype(jnp.float32)


def _mod_eq(nr, nc, m):
    """[nr, nc] f32 mask: 1.0 where (r % m) == (c % m)."""
    r = lax.broadcasted_iota(jnp.int32, (nr, nc), 0) & (m - 1)
    c = lax.broadcasted_iota(jnp.int32, (nr, nc), 1) & (m - 1)
    return (r == c).astype(jnp.float32)


def _elu(x):
    return jnp.where(x > 0, x, jnp.exp(x) - 1.0)


def gat_net_kernel(x_ref, adj_ref,
                   w1_ref, w1ad_ref, w1as_ref, b1_ref,
                   w2_ref, w2ad_ref, w2as_ref, b2_ref,
                   out_ref):
    f32 = jnp.float32
    x = x_ref[...]        # [R, F_IN]   (GB graphs flattened along rows)
    adj = adj_ref[...]    # [R, N]      adj[g*16+i, j] = 1 if edge j->i in graph g

    # Iota-built 0/1 structure matrices (cheap VPU; drive MXU broadcasts/reductions).
    seg_rr = _blk_eq(R, R, N, N)          # graph-block ones  [R, R]
    diag_rl = _mod_eq(R, L1, N)           # (row node) == (lane node)  [R, L1]
    tile_nl = _mod_eq(N, L1, N)           # replicate 16 src lanes across 8 head segments
    tile_nr = _mod_eq(N, R, N)            # replicate 16 src lanes across GB graph segments
    diag_rn = _mod_eq(R, N, N)            # [R, N]
    maskb = _blk_eq(L1, HC, N, HID)       # head-block-diagonal mask [128, 64]

    # ---------------- layer 1: GATConv(F_IN -> HID, heads=8, concat) ----------------
    # Folded projections: logits come straight from x with K=4 (no dependency on xp).
    xp = jnp.dot(x, w1_ref[...], preferred_element_type=f32)          # [R, 64]
    a_dst = jnp.dot(x, w1ad_ref[...], preferred_element_type=f32)     # [R, 128] dst term / head segment
    a_src = jnp.dot(x, w1as_ref[...], preferred_element_type=f32)     # [R, 128] src term / head segment
    # Re-arrange src terms so lane (h*16+j) of every dst row of the same graph holds alpha_src[j, h].
    e_src = jnp.dot(seg_rr, a_src * diag_rl, preferred_element_type=f32)
    e = a_dst + e_src                                                  # e[gi, h*16+j]
    e = jnp.where(e > 0, e, NEG_SLOPE * e)                             # leaky_relu
    mask = jnp.dot(adj, tile_nl, preferred_element_type=f32)           # adj tiled per head [R, 128]
    e = jnp.where(mask > 0.0, e, NEG_INF)
    m = jnp.max(e, axis=1, keepdims=True)                              # row max (valid softmax shift)
    p = jnp.exp(e - m)                                                 # masked lanes underflow to 0
    # Deferred softmax normalization: per-head segment sums mapped straight onto the
    # 64 output lanes (maskb), applied after aggregation.
    denom = jnp.dot(p, maskb, preferred_element_type=f32)              # [R, 64]

    # Aggregation: one K=128 matmul per graph against head-block-diagonal xp.
    p_r = p.reshape(GB, N, L1)                                         # leading-dim split (free)
    xp_r = xp.reshape(GB, N, HC)
    xpb = jnp.concatenate([xp_r] * HEADS, axis=1) * maskb[None]        # [GB, 128, 64]
    h1u = jnp.einsum('gik,gkc->gic', p_r, xpb,
                     preferred_element_type=f32).reshape(R, HC)
    h1 = h1u / denom + b1_ref[...]
    h1 = _elu(h1)

    # ---------------- layer 2: GATConv(64 -> OUT, heads=1) ----------------
    xp2 = jnp.dot(h1, w2_ref[...], preferred_element_type=f32)         # [R, 4]
    a_dst2 = jnp.dot(h1, w2ad_ref[...], preferred_element_type=f32)    # [R, 16]
    a_src2 = jnp.dot(h1, w2as_ref[...], preferred_element_type=f32)    # [R, 16]
    e_src2 = jnp.dot(seg_rr, a_src2 * diag_rn, preferred_element_type=f32)
    e2 = a_dst2 + e_src2
    e2 = jnp.where(e2 > 0, e2, NEG_SLOPE * e2)
    e2 = jnp.where(adj > 0.0, e2, NEG_INF)
    m2 = jnp.max(e2, axis=1, keepdims=True)
    p2 = jnp.exp(e2 - m2)
    denom2 = jnp.sum(p2, axis=1, keepdims=True)                        # [R, 1]

    # Flat aggregation via graph-block-diagonal (unnormalized) attention: [128,128] @ [128,4].
    p2bd = jnp.dot(p2, tile_nr, preferred_element_type=f32) * seg_rr
    h2u = jnp.dot(p2bd, xp2, preferred_element_type=f32)
    h2 = h2u / denom2 + b2_ref[...]
    # Output block spans the full 4-lane array width -> contiguous HBM DMA per step.
    out_ref[...] = _elu(h2)


@jax.jit
def gat_net_pallas(x_all, adj_all, w1, a1s_exp, a1d_exp, b1, w2, a2s_exp, a2d_exp, b2):
    """x_all: [G, N, F_IN], adj_all: [G, N, N] (dst, src) with self-loops -> [G, N, OUT]."""
    G = x_all.shape[0]
    pad = (-G) % GB
    if pad:
        x_all = jnp.concatenate(
            [x_all, jnp.zeros((pad, N, F_IN), x_all.dtype)], axis=0)
        eye = jnp.broadcast_to(jnp.eye(N, dtype=adj_all.dtype), (pad, N, N))
        adj_all = jnp.concatenate([adj_all, eye], axis=0)
    gp = G + pad
    xf = x_all.reshape(gp * N, F_IN)
    af = adj_all.reshape(gp * N, N)

    # Fold attention-vector projections through the layer weights (tiny host-side matmuls);
    # this lets the in-kernel logit matmuls run with K=F_IN / K=HC directly off the layer input.
    w1ad = jnp.dot(w1, a1d_exp)    # [F_IN, 128]
    w1as = jnp.dot(w1, a1s_exp)    # [F_IN, 128]
    w2ad = jnp.dot(w2, a2d_exp)    # [HC, 16]
    w2as = jnp.dot(w2, a2s_exp)    # [HC, 16]

    data_spec = lambda cols: pl.BlockSpec((R, cols), lambda b: (b, 0))
    resident = lambda arr: pl.BlockSpec(arr.shape, lambda b: (0, 0))

    out = pl.pallas_call(
        gat_net_kernel,
        out_shape=jax.ShapeDtypeStruct((gp * N, OUT), jnp.float32),
        grid=(gp // GB,),
        in_specs=[
            data_spec(F_IN), data_spec(N),
            resident(w1), resident(w1ad), resident(w1as), resident(b1),
            resident(w2), resident(w2ad), resident(w2as), resident(b2),
        ],
        out_specs=pl.BlockSpec((R, OUT), lambda b: (b, 0)),
        compiler_params=pltpu.CompilerParams(dimension_semantics=("parallel",)),
    )(xf, af, w1, w1ad, w1as, b1, w2, w2ad, w2as, b2)
    return out[:G * N].reshape(G, N, OUT)


# ------------------------- host-side packing & pure-JAX reference -------------------------

def att_to_exp(att, n):
    """Pack per-head attention vector [H, C] into expansion matrix [H*C, H*n] so that
    (x @ W) @ att_exp gives, in lane h*n+j, the per-head attention scalar for head h."""
    h, c = att.shape
    m = jnp.zeros((h * c, h * n), jnp.float32)
    for i in range(h):
        m = m.at[i * c:(i + 1) * c, i * n:(i + 1) * n].set(
            jnp.broadcast_to(att[i][:, None], (c, n)))
    return m


def gat_layer_ref(x, adj, w, att_src, att_dst, bias_row, heads, ch):
    n = x.shape[0]
    xp = x @ w
    xph = xp.reshape(n, heads, ch)
    a_s = jnp.einsum('nhc,hc->nh', xph, att_src)
    a_d = jnp.einsum('nhc,hc->nh', xph, att_dst)
    e = a_d[:, None, :] + a_s[None, :, :]
    e = jnp.where(e > 0, e, NEG_SLOPE * e)
    mask = (adj > 0)[:, :, None]
    e = jnp.where(mask, e, NEG_INF)
    m = jnp.max(e, axis=1, keepdims=True)
    p = jnp.exp(e - m)
    p = jnp.where(mask, p, 0.0)
    att = p / jnp.sum(p, axis=1, keepdims=True)
    out = jnp.einsum('ijh,jhc->ihc', att, xph).reshape(n, heads * ch)
    return out + bias_row


def gat_net_ref(x, adj, params):
    h = gat_layer_ref(x, adj, params['w1'], params['att1_src'],
                      params['att1_dst'], params['b1'], HEADS, HID)
    h = _elu(h)
    h = gat_layer_ref(h, adj, params['w2'], params['att2_src'],
                      params['att2_dst'], params['b2'], 1, OUT)
    return _elu(h)


if __name__ == "__main__":
    key = jax.random.PRNGKey(0)
    k = jax.random.split(key, 8)

    # Deterministic synthetic parameters (shapes match GATConv in the module).
    params = {
        'w1': jax.random.normal(k[0], (F_IN, HEADS * HID), jnp.float32) * 0.3,
        'att1_src': jax.random.normal(k[1], (HEADS, HID), jnp.float32) * 0.3,
        'att1_dst': jax.random.normal(k[2], (HEADS, HID), jnp.float32) * 0.3,
        'b1': jax.random.normal(k[3], (1, HEADS * HID), jnp.float32) * 0.1,
        'w2': jax.random.normal(k[4], (HEADS * HID, OUT), jnp.float32) * 0.2,
        'att2_src': jax.random.normal(k[5], (1, OUT), jnp.float32) * 0.3,
        'att2_dst': jax.random.normal(k[6], (1, OUT), jnp.float32) * 0.3,
        'b2': jax.random.normal(k[7], (1, OUT), jnp.float32) * 0.1,
    }
    a1s = att_to_exp(params['att1_src'], N)   # [64, 128]
    a1d = att_to_exp(params['att1_dst'], N)   # [64, 128]
    a2s = att_to_exp(params['att2_src'], N)   # [4, 16]
    a2d = att_to_exp(params['att2_dst'], N)   # [4, 16]

    # data_list: G small graphs (node features + dense adjacency [dst, src] w/ self-loops),
    # stacked so the whole batch goes through one pallas_call.
    G = 16
    kg = jax.random.fold_in(key, 123)
    kx, ke = jax.random.split(kg)
    x_all = jax.random.normal(kx, (G, N, F_IN), jnp.float32)
    edges = jax.random.bernoulli(ke, 0.3, (G, N, N)).astype(jnp.float32)
    adj_all = jnp.maximum(edges, jnp.eye(N, dtype=jnp.float32))

    out = gat_net_pallas(x_all, adj_all,
                         params['w1'], a1s, a1d, params['b1'],
                         params['w2'], a2s, a2d, params['b2'])
    out = jax.block_until_ready(out)

    ref = jax.vmap(lambda x, a: gat_net_ref(x, a, params))(x_all, adj_all)
    assert out.shape == (G, N, OUT)
    err = jnp.max(jnp.abs(out - ref))
    assert jnp.allclose(out, ref, atol=1e-4, rtol=1e-4), f"mismatch: max abs err {err}"

    # TODO(synk): dropout (p=0.6) on inputs/attention is identity here (eval mode);
    # an RNG-faithful match to torch training-mode dropout is not reproduced.
    print("KERNEL_OK")
</pallas_src>

<mosaic_0001>
module attributes {stable_mosaic.version = 11 : i64} {
  func.func @gat_net_kernel(%arg0: i32, %arg1: memref<128x4xf32, #tpu.memory_space<vmem>>, %arg2: memref<128x16xf32, #tpu.memory_space<vmem>>, %arg3: memref<4x64xf32, #tpu.memory_space<vmem>>, %arg4: memref<4x128xf32, #tpu.memory_space<vmem>>, %arg5: memref<4x128xf32, #tpu.memory_space<vmem>>, %arg6: memref<1x64xf32, #tpu.memory_space<vmem>>, %arg7: memref<64x4xf32, #tpu.memory_space<vmem>>, %arg8: memref<64x16xf32, #tpu.memory_space<vmem>>, %arg9: memref<64x16xf32, #tpu.memory_space<vmem>>, %arg10: memref<1x4xf32, #tpu.memory_space<vmem>>, %arg11: memref<128x4xf32, #tpu.memory_space<vmem>>) attributes {dimension_semantics = [#tpu.dimension_semantics<parallel>], iteration_bounds = array<i64: 2>, scalar_prefetch = 0 : i64, scratch_operands = 0 : i64, tpu.core_type = #tpu.core_type<tc>, window_params = [{transform_indices = @transform_0, window_bounds = array<i64: 128, 4>}, {transform_indices = @transform_1, window_bounds = array<i64: 128, 16>}, {pipeline_mode = #tpu.pipeline_mode<synchronous>, transform_indices = @transform_2, window_bounds = array<i64: 4, 64>}, {pipeline_mode = #tpu.pipeline_mode<synchronous>, transform_indices = @transform_3, window_bounds = array<i64: 4, 128>}, {pipeline_mode = #tpu.pipeline_mode<synchronous>, transform_indices = @transform_4, window_bounds = array<i64: 4, 128>}, {pipeline_mode = #tpu.pipeline_mode<synchronous>, transform_indices = @transform_5, window_bounds = array<i64: 1, 64>}, {pipeline_mode = #tpu.pipeline_mode<synchronous>, transform_indices = @transform_6, window_bounds = array<i64: 64, 4>}, {pipeline_mode = #tpu.pipeline_mode<synchronous>, transform_indices = @transform_7, window_bounds = array<i64: 64, 16>}, {pipeline_mode = #tpu.pipeline_mode<synchronous>, transform_indices = @transform_8, window_bounds = array<i64: 64, 16>}, {pipeline_mode = #tpu.pipeline_mode<synchronous>, transform_indices = @transform_9, window_bounds = array<i64: 1, 4>}, {transform_indices = @transform_10, window_bounds = array<i64: 128, 4>}]} {
    %c0 = arith.constant 0 : index
    %c0_0 = arith.constant 0 : index
    %0 = vector.load %arg1[%c0, %c0_0] : memref<128x4xf32, #tpu.memory_space<vmem>>, vector<128x4xf32>
    %c0_1 = arith.constant 0 : index
    %c0_2 = arith.constant 0 : index
    %1 = vector.load %arg2[%c0_1, %c0_2] : memref<128x16xf32, #tpu.memory_space<vmem>>, vector<128x16xf32>
    %2 = tpu.iota {dimensions = array<i32: 0>} : vector<128x128xi32>
    %c4_i32 = arith.constant 4 : i32
    %3 = vector.broadcast %c4_i32 : i32 to vector<128x128xi32>
    %4 = arith.shrsi %2, %3 : vector<128x128xi32>
    %5 = tpu.iota {dimensions = array<i32: 1>} : vector<128x128xi32>
    %c4_i32_3 = arith.constant 4 : i32
    %6 = vector.broadcast %c4_i32_3 : i32 to vector<128x128xi32>
    %7 = arith.shrsi %5, %6 : vector<128x128xi32>
    %8 = arith.cmpi eq, %4, %7 : vector<128x128xi32>
    %9 = arith.extui %8 : vector<128x128xi1> to vector<128x128xi32>
    %10 = arith.sitofp %9 : vector<128x128xi32> to vector<128x128xf32>
    %11 = tpu.iota {dimensions = array<i32: 0>} : vector<128x128xi32>
    %c15_i32 = arith.constant 15 : i32
    %12 = vector.broadcast %c15_i32 : i32 to vector<128x128xi32>
    %13 = arith.andi %11, %12 : vector<128x128xi32>
    %14 = tpu.iota {dimensions = array<i32: 1>} : vector<128x128xi32>
    %c15_i32_4 = arith.constant 15 : i32
    %15 = vector.broadcast %c15_i32_4 : i32 to vector<128x128xi32>
    %16 = arith.andi %14, %15 : vector<128x128xi32>
    %17 = arith.cmpi eq, %13, %16 : vector<128x128xi32>
    %18 = arith.extui %17 : vector<128x128xi1> to vector<128x128xi32>
    %19 = arith.sitofp %18 : vector<128x128xi32> to vector<128x128xf32>
    %20 = tpu.iota {dimensions = array<i32: 0>} : vector<16x128xi32>
    %c15_i32_5 = arith.constant 15 : i32
    %21 = vector.broadcast %c15_i32_5 : i32 to vector<16x128xi32>
    %22 = arith.andi %20, %21 : vector<16x128xi32>
    %23 = tpu.iota {dimensions = array<i32: 1>} : vector<16x128xi32>
    %c15_i32_6 = arith.constant 15 : i32
    %24 = vector.broadcast %c15_i32_6 : i32 to vector<16x128xi32>
    %25 = arith.andi %23, %24 : vector<16x128xi32>
    %26 = arith.cmpi eq, %22, %25 : vector<16x128xi32>
    %27 = arith.extui %26 : vector<16x128xi1> to vector<16x128xi32>
    %28 = arith.sitofp %27 : vector<16x128xi32> to vector<16x128xf32>
    %29 = tpu.iota {dimensions = array<i32: 0>} : vector<16x128xi32>
    %c15_i32_7 = arith.constant 15 : i32
    %30 = vector.broadcast %c15_i32_7 : i32 to vector<16x128xi32>
    %31 = arith.andi %29, %30 : vector<16x128xi32>
    %32 = tpu.iota {dimensions = array<i32: 1>} : vector<16x128xi32>
    %c15_i32_8 = arith.constant 15 : i32
    %33 = vector.broadcast %c15_i32_8 : i32 to vector<16x128xi32>
    %34 = arith.andi %32, %33 : vector<16x128xi32>
    %35 = arith.cmpi eq, %31, %34 : vector<16x128xi32>
    %36 = arith.extui %35 : vector<16x128xi1> to vector<16x128xi32>
    %37 = arith.sitofp %36 : vector<16x128xi32> to vector<16x128xf32>
    %38 = tpu.iota {dimensions = array<i32: 0>} : vector<128x16xi32>
    %c15_i32_9 = arith.constant 15 : i32
    %39 = vector.broadcast %c15_i32_9 : i32 to vector<128x16xi32>
    %40 = arith.andi %38, %39 : vector<128x16xi32>
    %41 = tpu.iota {dimensions = array<i32: 1>} : vector<128x16xi32>
    %c15_i32_10 = arith.constant 15 : i32
    %42 = vector.broadcast %c15_i32_10 : i32 to vector<128x16xi32>
    %43 = arith.andi %41, %42 : vector<128x16xi32>
    %44 = arith.cmpi eq, %40, %43 : vector<128x16xi32>
    %45 = arith.extui %44 : vector<128x16xi1> to vector<128x16xi32>
    %46 = arith.sitofp %45 : vector<128x16xi32> to vector<128x16xf32>
    %47 = tpu.iota {dimensions = array<i32: 0>} : vector<128x64xi32>
    %c4_i32_11 = arith.constant 4 : i32
    %48 = vector.broadcast %c4_i32_11 : i32 to vector<128x64xi32>
    %49 = arith.shrsi %47, %48 : vector<128x64xi32>
    %50 = tpu.iota {dimensions = array<i32: 1>} : vector<128x64xi32>
    %c3_i32 = arith.constant 3 : i32
    %51 = vector.broadcast %c3_i32 : i32 to vector<128x64xi32>
    %52 = arith.shrsi %50, %51 : vector<128x64xi32>
    %53 = arith.cmpi eq, %49, %52 : vector<128x64xi32>
    %54 = arith.extui %53 : vector<128x64xi1> to vector<128x64xi32>
    %55 = arith.sitofp %54 : vector<128x64xi32> to vector<128x64xf32>
    %c0_12 = arith.constant 0 : index
    %c0_13 = arith.constant 0 : index
    %56 = vector.load %arg3[%c0_12, %c0_13] : memref<4x64xf32, #tpu.memory_space<vmem>>, vector<4x64xf32>
    %cst = arith.constant dense<0.000000e+00> : vector<128x64xf32>
    %57 = tpu.matmul %0, %56, %cst {dimension_numbers = #tpu.dot_dimension_numbers<[1], [0], [0], [1], [0, 0, 1, 1], [], []>} : vector<128x4xf32>, vector<4x64xf32>, vector<128x64xf32> -> vector<128x64xf32>
    %c0_14 = arith.constant 0 : index
    %c0_15 = arith.constant 0 : index
    %58 = vector.load %arg4[%c0_14, %c0_15] : memref<4x128xf32, #tpu.memory_space<vmem>>, vector<4x128xf32>
    %cst_16 = arith.constant dense<0.000000e+00> : vector<128x128xf32>
    %59 = tpu.matmul %0, %58, %cst_16 {dimension_numbers = #tpu.dot_dimension_numbers<[1], [0], [0], [1], [0, 0, 1, 1], [], []>} : vector<128x4xf32>, vector<4x128xf32>, vector<128x128xf32> -> vector<128x128xf32>
    %c0_17 = arith.constant 0 : index
    %c0_18 = arith.constant 0 : index
    %60 = vector.load %arg5[%c0_17, %c0_18] : memref<4x128xf32, #tpu.memory_space<vmem>>, vector<4x128xf32>
    %cst_19 = arith.constant dense<0.000000e+00> : vector<128x128xf32>
    %61 = tpu.matmul %0, %60, %cst_19 {dimension_numbers = #tpu.dot_dimension_numbers<[1], [0], [0], [1], [0, 0, 1, 1], [], []>} : vector<128x4xf32>, vector<4x128xf32>, vector<128x128xf32> -> vector<128x128xf32>
    %62 = arith.mulf %61, %19 : vector<128x128xf32>
    %cst_20 = arith.constant dense<0.000000e+00> : vector<128x128xf32>
    %63 = tpu.matmul %10, %62, %cst_20 {dimension_numbers = #tpu.dot_dimension_numbers<[1], [0], [0], [1], [0, 0, 1, 1], [], []>} : vector<128x128xf32>, vector<128x128xf32>, vector<128x128xf32> -> vector<128x128xf32>
    %64 = arith.addf %59, %63 : vector<128x128xf32>
    %cst_21 = arith.constant 0.000000e+00 : f32
    %65 = vector.broadcast %cst_21 : f32 to vector<128x128xf32>
    %66 = arith.cmpf ogt, %64, %65 : vector<128x128xf32>
    %cst_22 = arith.constant 2.000000e-01 : f32
    %67 = vector.broadcast %cst_22 : f32 to vector<128x128xf32>
    %68 = arith.mulf %67, %64 : vector<128x128xf32>
    %69 = arith.select %66, %64, %68 : vector<128x128xi1>, vector<128x128xf32>
    %cst_23 = arith.constant dense<0.000000e+00> : vector<128x128xf32>
    %70 = tpu.matmul %1, %28, %cst_23 {dimension_numbers = #tpu.dot_dimension_numbers<[1], [0], [0], [1], [0, 0, 1, 1], [], []>} : vector<128x16xf32>, vector<16x128xf32>, vector<128x128xf32> -> vector<128x128xf32>
    %cst_24 = arith.constant 0.000000e+00 : f32
    %71 = vector.broadcast %cst_24 : f32 to vector<128x128xf32>
    %72 = arith.cmpf ogt, %70, %71 : vector<128x128xf32>
    %cst_25 = arith.constant -1.000000e+30 : f32
    %73 = vector.broadcast %cst_25 : f32 to vector<128x128xf32>
    %74 = arith.select %72, %69, %73 : vector<128x128xi1>, vector<128x128xf32>
    %cst_26 = arith.constant dense<0xFF800000> : vector<128xf32>
    %75 = vector.multi_reduction <maximumf>, %74, %cst_26 [1] : vector<128x128xf32> to vector<128xf32>
    %76 = vector.shape_cast %75 : vector<128xf32> to vector<128x1xf32>
    %77 = vector.broadcast %76 : vector<128x1xf32> to vector<128x128xf32>
    %78 = arith.subf %74, %77 : vector<128x128xf32>
    %79 = math.exp %78 : vector<128x128xf32>
    %cst_27 = arith.constant dense<0.000000e+00> : vector<128x64xf32>
    %80 = tpu.matmul %79, %55, %cst_27 {dimension_numbers = #tpu.dot_dimension_numbers<[1], [0], [0], [1], [0, 0, 1, 1], [], []>} : vector<128x128xf32>, vector<128x64xf32>, vector<128x64xf32> -> vector<128x64xf32>
    %81 = vector.shape_cast %79 : vector<128x128xf32> to vector<8x16x128xf32>
    %82 = vector.shape_cast %57 : vector<128x64xf32> to vector<8x16x64xf32>
    %83 = tpu.concatenate %82, %82, %82, %82, %82, %82, %82, %82 in 1 : vector<8x16x64xf32>, vector<8x16x64xf32>, vector<8x16x64xf32>, vector<8x16x64xf32>, vector<8x16x64xf32>, vector<8x16x64xf32>, vector<8x16x64xf32>, vector<8x16x64xf32> -> vector<8x128x64xf32>
    %84 = vector.shape_cast %55 : vector<128x64xf32> to vector<1x128x64xf32>
    %85 = vector.broadcast %84 : vector<1x128x64xf32> to vector<8x128x64xf32>
    %86 = arith.mulf %83, %85 : vector<8x128x64xf32>
    "tpu.trace_start"() <{level = 10 : i32, message = "gik,gkc->gic"}> : () -> ()
    %cst_28 = arith.constant dense<0.000000e+00> : vector<8x16x64xf32>
    %87 = tpu.matmul %81, %86, %cst_28 {dimension_numbers = #tpu.dot_dimension_numbers<[2], [1], [1], [2], [0, 0, 0, 1, 1, 2], [0], [0]>} : vector<8x16x128xf32>, vector<8x128x64xf32>, vector<8x16x64xf32> -> vector<8x16x64xf32>
    "tpu.trace_stop"() : () -> ()
    %88 = vector.shape_cast %87 : vector<8x16x64xf32> to vector<128x64xf32>
    %89 = arith.divf %88, %80 : vector<128x64xf32>
    %c0_29 = arith.constant 0 : index
    %c0_30 = arith.constant 0 : index
    %90 = vector.load %arg6[%c0_29, %c0_30] : memref<1x64xf32, #tpu.memory_space<vmem>>, vector<1x64xf32>
    %91 = vector.broadcast %90 : vector<1x64xf32> to vector<128x64xf32>
    %92 = arith.addf %89, %91 : vector<128x64xf32>
    %cst_31 = arith.constant 0.000000e+00 : f32
    %93 = vector.broadcast %cst_31 : f32 to vector<128x64xf32>
    %94 = arith.cmpf ogt, %92, %93 : vector<128x64xf32>
    %95 = math.exp %92 : vector<128x64xf32>
    %cst_32 = arith.constant 1.000000e+00 : f32
    %96 = vector.broadcast %cst_32 : f32 to vector<128x64xf32>
    %97 = arith.subf %95, %96 : vector<128x64xf32>
    %98 = arith.select %94, %92, %97 : vector<128x64xi1>, vector<128x64xf32>
    %c0_33 = arith.constant 0 : index
    %c0_34 = arith.constant 0 : index
    %99 = vector.load %arg7[%c0_33, %c0_34] : memref<64x4xf32, #tpu.memory_space<vmem>>, vector<64x4xf32>
    %cst_35 = arith.constant dense<0.000000e+00> : vector<128x4xf32>
    %100 = tpu.matmul %98, %99, %cst_35 {dimension_numbers = #tpu.dot_dimension_numbers<[1], [0], [0], [1], [0, 0, 1, 1], [], []>} : vector<128x64xf32>, vector<64x4xf32>, vector<128x4xf32> -> vector<128x4xf32>
    %c0_36 = arith.constant 0 : index
    %c0_37 = arith.constant 0 : index
    %101 = vector.load %arg8[%c0_36, %c0_37] : memref<64x16xf32, #tpu.memory_space<vmem>>, vector<64x16xf32>
    %cst_38 = arith.constant dense<0.000000e+00> : vector<128x16xf32>
    %102 = tpu.matmul %98, %101, %cst_38 {dimension_numbers = #tpu.dot_dimension_numbers<[1], [0], [0], [1], [0, 0, 1, 1], [], []>} : vector<128x64xf32>, vector<64x16xf32>, vector<128x16xf32> -> vector<128x16xf32>
    %c0_39 = arith.constant 0 : index
    %c0_40 = arith.constant 0 : index
    %103 = vector.load %arg9[%c0_39, %c0_40] : memref<64x16xf32, #tpu.memory_space<vmem>>, vector<64x16xf32>
    %cst_41 = arith.constant dense<0.000000e+00> : vector<128x16xf32>
    %104 = tpu.matmul %98, %103, %cst_41 {dimension_numbers = #tpu.dot_dimension_numbers<[1], [0], [0], [1], [0, 0, 1, 1], [], []>} : vector<128x64xf32>, vector<64x16xf32>, vector<128x16xf32> -> vector<128x16xf32>
    %105 = arith.mulf %104, %46 : vector<128x16xf32>
    %cst_42 = arith.constant dense<0.000000e+00> : vector<128x16xf32>
    %106 = tpu.matmul %10, %105, %cst_42 {dimension_numbers = #tpu.dot_dimension_numbers<[1], [0], [0], [1], [0, 0, 1, 1], [], []>} : vector<128x128xf32>, vector<128x16xf32>, vector<128x16xf32> -> vector<128x16xf32>
    %107 = arith.addf %102, %106 : vector<128x16xf32>
    %cst_43 = arith.constant 0.000000e+00 : f32
    %108 = vector.broadcast %cst_43 : f32 to vector<128x16xf32>
    %109 = arith.cmpf ogt, %107, %108 : vector<128x16xf32>
    %cst_44 = arith.constant 2.000000e-01 : f32
    %110 = vector.broadcast %cst_44 : f32 to vector<128x16xf32>
    %111 = arith.mulf %110, %107 : vector<128x16xf32>
    %112 = arith.select %109, %107, %111 : vector<128x16xi1>, vector<128x16xf32>
    %cst_45 = arith.constant 0.000000e+00 : f32
    %113 = vector.broadcast %cst_45 : f32 to vector<128x16xf32>
    %114 = arith.cmpf ogt, %1, %113 : vector<128x16xf32>
    %cst_46 = arith.constant -1.000000e+30 : f32
    %115 = vector.broadcast %cst_46 : f32 to vector<128x16xf32>
    %116 = arith.select %114, %112, %115 : vector<128x16xi1>, vector<128x16xf32>
    %cst_47 = arith.constant dense<0xFF800000> : vector<128xf32>
    %117 = vector.multi_reduction <maximumf>, %116, %cst_47 [1] : vector<128x16xf32> to vector<128xf32>
    %118 = vector.shape_cast %117 : vector<128xf32> to vector<128x1xf32>
    %119 = vector.broadcast %118 : vector<128x1xf32> to vector<128x16xf32>
    %120 = arith.subf %116, %119 : vector<128x16xf32>
    %121 = math.exp %120 : vector<128x16xf32>
    %cst_48 = arith.constant dense<0.000000e+00> : vector<128xf32>
    %122 = vector.multi_reduction <add>, %121, %cst_48 [1] : vector<128x16xf32> to vector<128xf32>
    %123 = vector.shape_cast %122 : vector<128xf32> to vector<128x1xf32>
    %cst_49 = arith.constant dense<0.000000e+00> : vector<128x128xf32>
    %124 = tpu.matmul %121, %37, %cst_49 {dimension_numbers = #tpu.dot_dimension_numbers<[1], [0], [0], [1], [0, 0, 1, 1], [], []>} : vector<128x16xf32>, vector<16x128xf32>, vector<128x128xf32> -> vector<128x128xf32>
    %125 = arith.mulf %124, %10 : vector<128x128xf32>
    %cst_50 = arith.constant dense<0.000000e+00> : vector<128x4xf32>
    %126 = tpu.matmul %125, %100, %cst_50 {dimension_numbers = #tpu.dot_dimension_numbers<[1], [0], [0], [1], [0, 0, 1, 1], [], []>} : vector<128x128xf32>, vector<128x4xf32>, vector<128x4xf32> -> vector<128x4xf32>
    %127 = vector.broadcast %123 : vector<128x1xf32> to vector<128x4xf32>
    %128 = arith.divf %126, %127 : vector<128x4xf32>
    %c0_51 = arith.constant 0 : index
    %c0_52 = arith.constant 0 : index
    %129 = vector.load %arg10[%c0_51, %c0_52] : memref<1x4xf32, #tpu.memory_space<vmem>>, vector<1x4xf32>
    %130 = vector.broadcast %129 : vector<1x4xf32> to vector<128x4xf32>
    %131 = arith.addf %128, %130 : vector<128x4xf32>
    %cst_53 = arith.constant 0.000000e+00 : f32
    %132 = vector.broadcast %cst_53 : f32 to vector<128x4xf32>
    %133 = arith.cmpf ogt, %131, %132 : vector<128x4xf32>
    %134 = math.exp %131 : vector<128x4xf32>
    %cst_54 = arith.constant 1.000000e+00 : f32
    %135 = vector.broadcast %cst_54 : f32 to vector<128x4xf32>
    %136 = arith.subf %134, %135 : vector<128x4xf32>
    %137 = arith.select %133, %131, %136 : vector<128x4xi1>, vector<128x4xf32>
    %c0_55 = arith.constant 0 : index
    %c0_56 = arith.constant 0 : index
    %138 = vector.load %arg11[%c0_55, %c0_56] : memref<128x4xf32, #tpu.memory_space<vmem>>, vector<128x4xf32>
    tpu.vector_store %arg11[%c0_55, %c0_56], %137 {strides = array<i32>} : memref<128x4xf32, #tpu.memory_space<vmem>>, vector<128x4xf32>,
    return
  }
  func.func @transform_0(%arg0: i32) -> (i32, i32) {
    %c0_i32 = arith.constant 0 : i32
    %c0_i32_0 = arith.constant 0 : i32
    return %arg0, %c0_i32 : i32, i32
  }
  func.func @transform_1(%arg0: i32) -> (i32, i32) {
    %c0_i32 = arith.constant 0 : i32
    %c0_i32_0 = arith.constant 0 : i32
    return %arg0, %c0_i32 : i32, i32
  }
  func.func @transform_2(%arg0: i32) -> (i32, i32) {
    %c0_i32 = arith.constant 0 : i32
    %c0_i32_0 = arith.constant 0 : i32
    %c0_i32_1 = arith.constant 0 : i32
    return %c0_i32, %c0_i32_0 : i32, i32
  }
  func.func @transform_3(%arg0: i32) -> (i32, i32) {
    %c0_i32 = arith.constant 0 : i32
    %c0_i32_0 = arith.constant 0 : i32
    %c0_i32_1 = arith.constant 0 : i32
    return %c0_i32, %c0_i32_0 : i32, i32
  }
  func.func @transform_4(%arg0: i32) -> (i32, i32) {
    %c0_i32 = arith.constant 0 : i32
    %c0_i32_0 = arith.constant 0 : i32
    %c0_i32_1 = arith.constant 0 : i32
    return %c0_i32, %c0_i32_0 : i32, i32
  }
  func.func @transform_5(%arg0: i32) -> (i32, i32) {
    %c0_i32 = arith.constant 0 : i32
    %c0_i32_0 = arith.constant 0 : i32
    %c0_i32_1 = arith.constant 0 : i32
    return %c0_i32, %c0_i32_0 : i32, i32
  }
  func.func @transform_6(%arg0: i32) -> (i32, i32) {
    %c0_i32 = arith.constant 0 : i32
    %c0_i32_0 = arith.constant 0 : i32
    %c0_i32_1 = arith.constant 0 : i32
    return %c0_i32, %c0_i32_0 : i32, i32
  }
  func.func @transform_7(%arg0: i32) -> (i32, i32) {
    %c0_i32 = arith.constant 0 : i32
    %c0_i32_0 = arith.constant 0 : i32
    %c0_i32_1 = arith.constant 0 : i32
    return %c0_i32, %c0_i32_0 : i32, i32
  }
  func.func @transform_8(%arg0: i32) -> (i32, i32) {
    %c0_i32 = arith.constant 0 : i32
    %c0_i32_0 = arith.constant 0 : i32
    %c0_i32_1 = arith.constant 0 : i32
    return %c0_i32, %c0_i32_0 : i32, i32
  }
  func.func @transform_9(%arg0: i32) -> (i32, i32) {
    %c0_i32 = arith.constant 0 : i32
    %c0_i32_0 = arith.constant 0 : i32
    %c0_i32_1 = arith.constant 0 : i32
    return %c0_i32, %c0_i32_0 : i32, i32
  }
  func.func @transform_10(%arg0: i32) -> (i32, i32) {
    %c0_i32 = arith.constant 0 : i32
    %c0_i32_0 = arith.constant 0 : i32
    return %arg0, %c0_i32 : i32, i32
  }
}

</mosaic_0001>

<bundles_post_ra>
// kernel: gat_net_pallas.1
= control target key start
LH: loop header
LB: loop body
LE: loop exit
PB: predicated region body
PF: predicated region fallthrough
CT: control target
= control target key end

     0   :  { %s6325_s13 = smov 0   ;;  %s8460_s0 = inlined_call_operand.vmem [shape: f32[256,4], index: 0, kind: input, shape index: {}]   ;;  %s8461_s1 = inlined_call_operand.vmem [shape: f32[256,16], index: 1, kind: input, shape index: {}]   ;;  %s8462_s2 = inlined_call_operand.vmem [shape: f32[4,64], index: 2, kind: input, shape index: {}]   ;;  %s8463_s3 = inlined_call_operand.vmem [shape: f32[4,128], index: 3, kind: input, shape index: {}]   ;;  %s8464_s4 = inlined_call_operand.vmem [shape: f32[4,128], index: 4, kind: input, shape index: {}]   ;;  %s8465_s5 = inlined_call_operand.vmem [shape: f32[1,64], index: 5, kind: input, shape index: {}]   ;;  %s8466_s6 = inlined_call_operand.vmem [shape: f32[64,4], index: 6, kind: input, shape index: {}]   ;;  %s8467_s7 = inlined_call_operand.vmem [shape: f32[64,16], index: 7, kind: input, shape index: {}]   ;;  %s8468_s8 = inlined_call_operand.vmem [shape: f32[64,16], index: 8, kind: input, shape index: {}]   ;;  %s8469_s9 = inlined_call_operand.vmem [shape: f32[1,4], index: 9, kind: input, shape index: {}]   ;;  %s8470_s10 = inlined_call_operand.vmem [shape: f32[256,4], index: 10, kind: output, shape index: {}]  }
   0x1 LB: > { %s4101_s14 = sadd.s32 4294967295, %s6265_s13   ;;  %p4105_p0 = scmp.ge.s32.totalorder %s6265_s13, 1  ;;  %s6265_s13 = sphi %s6325_s13, %s20_s13  }
   0x2   : > { %p324_p1 = scmp.lt.s32.totalorder %s6265_s13, 3 }
   0x4   : > { %p325_p2 = pnand %p4105_p0, %p324_p1 }
   0x6   : > { %328 = sbr.rel (%p325_p2) target bundleno = 2150 (0x866), region = 60 }
   0xd   : > { %vm8474_vm0 = vcmask 1043456   ;;  %v815_v0 = vld [vmem:[%s8464_s4] sm:$0xf]  ;;  %s4106_s17 = sshll.u32 %s4101_s14, 4  ;;  %vm8471_vm1 = vcmask 31744   ;;  %v417_v18 = vlaneseq  ;;  %v8643_v28 = vmov 0 }
   0xe   : > { %4836 = vmatprep.subr.msk.mxu1 %vm8474_vm0, %v815_v0  ;;  %p368_p3 = scmp.lt.s32.totalorder %s4106_s17, 31  ;;  %v615_v1 = vld [vmem:[%s8462_s2] sm:$0xf]  ;;  %v8472_v30 = vmov 1.0   ;;  %v8650_v34 = vmov 0  ;;  %v8653_v38 = vmov 0 }
   0xf   : > { %4837 = vmatpush3.msk.msra.mxu1 %vm8474_vm0, %v815_v0  ;;  %4810 = vmatprep.subr.msk.mxu0 %vm8474_vm0, %v615_v1  ;;  %v6463_v19 = vshrl.u32 %v417_v18, 7  ;;  %v6465_v20 = vand.u32 127, %v417_v18  ;;  %v8492_v37 = vmov 1.0|1.0   ;;  %v8656_v40 = vmov 0 }
  0x10   : > { %s9013_s17 = smov (!%p368_p3, %s4106_s17), 31  ;;  %4811 = vmatpush3.msk.msra.mxu0 %vm8474_vm0, %v615_v1  ;;  %v8659_v44 = vmov 0  ;;  %v8662_v46 = vmov 0  ;;  %v8665_v50 = vmov 0  ;;  %v8668_v52 = vmov 0 }
  0x11   : > { %s6343_s20 = sshll.u32 %s9013_s17, 3  ;;  %v6468_v21 = vadd.s32 8, %v6463_v19  ;;  %v6471_v22 = vand.u32 15, %v6465_v20  ;;  %v501_v24 = vand.u32 15, %v6463_v19  ;;  %v434_v25 = vshra.s32 %v6463_v19, 4 }
  0x12   : > { %s6349_s23 = scalar_lea.vmem %s8460_s0, %s6343_s20  ;;  %v6477_v26 = vshra.s32 %v6465_v20, 4  ;;  %v6480_v27 = vadd.s32 16, %v6463_v19  ;;  %v6490_v29 = vadd.s32 24, %v6463_v19  ;;  %v6516_v36 = vadd.s32 32, %v6463_v19  ;;  %s6671_s26 = scalar_lea.vmem %s8461_s1, %s6343_s20 }
  0x13   : > { %v6352_v2 = vld [vmem:[%s6349_s23] sm:$0xff]  ;;  %v6355_v3 = vld [vmem:[%s6349_s23 + $0x8] sm:$0xff]  ;;  %v6358_v4 = vld [vmem:[%s6349_s23 + $0x10] sm:$0xff]  ;;  %v502_v23 = vand.u32 15, %v6468_v21  ;;  %vm6501_vm4 = vcmp.eq.s32.totalorder %v501_v24, %v6471_v22  ;;  %v6529_v39 = vadd.s32 40, %v6463_v19  ;;  %v6544_v43 = vadd.s32 48, %v6463_v19  ;;  %s8378_s11 = scalar_lea.vmem %s8470_s10, %s6343_s20 }
  0x14   : > { %8627 = vst [vmem:[#allocation2_spill] sm:$0xff] %v6352_v2  ;;  %8628 = vst [vmem:[#allocation3_spill] sm:$0xff] %v6355_v3  ;;  %4838 = vmatprep.mubr.msk.f32.mxu1 %vm8471_vm1, %v6352_v2  ;;  %4812 = vmatprep.mubr.msk.f32.mxu0 %vm8471_vm1, %v6352_v2  ;;  %v6371_v5 = vld [vmem:[%s6349_s23 + $0x18] sm:$0xff]  ;;  %v6376_v6 = vld [vmem:[%s6349_s23 + $0x20] sm:$0xff]  ;;  %vm6485_vm2 = vcmp.eq.s32.totalorder %v434_v25, %v6477_v26  ;;  %v436_v33 = vshra.s32 %v6480_v27, 4  ;;  %v437_v35 = vshra.s32 %v6490_v29, 4 }
  0x15   : > { %8629 = vst [vmem:[#allocation4_spill] sm:$0xff] %v6358_v4  ;;  %4839 = vmatmul.mubr.msk.f32.vlgmr.msra.gmra.mrb[0].mxu1 %vm8471_vm1, %v6355_v3  ;;  %4813 = vmatmul.mubr.msk.f32.vlgmr.msra.gmra.mrb[0].mxu0 %vm8471_vm1, %v6355_v3  ;;  %8630 = vst [vmem:[#allocation5_spill] sm:$0xff] %v6371_v5  ;;  %v6385_v7 = vld [vmem:[%s6349_s23 + $0x28] sm:$0xff]  ;;  %v6390_v8 = vld [vmem:[%s6349_s23 + $0x30] sm:$0xff]  ;;  %v8644_v28 = vsel %vm6485_vm2, 4294967295, %v8643_v28  ;;  %vm6496_vm3 = vcmp.eq.s32.totalorder %v502_v23, %v6471_v22  ;;  %v8491_v41 = vshra.s32 %v6516_v36, 4 }
  0x16   : > { %4841 = vmatprep.mubr.msk.f32.mxu1 %vm8471_vm1, %v6358_v4  ;;  %4815 = vmatprep.mubr.msk.f32.mxu0 %vm8471_vm1, %v6358_v4  ;;  %8631 = vst [vmem:[#allocation6_spill] sm:$0xff] %v6376_v6  ;;  %8632 = vst [vmem:[#allocation7_spill] sm:$0xff] %v6385_v7  ;;  %v6399_v9 = vld [vmem:[%s6349_s23 + $0x38] sm:$0xff]  ;;  %v6404_v10 = vld [vmem:[%s6349_s23 + $0x40] sm:$0xff]  ;;  %vm6524_vm6 = vcmp.eq.s32.totalorder %v436_v33, %v6477_v26  ;;  %vm6537_vm7 = vcmp.eq.s32.totalorder %v437_v35, %v6477_v26  ;;  %v8490_v42 = vshra.s32 %v6529_v39, 4  ;;  %v8671_v56 = vmov 0 }
  0x17   : > { %8633 = vst [vmem:[#allocation8_spill] sm:$0xff] %v6390_v8  ;;  %8634 = vst [vmem:[#allocation9_spill] sm:$0xff] %v6399_v9  ;;  %v6413_v11 = vld [vmem:[%s6349_s23 + $0x48] sm:$0xff]  ;;  %v6418_v12 = vld [vmem:[%s6349_s23 + $0x50] sm:$0xff]  ;;  %v8654_v38 = vsel %vm6524_vm6, 4294967295, %v8653_v38  ;;  %v8657_v40 = vsel %vm6537_vm7, 4294967295, %v8656_v40  ;;  %vm6549_vm8 = vcmp.eq.s32.totalorder %v8491_v41, %v6477_v26 }
  0x18   : > { %8635 = vst [vmem:[#allocation10_spill] sm:$0xff] %v6404_v10  ;;  %8636 = vst [vmem:[#allocation11_spill] sm:$0xff] %v6413_v11  ;;  %v6427_v13 = vld [vmem:[%s6349_s23 + $0x58] sm:$0xff]  ;;  %v6432_v14 = vld [vmem:[%s6349_s23 + $0x60] sm:$0xff]  ;;  %v8660_v44 = vsel %vm6549_vm8, 4294967295, %v8659_v44  ;;  %v6554_v45 = vadd.s32 56, %v6463_v19  ;;  %vm6559_vm9 = vcmp.eq.s32.totalorder %v8490_v42, %v6477_v26 }
  0x19   : > { %4842 = vmatmul.mubr.msk.f32.gmra.mrb[2].mxu1 %vm8471_vm1, %v6371_v5  ;;  %4816 = vmatmul.mubr.msk.f32.gmra.mrb[2].mxu0 %vm8471_vm1, %v6371_v5  ;;  %8637 = vst [vmem:[#allocation12_spill] sm:$0xff] %v6418_v12  ;;  %8638 = vst [vmem:[#allocation13_spill] sm:$0xff] %v6427_v13  ;;  %v6441_v15 = vld [vmem:[%s6349_s23 + $0x68] sm:$0xff]  ;;  %v6446_v16 = vld [vmem:[%s6349_s23 + $0x70] sm:$0xff]  ;;  %v8663_v46 = vsel %vm6559_vm9, 4294967295, %v8662_v46  ;;  %v8489_v47 = vshra.s32 %v6544_v43, 4 }
  0x1a   : > { %4844 = vmatprep.mubr.msk.f32.mxu1 %vm8471_vm1, %v6376_v6  ;;  %4818 = vmatprep.mubr.msk.f32.mxu0 %vm8471_vm1, %v6376_v6  ;;  %8639 = vst [vmem:[#allocation14_spill] sm:$0xff] %v6432_v14  ;;  %8640 = vst [vmem:[#allocation15_spill] sm:$0xff] %v6441_v15  ;;  %v6455_v17 = vld [vmem:[%s6349_s23 + $0x78] sm:$0xff]  ;;  %v8488_v48 = vshra.s32 %v6554_v45, 4  ;;  %v6566_v49 = vadd.s32 64, %v6463_v19  ;;  %v6576_v51 = vadd.s32 72, %v6463_v19 }
  0x1b   : > { %8641 = vst [vmem:[#allocation16_spill] sm:$0xff] %v6446_v16  ;;  %8642 = vst [vmem:[#allocation17_spill] sm:$0xff] %v6455_v17  ;;  %vm6571_vm10 = vcmp.eq.s32.totalorder %v8489_v47, %v6477_v26  ;;  %v6588_v55 = vadd.s32 80, %v6463_v19  ;;  %v6598_v57 = vadd.s32 88, %v6463_v19  ;;  %v8674_v58 = vmov 0  ;;  %v405_v47 = vld [vmem:[%s6671_s26 + $0x20] sm:$0xff] }
  0x1c   : > { %8645 = vst [vmem:[#allocation18_spill] sm:$0xff] %v8644_v28  ;;  %vm6510_vm5 = vmpackc.low %vm6496_vm3, %vm6501_vm4  ;;  %v8666_v50 = vsel %vm6571_vm10, 4294967295, %v8665_v50  ;;  %vm6581_vm11 = vcmp.eq.s32.totalorder %v8488_v48, %v6477_v26  ;;  %v8483_v53 = vshra.s32 %v6566_v49, 4  ;;  %v8477_v54 = vshra.s32 %v6576_v51, 4  ;;  %v404_v48 = vld [vmem:[%s6671_s26 + $0x18] sm:$0xff]  ;;  %v406_v42 = vld [vmem:[%s6671_s26 + $0x28] sm:$0xff] }
  0x1d   : > { %4845 = vmatmul.mubr.msk.f32.gmra.mrb[4].mxu1 %vm8471_vm1, %v6385_v7  ;;  %4819 = vmatmul.mubr.msk.f32.gmra.mrb[4].mxu0 %vm8471_vm1, %v6385_v7  ;;  %v8651_v34 = vsel %vm6510_vm5, 4294967295, %v8650_v34  ;;  %8655 = vst [vmem:[#allocation20_spill] sm:$0xff] %v8654_v38  ;;  %8658 = vst [vmem:[#allocation21_spill] sm:$0xff] %v8657_v40  ;;  %v8669_v52 = vsel %vm6581_vm11, 4294967295, %v8668_v52  ;;  %v8476_v59 = vshra.s32 %v6588_v55, 4  ;;  %v8475_v60 = vshra.s32 %v6598_v57, 4 }
  0x1e   : > { %4847 = vmatprep.mubr.msk.f32.mxu1 %vm8471_vm1, %v6390_v8  ;;  %4821 = vmatprep.mubr.msk.f32.mxu0 %vm8471_vm1, %v6390_v8  ;;  %8652 = vst [vmem:[#allocation19_spill] sm:$0xff] %v8651_v34  ;;  %8661 = vst [vmem:[#allocation22_spill] sm:$0xff] %v8660_v44  ;;  %vm6593_vm12 = vcmp.eq.s32.totalorder %v8483_v53, %v6477_v26  ;;  %vm6603_vm13 = vcmp.eq.s32.totalorder %v8477_v54, %v6477_v26  ;;  %v6610_v61 = vadd.s32 96, %v6463_v19  ;;  %v8677_v62 = vmov 0  ;;  %v408_v41 = vld [vmem:[%s6671_s26 + $0x38] sm:$0xff] }
  0x1f   : > { %5601 = vmatprep.subr.msk.bf16.mxu1 %vm6510_vm5, %v8492_v37  ;;  %8664 = vst [vmem:[#allocation23_spill] sm:$0xff] %v8663_v46  ;;  %8667 = vst [vmem:[#allocation24_spill] sm:$0xff] %v8666_v50  ;;  %v8672_v56 = vsel %vm6593_vm12, 4294967295, %v8671_v56  ;;  %v8675_v58 = vsel %vm6603_vm13, 4294967295, %v8674_v58  ;;  %vm6615_vm14 = vcmp.eq.s32.totalorder %v8476_v59, %v6477_v26  ;;  %v6620_v63 = vadd.s32 104, %v6463_v19 }
  0x20   : > { %5603 = vmatpush3.bf16.msk.msra.mxu1 %vm6510_vm5, %v8492_v37  ;;  %8670 = vst [vmem:[#allocation25_spill] sm:$0xff] %v8669_v52  ;;  %8673 = vst [vmem:[#allocation26_spill] sm:$0xff] %v8672_v56  ;;  %v8678_v62 = vsel %vm6615_vm14, 4294967295, %v8677_v62  ;;  %vm6625_vm15 = vcmp.eq.s32.totalorder %v8475_v60, %v6477_v26  ;;  %v8680_v0 = vmov 0  ;;  %v8480_v1 = vshra.s32 %v6610_v61, 4  ;;  %v412_v37 = vld [vmem:[%s6671_s26 + $0x58] sm:$0xff] }
  0x21   : > { %4848 = vmatmul.mubr.msk.f32.gmra.mrb[6].mxu1 %vm8471_vm1, %v6399_v9  ;;  %4822 = vmatmul.mubr.msk.f32.gmra.mrb[6].mxu0 %vm8471_vm1, %v6399_v9  ;;  %8676 = vst [vmem:[#allocation27_spill] sm:$0xff] %v8675_v58  ;;  %8679 = vst [vmem:[#allocation28_spill] sm:$0xff] %v8678_v62  ;;  %v8681_v0 = vsel %vm6625_vm15, 4294967295, %v8680_v0  ;;  %v8487_v18 = vshra.s32 %v6620_v63, 4  ;;  %v6632_v23 = vadd.s32 112, %v6463_v19  ;;  %v8683_v24 = vmov 0 }
  0x22   : > { %4850 = vmatprep.mubr.msk.f32.mxu1 %vm8471_vm1, %v6404_v10  ;;  %4824 = vmatprep.mubr.msk.f32.mxu0 %vm8471_vm1, %v6404_v10  ;;  %8682 = vst [vmem:[#allocation29_spill] sm:$0xff] %v8681_v0  ;;  %v8686_v60 = vmov 0  ;;  %v8692_v53 = vmov 0  ;;  %vm8703_vm14 = vcmask 130048   ;;  %v8722_v28 = vmov 0 }
  0x23   : > { %vm6647_vm0 = vcmp.eq.s32.totalorder %v8487_v18, %v6477_v26  ;;  %v8484_v59 = vshra.s32 %v6632_v23, 4  ;;  %v403_v18 = vld [vmem:[%s6671_s26 + $0x10] sm:$0xff]  ;;  %vm8705_vm12 = vmmov %vm8703_vm14  ;;  %v8725_v34 = vmov 0 }
  0x24   : > { %v8687_v60 = vsel %vm6647_vm0, 4294967295, %v8686_v60 }
  0x25   : > { %4851 = vmatmul.mubr.msk.f32.gmra.mrb[8].mxu1 %vm8471_vm1, %v6413_v11  ;;  %4825 = vmatmul.mubr.msk.f32.gmra.mrb[8].mxu0 %vm8471_vm1, %v6413_v11  ;;  %8688 = vst [vmem:[#allocation31_spill] sm:$0xff] %v8687_v60 }
  0x26   : > { %4853 = vmatprep.mubr.msk.f32.mxu1 %vm8471_vm1, %v6418_v12  ;;  %4827 = vmatprep.mubr.msk.f32.mxu0 %vm8471_vm1, %v6418_v12  ;;  %v8733_v12 = vshra.s32 %v6620_v63, 4 }
  0x29   : > { %4854 = vmatmul.mubr.msk.f32.gmra.mrb[10].mxu1 %vm8471_vm1, %v6427_v13  ;;  %4828 = vmatmul.mubr.msk.f32.gmra.mrb[10].mxu0 %vm8471_vm1, %v6427_v13 }
  0x2a   : > { %4856 = vmatprep.mubr.msk.f32.mxu1 %vm8471_vm1, %v6432_v14  ;;  %4830 = vmatprep.mubr.msk.f32.mxu0 %vm8471_vm1, %v6432_v14  ;;  %v505_v14 = vand.u32 15, %v6516_v36 }
  0x2d   : > { %4857 = vmatmul.mubr.msk.f32.gmra.mrb[12].mxu1 %vm8471_vm1, %v6441_v15  ;;  %4831 = vmatmul.mubr.msk.f32.gmra.mrb[12].mxu0 %vm8471_vm1, %v6441_v15  ;;  %v506_v15 = vand.u32 15, %v6529_v39 }
  0x2e   : > { %4859 = vmatprep.mubr.msk.f32.mxu1 %vm8471_vm1, %v6446_v16  ;;  %4833 = vmatprep.mubr.msk.f32.mxu0 %vm8471_vm1, %v6446_v16  ;;  %v504_v16 = vand.u32 15, %v6490_v29  ;;  %v8737_v29 = vshra.s32 %v6632_v23, 4 }
  0x31   : > { %4860 = vmatmul.mubr.msk.f32.gmra.mrb[14].mxu1 %vm8471_vm1, %v6455_v17  ;;  %4834 = vmatmul.mubr.msk.f32.gmra.mrb[14].mxu0 %vm8471_vm1, %v6455_v17  ;;  %vm6637_vm1 = vcmp.eq.s32.totalorder %v8480_v1, %v6477_v26  ;;  %v8689_v1 = vmov 0  ;;  %v8728_v17 = vmov 0 }
  0x32   : > { %4894 = vmatprep.mubr.msk.f32.mxu0 %vm6485_vm2, %v8472_v30  ;;  %v8684_v24 = vsel %vm6637_vm1, 4294967295, %v8683_v24  ;;  %v6642_v30 = vadd.s32 120, %v6463_v19  ;;  %vm6656_vm2 = vcmp.eq.s32.totalorder %v8484_v59, %v6477_v26  ;;  %v401_v59 = vld [vmem:[%s6671_s26] sm:$0xff]  ;;  %v8704_v19 = vmov 1.0|1.0  }
  0x33   : > { %8685 = vst [vmem:[#allocation30_spill] sm:$0xff] %v8684_v24  ;;  %v8690_v1 = vsel %vm6656_vm2, 4294967295, %v8689_v1  ;;  %vm8497_vm2 = vcmask 130048  }
  0x34   : > { %v8486_v54 = vshra.s32 %v6642_v30, 4  ;;  %8691 = vst [vmem:[#allocation32_spill] sm:$0xff] %v8690_v1  ;;  %4948 = vmatprep.mubr.msk.f32.mxu1 %vm8497_vm2, %v401_v59  ;;  %v407_v59 = vld [vmem:[%s6671_s26 + $0x30] sm:$0xff] }
  0x36   : > { %vm6663_vm5 = vcmp.eq.s32.totalorder %v8486_v54, %v6477_v26  ;;  %v402_v54 = vld [vmem:[%s6671_s26 + $0x8] sm:$0xff] }
  0x37   : > { %v8693_v53 = vsel %vm6663_vm5, 4294967295, %v8692_v53  ;;  %4949 = vmatmul.mubr.msk.f32.vlgmr.msra.gmra.mrb[16].mxu1 %vm8497_vm2, %v402_v54  ;;  %v409_v54 = vld [vmem:[%s6671_s26 + $0x40] sm:$0xff] }
  0x38   : > { %8694 = vst [vmem:[#allocation33_spill] sm:$0xff] %v8693_v53  ;;  %4951 = vmatprep.mubr.msk.f32.mxu1 %vm8497_vm2, %v403_v18  ;;  %v410_v18 = vld [vmem:[%s6671_s26 + $0x48] sm:$0xff] }
  0x3b   : > { %4952 = vmatmul.mubr.msk.f32.gmra.mrb[18].mxu1 %vm8497_vm2, %v404_v48  ;;  %v411_v48 = vld [vmem:[%s6671_s26 + $0x50] sm:$0xff] }
  0x3c   : > { %4954 = vmatprep.mubr.msk.f32.mxu1 %vm8497_vm2, %v405_v47  ;;  %v413_v47 = vld [vmem:[%s6671_s26 + $0x60] sm:$0xff] }
  0x3f   : > { %4955 = vmatmul.mubr.msk.f32.gmra.mrb[20].mxu1 %vm8497_vm2, %v406_v42  ;;  %v566_v42 = vshra.s32 %v6465_v20, 3 }
  0x40   : > { %4957 = vmatprep.mubr.msk.f32.mxu1 %vm8497_vm2, %v407_v59  ;;  %v414_v59 = vld [vmem:[%s6671_s26 + $0x68] sm:$0xff] }
  0x41   : > { %vm6711_vm0 = vcmp.eq.s32.totalorder %v434_v25, %v566_v42  ;;  %vm6717_vm1 = vcmp.eq.s32.totalorder %v436_v33, %v566_v42  ;;  %v8706_v25 = vshra.s32 %v6516_v36, 4 }
  0x43   : > { %4958 = vmatmul.mubr.msk.f32.gmra.mrb[22].mxu1 %vm8497_vm2, %v408_v41  ;;  %v8505_v41 = vshra.s32 %v6468_v21, 4  ;;  %vm6743_vm11 = vcmp.eq.s32.totalorder %v8706_v25, %v566_v42  ;;  %v8715_v25 = vshra.s32 %v6554_v45, 4 }
  0x44   : > { %4960 = vmatprep.mubr.msk.f32.mxu1 %vm8497_vm2, %v409_v54 }
  0x45   : > { %vm6705_vm5 = vcmp.eq.s32.totalorder %v8505_v41, %v566_v42  ;;  %vm6767_vm10 = vcmp.eq.s32.totalorder %v8715_v25, %v566_v42  ;;  %v8719_v41 = vmov 0  ;;  %v8721_v25 = vshra.s32 %v6576_v51, 4 }
  0x46   : > { %vm5604_vm15 = vmpackc.low %vm6705_vm5, %vm6711_vm0 }
  0x47   : > { %4961 = vmatmul.mubr.msk.f32.gmra.mrb[24].mxu1 %vm8497_vm2, %v410_v18  ;;  %5605 = vmatprep.subr.msk.bf16.mxu1 %vm5604_vm15, %v8704_v19  ;;  %vm6785_vm8 = vcmp.eq.s32.totalorder %v8721_v25, %v566_v42  ;;  %v8727_v25 = vshra.s32 %v6598_v57, 4 }
  0x48   : > { %4963 = vmatprep.mubr.msk.f32.mxu1 %vm8497_vm2, %v411_v48  ;;  %v415_v48 = vld [vmem:[%s6671_s26 + $0x70] sm:$0xff]  ;;  %5607 = vmatpush3.bf16.msk.msra.mxu1 %vm5604_vm15, %v8704_v19  ;;  %v8723_v28 = vsel %vm6785_vm8, 4294967295, %v8722_v28 }
  0x49   : > { %vm6803_vm6 = vcmp.eq.s32.totalorder %v8727_v25, %v566_v42  ;;  %v8730_v25 = vshra.s32 %v6610_v61, 4 }
  0x4a   : > { %v8729_v17 = vsel %vm6803_vm6, 4294967295, %v8728_v17 }
  0x4b   : > { %4964 = vmatmul.mubr.msk.f32.gmra.mrb[26].mxu1 %vm8497_vm2, %v412_v37 }
  0x4c   : > { %4966 = vmatprep.mubr.msk.f32.mxu1 %vm8497_vm2, %v413_v47  ;;  %v416_v47 = vld [vmem:[%s6671_s26 + $0x78] sm:$0xff] }
  0x4f   : > { %4967 = vmatmul.mubr.msk.f32.gmra.mrb[28].mxu1 %vm8497_vm2, %v414_v59  ;;  %vm6723_vm2 = vcmp.eq.s32.totalorder %v437_v35, %v566_v42  ;;  %v8709_v35 = vshra.s32 %v6529_v39, 4  ;;  %v8710_v59 = vmov 0 }
  0x50   : > { %4969 = vmatprep.mubr.msk.f32.mxu1 %vm8703_vm14, %v415_v48  ;;  %vm5608_vm13 = vmpackc.low %vm6723_vm2, %vm6717_vm1  ;;  %v8712_v48 = vshra.s32 %v6544_v43, 4 }
  0x51   : > { %vm6749_vm14 = vcmp.eq.s32.totalorder %v8709_v35, %v566_v42  ;;  %5609 = vmatprep.subr.msk.bf16.mxu1 %vm5608_vm13, %v8704_v19  ;;  %v8716_v35 = vmov 0 }
  0x52   : > { %v8711_v59 = vsel %vm6749_vm14, 4294967295, %v8710_v59  ;;  %5611 = vmatpush3.bf16.msk.msra.mxu1 %vm5608_vm13, %v8704_v19  ;;  %vm6761_vm15 = vcmp.eq.s32.totalorder %v8712_v48, %v566_v42  ;;  %v8717_v35 = vsel %vm6767_vm10, 4294967295, %v8716_v35  ;;  %v8718_v48 = vshra.s32 %v6566_v49, 4 }
  0x53   : > { %4970 = vmatmul.mubr.msk.f32.gmra.mrb[30].mxu1 %vm8705_vm12, %v416_v47  ;;  %vm5612_vm12 = vmpackc.low %vm6749_vm14, %vm6743_vm11  ;;  %v8713_v47 = vmov 0  ;;  %vm6846_vm14 = vcmp.eq.s32.totalorder %v8737_v29, %v566_v42 }
  0x54   : > { %v8714_v47 = vsel %vm6761_vm15, 4294967295, %v8713_v47  ;;  %5613 = vmatprep.subr.msk.bf16.mxu1 %vm5612_vm12, %v8704_v19  ;;  %vm5616_vm9 = vmpackc.low %vm6767_vm10, %vm6761_vm15  ;;  %vm6779_vm13 = vcmp.eq.s32.totalorder %v8718_v48, %v566_v42  ;;  %v8724_v48 = vshra.s32 %v6588_v55, 4  ;;  %vm523_vm10 = vcmp.eq.s32.totalorder %v506_v15, %v6471_v22 }
  0x55   : > { %v8720_v41 = vsel %vm6779_vm13, 4294967295, %v8719_v41  ;;  %vm5620_vm7 = vmpackc.low %vm6785_vm8, %vm6779_vm13  ;;  %vm6825_vm13 = vcmp.eq.s32.totalorder %v8733_v12, %v566_v42  ;;  %vm522_vm15 = vcmp.eq.s32.totalorder %v505_v14, %v6471_v22  ;;  %v8533_v12 = vmov 0.0  }
  0x56   : > { %5615 = vmatpush3.bf16.msk.msra.mxu1 %vm5612_vm12, %v8704_v19  ;;  %vm6797_vm12 = vcmp.eq.s32.totalorder %v8724_v48, %v566_v42  ;;  %v503_v48 = vand.u32 15, %v6480_v27  ;;  %v6842_v27 = vsel %vm6496_vm3, 1.0, %v8533_v12  ;;  %v6865_v14 = vsel %vm6705_vm5, 1.0, %v8533_v12 }
  0x57   : > { %5617 = vmatprep.subr.msk.bf16.mxu1 %vm5616_vm9, %v8704_v19  ;;  %v8726_v34 = vsel %vm6797_vm12, 4294967295, %v8725_v34  ;;  %vm5624_vm8 = vmpackc.low %vm6803_vm6, %vm6797_vm12  ;;  %8736 = vst [vmem:[#allocation34_spill] sm:$0xff] %v6842_v27  ;;  %v6870_v31 = vsel %vm6501_vm4, 1.0, %v8533_v12  ;;  %v6884_v54 = vsel %vm523_vm10, 1.0, %v8533_v12  ;;  %v6887_v32 = vsel %vm522_vm15, 1.0, %v8533_v12 }
  0x58   : > { %vm520_vm12 = vcmp.eq.s32.totalorder %v503_v48, %v6471_v22  ;;  %8744 = vst [vmem:[#allocation35_spill] sm:$0xff] %v6870_v31  ;;  %8747 = vst [vmem:[#allocation38_spill] sm:$0xff] %v6884_v54  ;;  %v6904_v10 = vsel %vm6723_vm2, 1.0, %v8533_v12  ;;  %vm8757_vm2 = vnez %v8717_v35  ;;  %vm8761_vm10 = vnez %v8720_v41 }
  0x59   : > { %v6881_v48 = vsel %vm520_vm12, 1.0, %v8533_v12  ;;  %8748 = vst [vmem:[#allocation39_spill] sm:$0xff] %v6887_v32  ;;  %8750 = vst [vmem:[#allocation41_spill] sm:$0xff] %v6904_v10  ;;  %v6930_v18 = vsel %vm8757_vm2, 1.0, %v8533_v12  ;;  %vm8765_vm15 = vnez %v8726_v34  ;;  %vm8766_vm12 = vnez %v8729_v17 }
  0x5a   : > { %5619 = vmatpush3.bf16.msk.msra.mxu1 %vm5616_vm9, %v8704_v19  ;;  %vm6819_vm9 = vcmp.eq.s32.totalorder %v8730_v25, %v566_v42  ;;  %8746 = vst [vmem:[#allocation37_spill] sm:$0xff] %v6881_v48  ;;  %v507_v25 = vand.u32 15, %v6544_v43  ;;  %v6915_v43 = vsel %vm6743_vm11, 1.0, %v8533_v12  ;;  %8758 = vst [vmem:[#allocation45_spill] sm:$0xff] %v6930_v18  ;;  %vm8763_vm11 = vnez %v8723_v28 }
  0x5b   : > { %5621 = vmatprep.subr.msk.bf16.mxu1 %vm5620_vm7, %v8704_v19  ;;  %8752 = vst [vmem:[#allocation42_spill] sm:$0xff] %v6915_v43  ;;  %v6956_v35 = vsel %vm8765_vm15, 1.0, %v8533_v12  ;;  %v6971_v28 = vsel %vm6819_vm9, 1.0, %v8533_v12  ;;  %v6976_v34 = vsel %vm6825_vm13, 1.0, %v8533_v12  ;;  %v6981_v17 = vsel %vm6846_vm14, 1.0, %v8533_v12 }
  0x5c   : > { %vm8785_vm2 = vcmask 1043456   ;;  %vm8790_vm15 = vnez %v8660_v44 }
  0x5e   : > { %5623 = vmatpush3.bf16.msk.msra.mxu1 %vm5620_vm7, %v8704_v19  ;;  %vm521_vm7 = vcmp.eq.s32.totalorder %v504_v16, %v6471_v22  ;;  %v8740_v16 = vshra.s32 %v6642_v30, 4 }
  0x5f   : > { %5625 = vmatprep.subr.msk.bf16.mxu1 %vm5624_vm8, %v8704_v19  ;;  %v6873_v39 = vsel %vm521_vm7, 1.0, %v8533_v12  ;;  %vm6964_vm7 = vcmp.eq.s32.totalorder %v507_v25, %v6471_v22 }
  0x60   : > { %vm6852_vm6 = vcmp.eq.s32.totalorder %v8740_v16, %v566_v42  ;;  %8745 = vst [vmem:[#allocation36_spill] sm:$0xff] %v6873_v39  ;;  %v508_v42 = vand.u32 15, %v6554_v45  ;;  %v6894_v45 = vsel %vm6711_vm0, 1.0, %v8533_v12  ;;  %v6899_v16 = vsel %vm6717_vm1, 1.0, %v8533_v12 }
  0x61   : > { %vm5632_vm3 = vmpackc.low %vm6852_vm6, %vm6846_vm14  ;;  %8749 = vst [vmem:[#allocation40_spill] sm:$0xff] %v6899_v16  ;;  %vm8753_vm0 = vnez %v8711_v59  ;;  %vm8755_vm1 = vnez %v8714_v47  ;;  %v6946_v59 = vsel %vm8761_vm10, 1.0, %v8533_v12  ;;  %v6951_v47 = vsel %vm8763_vm11, 1.0, %v8533_v12 }
  0x62   : > { %5627 = vmatpush3.bf16.msk.msra.mxu1 %vm5624_vm8, %v8704_v19  ;;  %vm8743_vm8 = vmpackc.low %vm6825_vm13, %vm6819_vm9  ;;  %v6920_v37 = vsel %vm8753_vm0, 1.0, %v8533_v12  ;;  %v6925_v20 = vsel %vm8755_vm1, 1.0, %v8533_v12  ;;  %vm6939_vm5 = vcmp.eq.s32.totalorder %v508_v42, %v6471_v22  ;;  %8762 = vst [vmem:[#allocation46_spill] sm:$0xff] %v6946_v59  ;;  %v6961_v42 = vsel %vm8766_vm12, 1.0, %v8533_v12 }
  0x63   : > { %5629 = vmatprep.subr.msk.bf16.mxu1 %vm8743_vm8, %v8704_v19  ;;  %vm8751_vm4 = vmmov %vm8743_vm8  ;;  %8754 = vst [vmem:[#allocation43_spill] sm:$0xff] %v6920_v37  ;;  %v6986_v25 = vsel %vm6852_vm6, 1.0, %v8533_v12  ;;  %vm8788_vm10 = vnez %v8654_v38  ;;  %vm8789_vm11 = vnez %v8657_v40  ;;  %vm8791_vm12 = vnez %v8663_v46 }
  0x64   : > { %8756 = vst [vmem:[#allocation44_spill] sm:$0xff] %v6925_v20  ;;  %8764 = vst [vmem:[#allocation47_spill] sm:$0xff] %v6951_v47 }
  0x66   : > { %5631 = vmatpush3.bf16.msk.msra.mxu1 %vm8751_vm4, %v8704_v19 }
  0x67   : > { %5633 = vmatprep.subr.msk.bf16.mxu1 %vm5632_vm3, %v8704_v19 }
  0x6a   : > { %5635 = vmatpush3.bf16.msk.msra.mxu1 %vm5632_vm3, %v8704_v19 }
  0xe8   : > { %v4840_v29 = vpop.f32.mrb[0].mxu1  ;;  %v4814_v9 = vpop.f32.mrb[0].mxu0 }
  0xe9   : > { %v965_v13 = vmul.f32 %v4840_v29, %v6842_v27  ;;  %v885_v8 = vpop.f32.mrb[1].mxu1  ;;  %v735_v7 = vpop.f32.mrb[1].mxu0  ;;  %v1773_v6 = vmul.f32 %v4814_v9, %v6865_v14  ;;  %v1775_v11 = vmul.f32 %v4814_v9, %v6904_v10  ;;  %v1777_v5 = vmul.f32 %v4814_v9, %v6920_v37 }
  0xea   : > { %v964_v12 = vmul.f32 %v6870_v31, %v885_v8  ;;  %v1772_v4 = vmul.f32 %v6894_v45, %v735_v7  ;;  %v1774_v29 = vmul.f32 %v6899_v16, %v735_v7  ;;  %v1776_v27 = vmul.f32 %v6915_v43, %v735_v7 }
  0xeb   : > { %v1778_v3 = vmul.f32 %v6925_v20, %v735_v7  ;;  %v1779_v10 = vmul.f32 %v4814_v9, %v6930_v18  ;;  %v1780_v37 = vmul.f32 %v6946_v59, %v735_v7  ;;  %v1781_v15 = vmul.f32 %v4814_v9, %v6951_v47 }
  0xec   : > { %v5568_v2 = vpack.c.bf16 %v965_v13, %v964_v12  ;;  %v4843_v36 = vpop.f32.mrb[2].mxu1  ;;  %v7006_v53 = vpack.c.bf16 %v1773_v6, %v1772_v4  ;;  %v7008_v19 = vpack.c.bf16 %v1775_v11, %v1774_v29  ;;  %v7010_v8 = vpack.c.bf16 %v1777_v5, %v1776_v27  ;;  %v7012_v31 = vpop.f32.mrb[2].mxu0 }
  0xed   : > { %v967_v43 = vmul.f32 %v4843_v36, %v6873_v39  ;;  %v895_v16 = vpop.f32.mrb[3].mxu1  ;;  %v7015_v20 = vpack.c.bf16 %v1779_v10, %v1778_v3  ;;  %v7017_v18 = vpack.c.bf16 %v1781_v15, %v1780_v37  ;;  %v1782_v59 = vmul.f32 %v6956_v35, %v735_v7  ;;  %v7020_v47 = vpop.f32.mrb[3].mxu0 }
  0xee   : > { %v966_v4 = vmul.f32 %v6881_v48, %v895_v16  ;;  %5569 = vmatprep.subr.bf16.mxu0 %v5568_v2  ;;  %v1783_v6 = vmul.f32 %v4814_v9, %v6961_v42  ;;  %v1784_v5 = vmul.f32 %v6971_v28, %v735_v7  ;;  %v1785_v12 = vmul.f32 %v4814_v9, %v6976_v34 }
  0xef   : > { %5571 = vmatpush3.bf16.msra.mxu0 %v5568_v2  ;;  %v1786_v27 = vmul.f32 %v6981_v17, %v735_v7  ;;  %v1787_v3 = vmul.f32 %v4814_v9, %v6986_v25  ;;  %v1788_v10 = vmul.f32 %v6894_v45, %v7020_v47  ;;  %v1789_v37 = vmul.f32 %v7012_v31, %v6865_v14 }
  0xf0   : > { %v5572_v13 = vpack.c.bf16 %v967_v43, %v966_v4  ;;  %v4846_v16 = vpop.f32.mrb[4].mxu1  ;;  %v509_v11 = vand.u32 15, %v6566_v49  ;;  %v7033_v29 = vpack.c.bf16 %v1783_v6, %v1782_v59  ;;  %v7035_v15 = vpack.c.bf16 %v1785_v12, %v1784_v5  ;;  %v7037_v36 = vpop.f32.mrb[4].mxu0 }
  0xf1   : > { %v969_v2 = vmul.f32 %v4846_v16, %v6884_v54  ;;  %v905_v7 = vpop.f32.mrb[5].mxu1  ;;  %v7040_v9 = vpack.c.bf16 %v1787_v3, %v1786_v27  ;;  %v7042_v48 = vpop.f32.mrb[5].mxu0  ;;  %v7044_v39 = vpack.c.bf16 %v1789_v37, %v1788_v10  ;;  %v1805_v43 = vmul.f32 %v7037_v36, %v6865_v14 }
  0xf2   : > { %v968_v49 = vmul.f32 %v6887_v32, %v905_v7  ;;  %5573 = vmatprep.subr.bf16.mxu0 %v5572_v13  ;;  %v8769_v59 = vmov 0.0   ;;  %v1804_v6 = vmul.f32 %v6894_v45, %v7042_v48  ;;  %v8772_v12 = vand.u32 15, %v6576_v51 }
  0xf3   : > { %v7052_v4 = vsel %vm6939_vm5, 1.0, %v8769_v59  ;;  %5575 = vmatpush3.bf16.msra.mxu0 %v5572_v13  ;;  %v7059_v5 = vsel %vm6964_vm7, 1.0, %v8769_v59  ;;  %v512_v27 = vand.u32 15, %v6598_v57  ;;  %5669 = vmatprep.subr.bf16.mxu1 %v7044_v39  ;;  %vm526_vm14 = vcmp.eq.s32.totalorder %v509_v11, %v6471_v22  ;;  %vm8787_vm5 = vmmov %vm8785_vm2 }
  0xf4   : > { %8770 = vst [vmem:[#allocation48_spill] sm:$0xff] %v7052_v4  ;;  %8771 = vst [vmem:[#allocation49_spill] sm:$0xff] %v7059_v5  ;;  %vm527_vm6 = vcmp.eq.s32.totalorder %v8772_v12, %v6471_v22  ;;  %v5576_v33 = vpack.c.bf16 %v969_v2, %v968_v49  ;;  %v4849_v3 = vpop.f32.mrb[6].mxu1  ;;  %v511_v10 = vand.u32 15, %v6588_v55  ;;  %v7068_v37 = vpop.f32.mrb[6].mxu0  ;;  %v7070_v13 = vpack.c.bf16 %v1805_v43, %v1804_v6 }
  0xf5   : > { %v971_v41 = vmul.f32 %v4849_v3, %v7052_v4  ;;  %v915_v16 = vpop.f32.mrb[7].mxu1  ;;  %v7073_v7 = vpop.f32.mrb[7].mxu0  ;;  %v7077_v57 = vsel %vm527_vm6, 1.0, %v8769_v59  ;;  %v7080_v11 = vsel %vm526_vm14, 1.0, %v8769_v59  ;;  %vm529_vm13 = vcmp.eq.s32.totalorder %v512_v27, %v6471_v22 }
  0xf6   : > { %v970_v51 = vmul.f32 %v7059_v5, %v915_v16  ;;  %5577 = vmatprep.subr.bf16.mxu0 %v5576_v33  ;;  %8773 = vst [vmem:[#allocation50_spill] sm:$0xff] %v7077_v57  ;;  %8774 = vst [vmem:[#allocation51_spill] sm:$0xff] %v7080_v11  ;;  %v514_v55 = vand.u32 15, %v6620_v63  ;;  %vm528_vm9 = vcmp.eq.s32.totalorder %v511_v10, %v6471_v22  ;;  %v513_v49 = vand.u32 15, %v6610_v61 }
  0xf7   : > { %5579 = vmatpush3.bf16.msra.mxu0 %v5576_v33  ;;  %v7093_v27 = vsel %vm529_vm13, 1.0, %v8769_v59  ;;  %v7096_v63 = vsel %vm528_vm9, 1.0, %v8769_v59  ;;  %v516_v61 = vand.u32 15, %v6642_v30  ;;  %vm8792_vm7 = vnez %v8666_v50 }
  0xf8   : > { %v5580_v2 = vpack.c.bf16 %v971_v41, %v970_v51  ;;  %v4852_v43 = vpop.f32.mrb[8].mxu1  ;;  %v7086_v6 = vpop.f32.mrb[8].mxu0  ;;  %8775 = vst [vmem:[#allocation52_spill] sm:$0xff] %v7093_v27  ;;  %8776 = vst [vmem:[#allocation53_spill] sm:$0xff] %v7096_v63  ;;  %vm531_vm8 = vcmp.eq.s32.totalorder %v514_v55, %v6471_v22  ;;  %vm530_vm3 = vcmp.eq.s32.totalorder %v513_v49, %v6471_v22  ;;  %v515_v51 = vand.u32 15, %v6632_v23 }
  0xf9   : > { %v973_v12 = vmul.f32 %v4852_v43, %v7077_v57  ;;  %v925_v3 = vpop.f32.mrb[9].mxu1  ;;  %v7089_v16 = vpop.f32.mrb[9].mxu0  ;;  %v7109_v55 = vsel %vm531_vm8, 1.0, %v8769_v59  ;;  %v7112_v30 = vsel %vm530_vm3, 1.0, %v8769_v59  ;;  %vm533_vm4 = vcmp.eq.s32.totalorder %v516_v61, %v6471_v22 }
  0xfa   : > { %v972_v33 = vmul.f32 %v7080_v11, %v925_v3  ;;  %5581 = vmatprep.subr.bf16.mxu0 %v5580_v2  ;;  %8777 = vst [vmem:[#allocation54_spill] sm:$0xff] %v7109_v55  ;;  %8778 = vst [vmem:[#allocation55_spill] sm:$0xff] %v7112_v30  ;;  %vm532_vm0 = vcmp.eq.s32.totalorder %v515_v51, %v6471_v22  ;;  %vm8793_vm6 = vnez %v8669_v52  ;;  %vm8794_vm14 = vnez %v8672_v56 }
  0xfb   : > { %5583 = vmatpush3.bf16.msra.mxu0 %v5580_v2  ;;  %v7126_v61 = vsel %vm532_vm0, 1.0, %v8769_v59  ;;  %vm8795_vm13 = vnez %v8675_v58  ;;  %vm8796_vm9 = vnez %v8678_v62  ;;  %vm8797_vm8 = vnez %v8681_v0 }
  0xfc   : > { %v5584_v10 = vpack.c.bf16 %v973_v12, %v972_v33  ;;  %v4855_v41 = vpop.f32.mrb[10].mxu1  ;;  %v7102_v43 = vpop.f32.mrb[10].mxu0  ;;  %8780 = vst [vmem:[#allocation57_spill] sm:$0xff] %v7126_v61  ;;  %vm8798_vm3 = vnez %v8684_v24  ;;  %vm8800_vm0 = vnez %v8690_v1  ;;  %v1798_v1 = vmul.f32 %v6956_v35, %v7020_v47 }
  0xfd   : > { %v975_v3 = vmul.f32 %v4855_v41, %v7093_v27  ;;  %v935_v11 = vpop.f32.mrb[11].mxu1  ;;  %v7105_v57 = vpop.f32.mrb[11].mxu0  ;;  %v1814_v44 = vmul.f32 %v6956_v35, %v7042_v48  ;;  %v1815_v40 = vmul.f32 %v7037_v36, %v6961_v42  ;;  %v1816_v38 = vmul.f32 %v6971_v28, %v7042_v48 }
  0xfe   : > { %v974_v2 = vmul.f32 %v7096_v63, %v935_v11  ;;  %5585 = vmatprep.subr.bf16.mxu0 %v5584_v10  ;;  %v1849_v54 = vmul.f32 %v7086_v6, %v6976_v34 }
  0xff   : > { %5587 = vmatpush3.bf16.msra.mxu0 %v5584_v10  ;;  %v7123_v10 = vsel %vm533_vm4, 1.0, %v8769_v59  ;;  %vm8799_vm4 = vnez %v8687_v60  ;;  %v8838_v59 = vld [vmem:[#allocation47_spill] sm:$0xff]  ;;  %v8839_v60 = vld [vmem:[#allocation17_spill] sm:$0xff] }
 0x100   : > { %v5588_v23 = vpack.c.bf16 %v975_v3, %v974_v2  ;;  %v4858_v49 = vpop.f32.mrb[12].mxu1  ;;  %v7116_v12 = vpop.f32.mrb[12].mxu0  ;;  %8779 = vst [vmem:[#allocation56_spill] sm:$0xff] %v7123_v10  ;;  %v1845_v32 = vmul.f32 %v7086_v6, %v8838_v59 }
 0x101   : > { %v977_v33 = vmul.f32 %v4858_v49, %v7109_v55  ;;  %v945_v41 = vpop.f32.mrb[13].mxu1  ;;  %v7119_v11 = vpop.f32.mrb[13].mxu0 }
 0x102   : > { %v976_v63 = vmul.f32 %v7112_v30, %v945_v41  ;;  %5589 = vmatprep.subr.bf16.mxu0 %v5588_v23 }
 0x103   : > { %5591 = vmatpush3.bf16.msra.mxu0 %v5588_v23  ;;  %v814_v23 = vld [vmem:[%s8463_s3] sm:$0xf] }
 0x104   : > { %v5592_v3 = vpack.c.bf16 %v977_v33, %v976_v63  ;;  %v4861_v2 = vpop.f32.mrb[14].mxu1  ;;  %v7128_v22 = vpop.f32.mrb[14].mxu0  ;;  %v8781_v63 = vshra.s32 %v6468_v21, 4  ;;  %v8782_v33 = vmov 0  ;;  %v8801_v21 = vld [vmem:[#allocation33_spill] sm:$0xff] }
 0x105   : > { %v979_v51 = vmul.f32 %v4861_v2, %v7123_v10  ;;  %v955_v49 = vpop.f32.mrb[15].mxu1  ;;  %v7131_v55 = vpop.f32.mrb[15].mxu0  ;;  %v8786_v2 = vmov 1.0  }
 0x106   : > { %v978_v27 = vmul.f32 %v7126_v61, %v955_v49  ;;  %5593 = vmatprep.subr.bf16.mxu0 %v5592_v3  ;;  %vm7140_vm1 = vcmp.eq.s32.totalorder %v8781_v63, %v6477_v26  ;;  %v8803_v26 = vld [vmem:[#allocation2_spill] sm:$0xff] }
 0x107   : > { %5595 = vmatpush3.bf16.msra.mxu0 %v5592_v3  ;;  %v8783_v33 = vsel %vm7140_vm1, 4294967295, %v8782_v33  ;;  %v8807_v3 = vld [vmem:[#allocation4_spill] sm:$0xff]  ;;  %v8811_v49 = vld [vmem:[#allocation6_spill] sm:$0xff] }
 0x108   : > { %v5596_v41 = vpack.c.bf16 %v979_v51, %v978_v27  ;;  %8784 = vst [vmem:[#allocation58_spill] sm:$0xff] %v8783_v33  ;;  %v8805_v27 = vld [vmem:[#allocation3_spill] sm:$0xff]  ;;  %v8809_v51 = vld [vmem:[#allocation5_spill] sm:$0xff]  ;;  %v8819_v63 = vld [vmem:[#allocation10_spill] sm:$0xff] }
 0x10a   : > { %5597 = vmatprep.subr.bf16.mxu0 %v5596_v41 }
 0x10b   : > { %5599 = vmatpush3.bf16.msra.mxu0 %v5596_v41  ;;  %v8813_v41 = vld [vmem:[#allocation7_spill] sm:$0xff] }
 0x10c   : > { %4918 = vmatprep.subr.msk.mxu0 %vm8785_vm2, %v814_v23  ;;  %vm8802_vm2 = vnez %v8801_v21  ;;  %v1797_v21 = vmul.f32 %v7012_v31, %v8838_v59 }
 0x10e   : > { %4895 = vmatmul.mubr.msk.f32.vlgmr.msra.gmra.mrb[16].mxu0 %vm7140_vm1, %v8786_v2 }
 0x10f   : > { %4919 = vmatpush3.msk.msra.mxu0 %vm8787_vm5, %v814_v23  ;;  %4897 = vmatprep.mubr.msk.f32.mxu0 %vm8788_vm10, %v8786_v2  ;;  %vm8804_vm5 = vcmask 31744   ;;  %v8815_v23 = vld [vmem:[#allocation8_spill] sm:$0xff] }
 0x110   : > { %5637 = vmatprep.subr.bf16.mxu0 %v7006_v53 }
 0x112   : > { %4898 = vmatmul.mubr.msk.f32.gmra.mrb[18].mxu0 %vm8789_vm11, %v8786_v2 }
 0x113   : > { %4900 = vmatprep.mubr.msk.f32.mxu0 %vm8790_vm15, %v8786_v2 }
 0x116   : > { %4901 = vmatmul.mubr.msk.f32.gmra.mrb[20].mxu0 %vm8791_vm12, %v8786_v2 }
 0x117   : > { %4903 = vmatprep.mubr.msk.f32.mxu0 %vm8792_vm7, %v8786_v2 }
 0x11a   : > { %4904 = vmatmul.mubr.msk.f32.gmra.mrb[22].mxu0 %vm8793_vm6, %v8786_v2 }
 0x11b   : > { %4906 = vmatprep.mubr.msk.f32.mxu0 %vm8794_vm14, %v8786_v2 }
 0x11e   : > { %4907 = vmatmul.mubr.msk.f32.gmra.mrb[24].mxu0 %vm8795_vm13, %v8786_v2 }
 0x11f   : > { %4909 = vmatprep.mubr.msk.f32.mxu0 %vm8796_vm9, %v8786_v2 }
 0x122   : > { %4910 = vmatmul.mubr.msk.f32.gmra.mrb[26].mxu0 %vm8797_vm8, %v8786_v2  ;;  %vm8806_vm8 = vmmov %vm8804_vm5 }
 0x123   : > { %4912 = vmatprep.mubr.msk.f32.mxu0 %vm8798_vm3, %v8786_v2  ;;  %vm8808_vm3 = vmmov %vm8804_vm5 }
 0x126   : > { %4913 = vmatmul.mubr.msk.f32.gmra.mrb[28].mxu0 %vm8799_vm4, %v8786_v2  ;;  %vm8810_vm4 = vmmov %vm8808_vm3 }
 0x127   : > { %4915 = vmatprep.mubr.msk.f32.mxu0 %vm8800_vm0, %v8786_v2  ;;  %vm8812_vm0 = vmmov %vm8808_vm3 }
 0x12a   : > { %4916 = vmatmul.mubr.msk.f32.gmra.mrb[30].mxu0 %vm8802_vm2, %v8786_v2 }
 0x12b   : > { %4920 = vmatprep.mubr.msk.f32.mxu0 %vm8804_vm5, %v8803_v26  ;;  %vm8814_vm5 = vmmov %vm8812_vm0  ;;  %v8822_v26 = vld [vmem:[#allocation12_spill] sm:$0xff] }
 0x12e   : > { %4921 = vmatmul.mubr.msk.f32.vlgmr.msra.gmra.mrb[16].mxu0 %vm8806_vm8, %v8805_v27  ;;  %vm8816_vm8 = vmmov %vm8812_vm0  ;;  %v8826_v27 = vld [vmem:[#allocation14_spill] sm:$0xff] }
 0x12f   : > { %4923 = vmatprep.mubr.msk.f32.mxu0 %vm8808_vm3, %v8807_v3  ;;  %5639 = vmatpush3.bf16.msra.mxu0 %v7006_v53  ;;  %v8817_v53 = vld [vmem:[#allocation9_spill] sm:$0xff]  ;;  %vm8818_vm3 = vmmov %vm8812_vm0  ;;  %v8830_v3 = vld [vmem:[#allocation16_spill] sm:$0xff] }
 0x130   : > { %5641 = vmatprep.subr.bf16.mxu0 %v7008_v19 }
 0x132   : > { %4924 = vmatmul.mubr.msk.f32.gmra.mrb[18].mxu0 %vm8810_vm4, %v8809_v51  ;;  %vm8820_vm4 = vmmov %vm8812_vm0 }
 0x133   : > { %4926 = vmatprep.mubr.msk.f32.mxu0 %vm8812_vm0, %v8811_v49  ;;  %5643 = vmatpush3.bf16.msra.mxu0 %v7008_v19  ;;  %v8821_v19 = vld [vmem:[#allocation11_spill] sm:$0xff]  ;;  %v8832_v49 = vld [vmem:[#allocation41_spill] sm:$0xff] }
 0x134   : > { %5645 = vmatprep.subr.bf16.mxu0 %v7010_v8  ;;  %v1807_v58 = vmul.f32 %v7037_v36, %v8832_v49 }
 0x136   : > { %4927 = vmatmul.mubr.msk.f32.gmra.mrb[20].mxu0 %vm8814_vm5, %v8813_v41  ;;  %vm8823_vm5 = vmmov %vm8812_vm0  ;;  %v1791_v41 = vmul.f32 %v7012_v31, %v8832_v49 }
 0x137   : > { %4929 = vmatprep.mubr.msk.f32.mxu0 %vm8816_vm8, %v8815_v23  ;;  %5647 = vmatpush3.bf16.msra.mxu0 %v7010_v8  ;;  %v8824_v8 = vld [vmem:[#allocation13_spill] sm:$0xff]  ;;  %vm8825_vm8 = vmmov %vm8812_vm0 }
 0x138   : > { %5649 = vmatprep.subr.bf16.mxu0 %v7015_v20 }
 0x13a   : > { %4930 = vmatmul.mubr.msk.f32.gmra.mrb[22].mxu0 %vm8818_vm3, %v8817_v53  ;;  %vm8827_vm3 = vmmov %vm8812_vm0  ;;  %v8834_v53 = vld [vmem:[#allocation43_spill] sm:$0xff] }
 0x13b   : > { %4932 = vmatprep.mubr.msk.f32.mxu0 %vm8820_vm4, %v8819_v63  ;;  %5651 = vmatpush3.bf16.msra.mxu0 %v7015_v20  ;;  %v8828_v20 = vld [vmem:[#allocation15_spill] sm:$0xff]  ;;  %vm8829_vm4 = vmmov %vm8812_vm0  ;;  %v1793_v63 = vmul.f32 %v7012_v31, %v8834_v53  ;;  %v1841_v33 = vmul.f32 %v7086_v6, %v8834_v53 }
 0x13c   : > { %5653 = vmatprep.subr.bf16.mxu0 %v7017_v18 }
 0x13e   : > { %4933 = vmatmul.mubr.msk.f32.gmra.mrb[24].mxu0 %vm8812_vm0, %v8821_v19  ;;  %v8835_v19 = vld [vmem:[#allocation44_spill] sm:$0xff] }
 0x13f   : > { %4935 = vmatprep.mubr.msk.f32.mxu0 %vm8823_vm5, %v8822_v26  ;;  %5655 = vmatpush3.bf16.msra.mxu0 %v7017_v18  ;;  %v8831_v18 = vld [vmem:[#allocation40_spill] sm:$0xff]  ;;  %v1794_v26 = vmul.f32 %v8835_v19, %v7020_v47  ;;  %vm8840_vm5 = vmmov %vm8812_vm0 }
 0x140   : > { %5657 = vmatprep.subr.bf16.mxu0 %v7033_v29  ;;  %v1790_v51 = vmul.f32 %v8831_v18, %v7020_v47  ;;  %v1806_v62 = vmul.f32 %v8831_v18, %v7042_v48 }
 0x142   : > { %4936 = vmatmul.mubr.msk.f32.gmra.mrb[26].mxu0 %vm8825_vm8, %v8824_v8  ;;  %v8836_v8 = vld [vmem:[#allocation45_spill] sm:$0xff] }
 0x143   : > { %4938 = vmatprep.mubr.msk.f32.mxu0 %vm8827_vm3, %v8826_v27  ;;  %5659 = vmatpush3.bf16.msra.mxu0 %v7033_v29  ;;  %v8833_v29 = vld [vmem:[#allocation42_spill] sm:$0xff]  ;;  %v7248_v27 = vpack.c.bf16 %v1791_v41, %v1790_v51  ;;  %v1799_v51 = vmul.f32 %v7012_v31, %v6961_v42  ;;  %v1800_v41 = vmul.f32 %v6971_v28, %v7020_v47 }
 0x144   : > { %5661 = vmatprep.subr.bf16.mxu0 %v7035_v15  ;;  %v1792_v23 = vmul.f32 %v8833_v29, %v7020_v47  ;;  %v1843_v10 = vmul.f32 %v7086_v6, %v8836_v8 }
 0x145   : > { %v7290_v52 = vpack.c.bf16 %v1799_v51, %v1798_v1  ;;  %v1817_v1 = vmul.f32 %v7037_v36, %v6976_v34  ;;  %v7308_v51 = vpack.c.bf16 %v1815_v40, %v1814_v44  ;;  %v1821_v40 = vmul.f32 %v7068_v37, %v6865_v14 }
 0x146   : > { %4939 = vmatmul.mubr.msk.f32.gmra.mrb[28].mxu0 %vm8829_vm4, %v8828_v20  ;;  %v8837_v20 = vld [vmem:[#allocation46_spill] sm:$0xff]  ;;  %v7258_v24 = vpack.c.bf16 %v1793_v63, %v1792_v23  ;;  %v1808_v23 = vmul.f32 %v8833_v29, %v7042_v48  ;;  %v1809_v63 = vmul.f32 %v7037_v36, %v8834_v53 }
 0x147   : > { %4941 = vmatprep.mubr.msk.f32.mxu0 %vm8812_vm0, %v8830_v3  ;;  %5663 = vmatpush3.bf16.msra.mxu0 %v7035_v15  ;;  %v1795_v15 = vmul.f32 %v7012_v31, %v8836_v8  ;;  %v1796_v3 = vmul.f32 %v8837_v20, %v7020_v47  ;;  %v1844_v4 = vmul.f32 %v8837_v20, %v7089_v16 }
 0x148   : > { %5665 = vmatprep.subr.bf16.mxu0 %v7040_v9  ;;  %v7292_v50 = vpack.c.bf16 %v1809_v63, %v1808_v23  ;;  %v1802_v23 = vmul.f32 %v6981_v17, %v7020_v47  ;;  %v1803_v63 = vmul.f32 %v7012_v31, %v6986_v25  ;;  %v1822_v47 = vmul.f32 %v8831_v18, %v7073_v7 }
 0x149   : > { %v7260_v0 = vpack.c.bf16 %v1795_v15, %v1794_v26  ;;  %v7271_v56 = vpack.c.bf16 %v1797_v21, %v1796_v3  ;;  %v1811_v26 = vmul.f32 %v7037_v36, %v8836_v8  ;;  %v7284_v15 = vpack.c.bf16 %v1807_v58, %v1806_v62 }
 0x14a   : > { %4942 = vmatmul.mubr.msk.f32.gmra.mrb[30].mxu0 %vm8840_vm5, %v8839_v60  ;;  %v1801_v60 = vmul.f32 %v7012_v31, %v6976_v34  ;;  %v1812_v21 = vmul.f32 %v8837_v20, %v7042_v48  ;;  %v1813_v3 = vmul.f32 %v7037_v36, %v8838_v59  ;;  %v7324_v44 = vpack.c.bf16 %v1803_v63, %v1802_v23 }
 0x14b   : > { %5667 = vmatpush3.bf16.msra.mxu0 %v7040_v9  ;;  %v1810_v9 = vmul.f32 %v8835_v19, %v7042_v48  ;;  %v1823_v31 = vmul.f32 %v7068_v37, %v8832_v49  ;;  %v1837_v23 = vmul.f32 %v7086_v6, %v6865_v14 }
 0x14c   : > { %5701 = vmatprep.subr.bf16.mxu0 %v7070_v13  ;;  %v7300_v58 = vpack.c.bf16 %v1813_v3, %v1812_v21  ;;  %v7302_v62 = vpack.c.bf16 %v1801_v60, %v1800_v41  ;;  %v1819_v41 = vmul.f32 %v7037_v36, %v6986_v25  ;;  %v1820_v60 = vmul.f32 %v6894_v45, %v7073_v7 }
 0x14d   : > { %v7294_v46 = vpack.c.bf16 %v1811_v26, %v1810_v9  ;;  %v1818_v9 = vmul.f32 %v6981_v17, %v7042_v48  ;;  %v7316_v26 = vpack.c.bf16 %v1817_v1, %v1816_v38  ;;  %v1824_v38 = vmul.f32 %v8833_v29, %v7073_v7 }
 0x14e   : > { %v7334_v36 = vpack.c.bf16 %v1821_v40, %v1820_v60  ;;  %v1825_v21 = vmul.f32 %v7068_v37, %v8834_v53  ;;  %v1826_v3 = vmul.f32 %v8835_v19, %v7073_v7  ;;  %v1836_v1 = vmul.f32 %v6894_v45, %v7089_v16 }
 0x14f   : > { %v7332_v48 = vpack.c.bf16 %v1819_v41, %v1818_v9  ;;  %v7344_v63 = vpack.c.bf16 %v1823_v31, %v1822_v47  ;;  %v1838_v9 = vmul.f32 %v8831_v18, %v7089_v16  ;;  %v1839_v41 = vmul.f32 %v7086_v6, %v8832_v49 }
 0x150   : > { %v7350_v60 = vpack.c.bf16 %v1825_v21, %v1824_v38  ;;  %v1840_v40 = vmul.f32 %v8833_v29, %v7089_v16  ;;  %v7356_v61 = vpack.c.bf16 %v1837_v23, %v1836_v1  ;;  %v1827_v47 = vmul.f32 %v7068_v37, %v8836_v8 }
 0x151   : > { %v1842_v31 = vmul.f32 %v8835_v19, %v7089_v16  ;;  %v7364_v30 = vpack.c.bf16 %v1839_v41, %v1838_v9  ;;  %v1828_v21 = vmul.f32 %v8837_v20, %v7073_v7  ;;  %v1829_v1 = vmul.f32 %v7068_v37, %v8838_v59 }
 0x152   : > { %v7366_v38 = vpack.c.bf16 %v1841_v33, %v1840_v40  ;;  %v7372_v23 = vpack.c.bf16 %v1827_v47, %v1826_v3  ;;  %v1830_v33 = vmul.f32 %v6956_v35, %v7073_v7  ;;  %v1831_v41 = vmul.f32 %v7068_v37, %v6961_v42 }
 0x153   : > { %v7374_v5 = vpack.c.bf16 %v1843_v10, %v1842_v31  ;;  %v7380_v9 = vpack.c.bf16 %v1829_v1, %v1828_v21  ;;  %v1846_v3 = vmul.f32 %v6956_v35, %v7089_v16  ;;  %v7388_v40 = vpack.c.bf16 %v1845_v32, %v1844_v4 }
 0x154   : > { %v1847_v10 = vmul.f32 %v7086_v6, %v6961_v42  ;;  %v1832_v47 = vmul.f32 %v6971_v28, %v7073_v7  ;;  %v1833_v31 = vmul.f32 %v7068_v37, %v6976_v34  ;;  %v7396_v21 = vpack.c.bf16 %v1831_v41, %v1830_v33 }
 0x155   : > { %8841 = vst [vmem:[#allocation2_spill] sm:$0xff] %v7380_v9  ;;  %8842 = vst [vmem:[#allocation3_spill] sm:$0xff] %v7388_v40  ;;  %v1848_v1 = vmul.f32 %v6971_v28, %v7089_v16  ;;  %v1834_v32 = vmul.f32 %v6981_v17, %v7073_v7  ;;  %v1835_v40 = vmul.f32 %v7068_v37, %v6986_v25 }
 0x156   : > { %8843 = vst [vmem:[#allocation4_spill] sm:$0xff] %v7396_v21  ;;  %v7404_v4 = vpack.c.bf16 %v1847_v10, %v1846_v3  ;;  %v7406_v2 = vpack.c.bf16 %v1833_v31, %v1832_v47  ;;  %v1850_v33 = vmul.f32 %v6981_v17, %v7089_v16  ;;  %v1851_v21 = vmul.f32 %v7086_v6, %v6986_v25 }
 0x157   : > { %v7412_v41 = vpack.c.bf16 %v1849_v54, %v1848_v1  ;;  %v1852_v9 = vmul.f32 %v6894_v45, %v7105_v57  ;;  %v1853_v7 = vmul.f32 %v7102_v43, %v6865_v14  ;;  %v7420_v3 = vpack.c.bf16 %v1835_v40, %v1834_v32 }
 0x158   : > { %v1868_v10 = vmul.f32 %v6894_v45, %v7119_v11  ;;  %v1869_v37 = vmul.f32 %v7116_v12, %v6865_v14  ;;  %v1854_v54 = vmul.f32 %v8831_v18, %v7105_v57  ;;  %v7428_v16 = vpack.c.bf16 %v1851_v21, %v1850_v33 }
 0x159   : > { %v7430_v6 = vpack.c.bf16 %v1853_v7, %v1852_v9  ;;  %v1855_v47 = vmul.f32 %v7102_v43, %v8832_v49  ;;  %v1870_v40 = vmul.f32 %v8831_v18, %v7119_v11  ;;  %v1871_v1 = vmul.f32 %v7116_v12, %v8832_v49 }
 0x15a   : > { %8844 = vst [vmem:[#allocation5_spill] sm:$0xff] %v7428_v16  ;;  %v7436_v31 = vpack.c.bf16 %v1869_v37, %v1868_v10  ;;  %v1856_v32 = vmul.f32 %v8833_v29, %v7105_v57  ;;  %v1857_v21 = vmul.f32 %v7102_v43, %v8834_v53  ;;  %v1872_v9 = vmul.f32 %v8833_v29, %v7119_v11 }
 0x15b   : > { %8845 = vst [vmem:[#allocation6_spill] sm:$0xff] %v7430_v6  ;;  %v7444_v33 = vpack.c.bf16 %v1855_v47, %v1854_v54  ;;  %v1873_v7 = vmul.f32 %v7116_v12, %v8834_v53  ;;  %v1858_v10 = vmul.f32 %v8835_v19, %v7105_v57  ;;  %v7452_v37 = vpack.c.bf16 %v1871_v1, %v1870_v40 }
 0x15c   : > { %8846 = vst [vmem:[#allocation7_spill] sm:$0xff] %v7436_v31  ;;  %v7454_v31 = vpack.c.bf16 %v1857_v21, %v1856_v32  ;;  %v1859_v6 = vmul.f32 %v7102_v43, %v8836_v8  ;;  %v1874_v54 = vmul.f32 %v8835_v19, %v7119_v11  ;;  %v1860_v16 = vmul.f32 %v8837_v20, %v7105_v57 }
 0x15d   : > { %8847 = vst [vmem:[#allocation8_spill] sm:$0xff] %v7444_v33  ;;  %8848 = vst [vmem:[#allocation9_spill] sm:$0xff] %v7452_v37  ;;  %v7460_v47 = vpack.c.bf16 %v1873_v7, %v1872_v9  ;;  %v1875_v33 = vmul.f32 %v7116_v12, %v8836_v8  ;;  %v1861_v40 = vmul.f32 %v7102_v43, %v8838_v59 }
 0x15e   : > { %8849 = vst [vmem:[#allocation10_spill] sm:$0xff] %v7454_v31  ;;  %v7468_v1 = vpack.c.bf16 %v1859_v6, %v1858_v10  ;;  %v1876_v32 = vmul.f32 %v8837_v20, %v7119_v11  ;;  %v1877_v21 = vmul.f32 %v7116_v12, %v8838_v59  ;;  %v1862_v9 = vmul.f32 %v6956_v35, %v7105_v57 }
 0x15f   : > { %8850 = vst [vmem:[#allocation11_spill] sm:$0xff] %v7460_v47  ;;  %v7476_v7 = vpack.c.bf16 %v1875_v33, %v1874_v54  ;;  %v7478_v47 = vpack.c.bf16 %v1861_v40, %v1860_v16  ;;  %v1863_v31 = vmul.f32 %v7102_v43, %v6961_v42  ;;  %v1878_v6 = vmul.f32 %v6956_v35, %v7119_v11 }
 0x160   : > { %8851 = vst [vmem:[#allocation12_spill] sm:$0xff] %v7468_v1  ;;  %v7484_v10 = vpack.c.bf16 %v1877_v21, %v1876_v32  ;;  %v1879_v1 = vmul.f32 %v7116_v12, %v6961_v42  ;;  %v1864_v37 = vmul.f32 %v6971_v28, %v7105_v57  ;;  %v1865_v33 = vmul.f32 %v7102_v43, %v6976_v34 }
 0x161   : > { %8852 = vst [vmem:[#allocation13_spill] sm:$0xff] %v7476_v7  ;;  %8853 = vst [vmem:[#allocation14_spill] sm:$0xff] %v7478_v47  ;;  %v7492_v54 = vpack.c.bf16 %v1863_v31, %v1862_v9  ;;  %v1880_v16 = vmul.f32 %v6971_v28, %v7119_v11  ;;  %v1881_v40 = vmul.f32 %v7116_v12, %v6976_v34 }
 0x162   : > { %8854 = vst [vmem:[#allocation15_spill] sm:$0xff] %v7484_v10  ;;  %v1866_v32 = vmul.f32 %v6981_v17, %v7105_v57  ;;  %v7500_v21 = vpack.c.bf16 %v1879_v1, %v1878_v6  ;;  %v7502_v10 = vpack.c.bf16 %v1865_v33, %v1864_v37  ;;  %v1867_v47 = vmul.f32 %v7102_v43, %v6986_v25 }
 0x163   : > { %8855 = vst [vmem:[#allocation16_spill] sm:$0xff] %v7492_v54  ;;  %v1882_v31 = vmul.f32 %v6981_v17, %v7119_v11  ;;  %v7508_v9 = vpack.c.bf16 %v1881_v40, %v1880_v16  ;;  %v1883_v54 = vmul.f32 %v7116_v12, %v6986_v25  ;;  %v1884_v7 = vmul.f32 %v6894_v45, %v7131_v55 }
 0x164   : > { %v1885_v57 = vmul.f32 %v7128_v22, %v6865_v14  ;;  %v7516_v1 = vpack.c.bf16 %v1867_v47, %v1866_v32  ;;  %v1886_v37 = vmul.f32 %v8831_v18, %v7131_v55  ;;  %v1887_v43 = vmul.f32 %v7128_v22, %v8832_v49 }
 0x165   : > { %v1888_v11 = vmul.f32 %v8833_v29, %v7131_v55  ;;  %v7524_v6 = vpack.c.bf16 %v1883_v54, %v1882_v31  ;;  %v1889_v45 = vmul.f32 %v7128_v22, %v8834_v53  ;;  %v1890_v14 = vmul.f32 %v8835_v19, %v7131_v55 }
 0x166   : > { %v7526_v12 = vpack.c.bf16 %v1885_v57, %v1884_v7  ;;  %v7532_v47 = vpack.c.bf16 %v1887_v43, %v1886_v37  ;;  %v1891_v18 = vmul.f32 %v7128_v22, %v8836_v8  ;;  %v1892_v49 = vmul.f32 %v8837_v20, %v7131_v55 }
 0x167   : > { %v1893_v29 = vmul.f32 %v7128_v22, %v8838_v59  ;;  %v7540_v33 = vpack.c.bf16 %v1889_v45, %v1888_v11  ;;  %v1894_v7 = vmul.f32 %v6956_v35, %v7131_v55  ;;  %v1895_v53 = vmul.f32 %v7128_v22, %v6961_v42 }
 0x168   : > { %8856 = vst [vmem:[#allocation40_spill] sm:$0xff] %v7532_v47  ;;  %v1896_v19 = vmul.f32 %v6971_v28, %v7131_v55  ;;  %v7548_v54 = vpack.c.bf16 %v1891_v18, %v1890_v14  ;;  %v1897_v20 = vmul.f32 %v7128_v22, %v6976_v34  ;;  %v1898_v59 = vmul.f32 %v6981_v17, %v7131_v55  ;;  %v4950_v28 = vpop.f32.mrb[16].mxu1 }
 0x169   : > { %8857 = vst [vmem:[#allocation41_spill] sm:$0xff] %v7540_v33  ;;  %v7550_v8 = vpack.c.bf16 %v1893_v29, %v1892_v49  ;;  %v7556_v16 = vpack.c.bf16 %v1895_v53, %v1894_v7  ;;  %v1899_v35 = vmul.f32 %v7128_v22, %v6986_v25  ;;  %v1436_v32 = vpop.f32.mrb[17].mxu1  ;;  %vm1516_vm3 = vcmp.gt.f32.partialorder %v4950_v28, 0.0 }
 0x16a   : > { %8858 = vst [vmem:[#allocation42_spill] sm:$0xff] %v7548_v54  ;;  %v7560_v40 = vpack.c.bf16 %v1897_v20, %v1896_v19  ;;  %v4953_v31 = vpop.f32.mrb[18].mxu1  ;;  %vm1515_vm0 = vcmp.gt.f32.partialorder %v1436_v32, 0.0 }
 0x16b   : > { %8859 = vst [vmem:[#allocation43_spill] sm:$0xff] %v7550_v8  ;;  %8860 = vst [vmem:[#allocation44_spill] sm:$0xff] %v7556_v16  ;;  %v7562_v42 = vpack.c.bf16 %v1899_v35, %v1898_v59  ;;  %v1446_v57 = vpop.f32.mrb[19].mxu1  ;;  %vm1518_vm5 = vcmp.gt.f32.partialorder %v4953_v31, 0.0 }
 0x16c   : > { %8861 = vst [vmem:[#allocation45_spill] sm:$0xff] %v7560_v40  ;;  %v4956_v37 = vpop.f32.mrb[20].mxu1  ;;  %vm1517_vm13 = vcmp.gt.f32.partialorder %v1446_v57, 0.0 }
 0x16d   : > { %8862 = vst [vmem:[#allocation46_spill] sm:$0xff] %v7562_v42  ;;  %v1456_v43 = vpop.f32.mrb[21].mxu1  ;;  %vm1520_vm14 = vcmp.gt.f32.partialorder %v4956_v37, 0.0 }
 0x16e   : > { %v7564_v11 = vpop.f32.mrb[22].mxu1 }
 0x16f   : > { %v7566_v34 = vpop.f32.mrb[23].mxu1 }
 0x170   : > { %v7568_v17 = vpop.f32.mrb[24].mxu1 }
 0x171   : > { %v7570_v55 = vpop.f32.mrb[25].mxu1 }
 0x172   : > { %v7572_v45 = vpop.f32.mrb[26].mxu1 }
 0x173   : > { %v7574_v25 = vpop.f32.mrb[27].mxu1 }
 0x174   : > { %v7576_v22 = vpop.f32.mrb[28].mxu1 }
 0x175   : > { %v7578_v14 = vpop.f32.mrb[29].mxu1 }
 0x176   : > { %v7580_v18 = vpop.f32.mrb[30].mxu1 }
 0x177   : > { %v7582_v49 = vpop.f32.mrb[31].mxu1 }
 0x201   : > { %v4922_v29 = vpop.f32.mrb[16].mxu0 }
 0x202   : > { %vm1274_vm8 = vcmp.gt.f32.partialorder %v4922_v29, 0.0  ;;  %v1290_v7 = vmul.f32 0.2, %v4922_v29  ;;  %v1194_v53 = vpop.f32.mrb[17].mxu0 }
 0x203   : > { %vm1273_vm4 = vcmp.gt.f32.partialorder %v1194_v53, 0.0  ;;  %v1289_v19 = vmul.f32 0.2, %v1194_v53 }
 0x204   : > { %v1306_v20 = vsel %vm1274_vm8, %v4922_v29, %v1290_v7 }
 0x205   : > { %v4925_v59 = vpop.f32.mrb[18].mxu0  ;;  %v1305_v35 = vsel %vm1273_vm4, %v1194_v53, %v1289_v19  ;;  %v7584_v42 = vsel %vm1516_vm3, %v1306_v20, -1e+30  ;;  %vm1519_vm4 = vcmp.gt.f32.partialorder %v1456_v43, 0.0 }
 0x206   : > { %vm1276_vm2 = vcmp.gt.f32.partialorder %v4925_v59, 0.0  ;;  %v1292_v40 = vmul.f32 0.2, %v4925_v59  ;;  %v1204_v16 = vpop.f32.mrb[19].mxu0  ;;  %v7586_v8 = vsel %vm1515_vm0, %v1305_v35, -1e+30 }
 0x207   : > { %vm1275_vm9 = vcmp.gt.f32.partialorder %v1204_v16, 0.0  ;;  %v1291_v54 = vmul.f32 0.2, %v1204_v16  ;;  %1547 = vmax.xlane.f32.xlu0 %v7586_v8  ;;  %vm1521_vm0 = vcmp.gt.f32.partialorder %v7566_v34, 0.0 }
 0x208   : > { %v1308_v28 = vsel %vm1276_vm2, %v4925_v59, %v1292_v40  ;;  %vm1522_vm2 = vcmp.gt.f32.partialorder %v7564_v11, 0.0 }
 0x209   : > { %v4928_v33 = vpop.f32.mrb[20].mxu0  ;;  %v1307_v32 = vsel %vm1275_vm9, %v1204_v16, %v1291_v54  ;;  %v7589_v29 = vsel %vm1518_vm5, %v1308_v28, -1e+30  ;;  %vm1524_vm5 = vcmp.gt.f32.partialorder %v7568_v17, 0.0 }
 0x20a   : > { %vm1278_vm8 = vcmp.gt.f32.partialorder %v4928_v33, 0.0  ;;  %v1294_v31 = vmul.f32 0.2, %v4928_v33  ;;  %v1214_v7 = vpop.f32.mrb[21].mxu0  ;;  %v7591_v53 = vsel %vm1517_vm13, %v1307_v32, -1e+30 }
 0x20b   : > { %vm1277_vm3 = vcmp.gt.f32.partialorder %v1214_v7, 0.0  ;;  %v1293_v19 = vmul.f32 0.2, %v1214_v7  ;;  %1549 = vmax.xlane.f32.xlu0 %v7584_v42  ;;  %1551 = vmax.xlane.f32.xlu1 %v7591_v53 }
 0x20c   : > { %v1310_v57 = vsel %vm1278_vm8, %v4928_v33, %v1294_v31 }
 0x20d   : > { %v4931_v20 = vpop.f32.mrb[22].mxu0  ;;  %v1309_v40 = vsel %vm1277_vm3, %v1214_v7, %v1293_v19  ;;  %v7597_v54 = vsel %vm1520_vm14, %v1310_v57, -1e+30  ;;  %vm1523_vm3 = vcmp.gt.f32.partialorder %v7570_v55, 0.0 }
 0x20e   : > { %vm1280_vm9 = vcmp.gt.f32.partialorder %v4931_v20, 0.0  ;;  %v1296_v16 = vmul.f32 0.2, %v4931_v20  ;;  %v1224_v59 = vpop.f32.mrb[23].mxu0  ;;  %v7599_v35 = vsel %vm1519_vm4, %v1309_v40, -1e+30 }
 0x20f   : > { %vm1279_vm13 = vcmp.gt.f32.partialorder %v1224_v59, 0.0  ;;  %v1295_v28 = vmul.f32 0.2, %v1224_v59  ;;  %1553 = vmax.xlane.f32.xlu1 %v7589_v29  ;;  %1555 = vmax.xlane.f32.xlu0 %v7599_v35  ;;  %vm1526_vm4 = vcmp.gt.f32.partialorder %v7572_v45, 0.0 }
 0x210   : > { %v1312_v33 = vsel %vm1280_vm9, %v4931_v20, %v1296_v16 }
 0x211   : > { %v4934_v43 = vpop.f32.mrb[24].mxu0  ;;  %v1311_v37 = vsel %vm1279_vm13, %v1224_v59, %v1295_v28  ;;  %v7607_v32 = vsel %vm1522_vm2, %v1312_v33, -1e+30  ;;  %vm1525_vm13 = vcmp.gt.f32.partialorder %v7574_v25, 0.0 }
 0x212   : > { %vm1282_vm14 = vcmp.gt.f32.partialorder %v4934_v43, 0.0  ;;  %v1298_v31 = vmul.f32 0.2, %v4934_v43  ;;  %v1234_v7 = vpop.f32.mrb[25].mxu0  ;;  %v7609_v19 = vsel %vm1521_vm0, %v1311_v37, -1e+30 }
 0x213   : > { %vm1281_vm8 = vcmp.gt.f32.partialorder %v1234_v7, 0.0  ;;  %v1297_v57 = vmul.f32 0.2, %v1234_v7  ;;  %1557 = vmax.xlane.f32.xlu1 %v7597_v54  ;;  %1559 = vmax.xlane.f32.xlu0 %v7609_v19  ;;  %vm1528_vm0 = vcmp.gt.f32.partialorder %v7576_v22, 0.0 }
 0x214   : > { %v1314_v34 = vsel %vm1282_vm14, %v4934_v43, %v1298_v31 }
 0x215   : > { %v4937_v20 = vpop.f32.mrb[26].mxu0  ;;  %v1313_v11 = vsel %vm1281_vm8, %v1234_v7, %v1297_v57  ;;  %v7617_v40 = vsel %vm1524_vm5, %v1314_v34, -1e+30  ;;  %vm1527_vm8 = vcmp.gt.f32.partialorder %v7578_v14, 0.0 }
 0x216   : > { %vm1284_vm2 = vcmp.gt.f32.partialorder %v4937_v20, 0.0  ;;  %v1300_v16 = vmul.f32 0.2, %v4937_v20  ;;  %v1244_v59 = vpop.f32.mrb[27].mxu0  ;;  %v7619_v28 = vsel %vm1523_vm3, %v1313_v11, -1e+30 }
 0x217   : > { %vm1283_vm9 = vcmp.gt.f32.partialorder %v1244_v59, 0.0  ;;  %v1299_v33 = vmul.f32 0.2, %v1244_v59  ;;  %1561 = vmax.xlane.f32.xlu1 %v7607_v32  ;;  %1563 = vmax.xlane.f32.xlu0 %v7619_v28  ;;  %vm1530_vm3 = vcmp.gt.f32.partialorder %v7580_v18, 0.0 }
 0x218   : > { %v1316_v55 = vsel %vm1284_vm2, %v4937_v20, %v1300_v16 }
 0x219   : > { %v4940_v43 = vpop.f32.mrb[28].mxu0  ;;  %v1315_v17 = vsel %vm1283_vm9, %v1244_v59, %v1299_v33  ;;  %v7627_v37 = vsel %vm1526_vm4, %v1316_v55, -1e+30  ;;  %vm1529_vm9 = vcmp.gt.f32.partialorder %v7582_v49, 0.0 }
 0x21a   : > { %vm1286_vm5 = vcmp.gt.f32.partialorder %v4940_v43, 0.0  ;;  %v1302_v31 = vmul.f32 0.2, %v4940_v43  ;;  %v1254_v7 = vpop.f32.mrb[29].mxu0  ;;  %v7629_v57 = vsel %vm1525_vm13, %v1315_v17, -1e+30 }
 0x21b   : > { %vm1285_vm14 = vcmp.gt.f32.partialorder %v1254_v7, 0.0  ;;  %v1301_v34 = vmul.f32 0.2, %v1254_v7  ;;  %1565 = vmax.xlane.f32.xlu1 %v7617_v40  ;;  %1567 = vmax.xlane.f32.xlu0 %v7629_v57 }
 0x21c   : > { %v1318_v25 = vsel %vm1286_vm5, %v4940_v43, %v1302_v31 }
 0x21d   : > { %v4943_v20 = vpop.f32.mrb[30].mxu0  ;;  %v1317_v45 = vsel %vm1285_vm14, %v1254_v7, %v1301_v34  ;;  %v7637_v11 = vsel %vm1528_vm0, %v1318_v25, -1e+30  ;;  %vm8625_vm0 = vcmask 523264  }
 0x21e   : > { %vm1288_vm4 = vcmp.gt.f32.partialorder %v4943_v20, 0.0  ;;  %v1304_v16 = vmul.f32 0.2, %v4943_v20  ;;  %v1264_v59 = vpop.f32.mrb[31].mxu0  ;;  %v7639_v33 = vsel %vm1527_vm8, %v1317_v45, -1e+30 }
 0x21f   : > { %vm1287_vm2 = vcmp.gt.f32.partialorder %v1264_v59, 0.0  ;;  %v1303_v55 = vmul.f32 0.2, %v1264_v59  ;;  %1569 = vmax.xlane.f32.xlu1 %v7627_v37  ;;  %1571 = vmax.xlane.f32.xlu0 %v7639_v33 }
 0x220   : > { %v1320_v14 = vsel %vm1288_vm4, %v4943_v20, %v1304_v16 }
 0x221   : > { %v1319_v18 = vsel %vm1287_vm2, %v1264_v59, %v1303_v55  ;;  %v7644_v43 = vsel %vm1530_vm3, %v1320_v14, -1e+30 }
 0x222   : > { %v7646_v22 = vsel %vm1529_vm9, %v1319_v18, -1e+30 }
 0x223   : > { %1573 = vmax.xlane.f32.xlu1 %v7637_v11  ;;  %1575 = vmax.xlane.f32.xlu0 %v7646_v22 }
 0x227   : > { %1577 = vmax.xlane.f32.xlu1 %v7644_v43 }
 0x294   : > { %v1548_v17 = vpop.xlane.xlu0 %1547 }
 0x295   : > { %v1579_v31 = vsub.f32 %v7586_v8, %v1548_v17 }
 0x297   : > { %v1595_v7 = vmul.f32 1.442695, %v1579_v31 }
 0x298   : > { %v1550_v34 = vpop.xlane.xlu0 %1549  ;;  %v1552_v25 = vpop.xlane.xlu1 %1551 }
 0x299   : > { %6051 = vpow2.f32 %v1595_v7  ;;  %v1580_v49 = vsub.f32 %v7584_v42, %v1550_v34  ;;  %v1581_v20 = vsub.f32 %v7591_v53, %v1552_v25 }
 0x29b   : > { %v1597_v45 = vmul.f32 1.442695, %v1580_v49  ;;  %v1599_v16 = vmul.f32 1.442695, %v1581_v20 }
 0x29c   : > { %v1554_v59 = vpop.xlane.xlu1 %1553  ;;  %v1556_v55 = vpop.xlane.xlu0 %1555 }
 0x29d   : > { %6053 = vpow2.f32 %v1597_v45  ;;  %v1582_v14 = vsub.f32 %v7589_v29, %v1554_v59  ;;  %v1583_v18 = vsub.f32 %v7599_v35, %v1556_v55 }
 0x29e   : > { %6055 = vpow2.f32 %v1599_v16 }
 0x29f   : > { %v1601_v47 = vmul.f32 1.442695, %v1582_v14  ;;  %v1603_v8 = vmul.f32 1.442695, %v1583_v18 }
 0x2a0   : > { %v1558_v17 = vpop.xlane.xlu1 %1557  ;;  %v1560_v31 = vpop.xlane.xlu0 %1559 }
 0x2a1   : > { %6057 = vpow2.f32 %v1601_v47  ;;  %v1584_v7 = vsub.f32 %v7597_v54, %v1558_v17  ;;  %v1585_v42 = vsub.f32 %v7609_v19, %v1560_v31 }
 0x2a2   : > { %6059 = vpow2.f32 %v1603_v8 }
 0x2a3   : > { %v6052_v53 = vpop.eup %6051  ;;  %v1605_v34 = vmul.f32 1.442695, %v1584_v7  ;;  %v1607_v25 = vmul.f32 1.442695, %v1585_v42 }
 0x2a4   : > { %5004 = vmatprep.mubr.f32.mxu1 %v6052_v53  ;;  %5060 = vmatprep.mubr.f32.mxu0 %v6052_v53  ;;  %v1562_v49 = vpop.xlane.xlu1 %1561  ;;  %v1564_v29 = vpop.xlane.xlu0 %1563 }
 0x2a5   : > { %6061 = vpow2.f32 %v1605_v34  ;;  %v1586_v35 = vsub.f32 %v7607_v32, %v1562_v49  ;;  %v1587_v20 = vsub.f32 %v7619_v28, %v1564_v29 }
 0x2a6   : > { %6063 = vpow2.f32 %v1607_v25 }
 0x2a7   : > { %v6054_v45 = vpop.eup %6053  ;;  %v1609_v47 = vmul.f32 1.442695, %v1586_v35  ;;  %v1611_v16 = vmul.f32 1.442695, %v1587_v20  ;;  %v2639_v35 = vld [vmem:[%s8466_s6 + $0x20] sm:$0xff]  ;;  %v2640_v20 = vld [vmem:[%s8466_s6 + $0x28] sm:$0xff] }
 0x2a8   : > { %v7660_v54 = vpop.eup %6055  ;;  %5005 = vmatmul.mubr.f32.vlgmr.msra.gmra.mrb[32].mxu1 %v6054_v45  ;;  %5061 = vmatmul.mubr.f32.vlgmr.msra.gmra.mrb[32].mxu0 %v6054_v45  ;;  %v1566_v19 = vpop.xlane.xlu1 %1565  ;;  %v5900_v45 = vpack.c.bf16 %v2640_v20, %v2639_v35 }
 0x2a9   : > { %v1568_v59 = vpop.xlane.xlu0 %1567  ;;  %6065 = vpow2.f32 %v1609_v47  ;;  %5671 = vmatpush3.bf16.msra.mxu1 %v7044_v39  ;;  %5703 = vmatpush3.bf16.msra.mxu0 %v7070_v13  ;;  %v1588_v55 = vsub.f32 %v7617_v40, %v1566_v19  ;;  %v8881_v47 = vld [vmem:[#allocation43_spill] sm:$0xff] }
 0x2aa   : > { %v1589_v32 = vsub.f32 %v7629_v57, %v1568_v59  ;;  %6067 = vpow2.f32 %v1611_v16  ;;  %5007 = vmatprep.mubr.f32.mxu1 %v7660_v54  ;;  %5673 = vmatprep.subr.bf16.mxu1 %v7248_v27  ;;  %v2641_v16 = vld [vmem:[%s8466_s6 + $0x30] sm:$0xff] }
 0x2ab   : > { %v7668_v28 = vpop.eup %6057  ;;  %v1613_v14 = vmul.f32 1.442695, %v1588_v55  ;;  %5705 = vmatprep.subr.bf16.mxu0 %v7284_v15  ;;  %v8882_v59 = vld [vmem:[#allocation44_spill] sm:$0xff]  ;;  %v8883_v55 = vld [vmem:[#allocation45_spill] sm:$0xff] }
 0x2ac   : > { %v1615_v18 = vmul.f32 1.442695, %v1589_v32  ;;  %v6060_v8 = vpop.eup %6059  ;;  %5008 = vmatmul.mubr.f32.gmra.mrb[34].mxu1 %v7668_v28  ;;  %v1570_v39 = vpop.xlane.xlu1 %1569  ;;  %v2845_v32 = vld [vmem:[%s8468_s8] sm:$0xff] }
 0x2ad   : > { %v1572_v13 = vpop.xlane.xlu0 %1571  ;;  %6069 = vpow2.f32 %v1613_v14  ;;  %5675 = vmatpush3.bf16.msra.mxu1 %v7248_v27  ;;  %5707 = vmatpush3.bf16.msra.mxu0 %v7284_v15  ;;  %v1590_v40 = vsub.f32 %v7627_v37, %v1570_v39  ;;  %v8884_v14 = vld [vmem:[#allocation46_spill] sm:$0xff]  ;;  %v2848_v39 = vld [vmem:[%s8468_s8 + $0x18] sm:$0xff] }
 0x2ae   : > { %v1591_v57 = vsub.f32 %v7639_v33, %v1572_v13  ;;  %6071 = vpow2.f32 %v1615_v18  ;;  %5130 = vmatprep.mubr.f32.mxu0 %v6060_v8  ;;  %5010 = vmatprep.mubr.f32.mxu1 %v6060_v8  ;;  %v2847_v8 = vld [vmem:[%s8468_s8 + $0x10] sm:$0xff] }
 0x2af   : > { %v7676_v17 = vpop.eup %6061  ;;  %v1617_v31 = vmul.f32 1.442695, %v1590_v40  ;;  %5677 = vmatprep.subr.bf16.mxu1 %v7258_v24  ;;  %5709 = vmatprep.subr.bf16.mxu0 %v7292_v50  ;;  %v5912_v13 = vpack.c.bf16 %v2848_v39, %v2847_v8  ;;  %v2849_v40 = vld [vmem:[%s8468_s8 + $0x20] sm:$0xff] }
 0x2b0   : > { %v1619_v7 = vmul.f32 1.442695, %v1591_v57  ;;  %v7680_v42 = vpop.eup %6063  ;;  %5011 = vmatmul.mubr.f32.gmra.mrb[36].mxu1 %v7676_v17  ;;  %v1574_v27 = vpop.xlane.xlu1 %1573  ;;  %v2850_v57 = vld [vmem:[%s8468_s8 + $0x28] sm:$0xff] }
 0x2b1   : > { %v1576_v15 = vpop.xlane.xlu0 %1575  ;;  %6073 = vpow2.f32 %v1617_v31  ;;  %5679 = vmatpush3.bf16.msra.mxu1 %v7258_v24  ;;  %5711 = vmatpush3.bf16.msra.mxu0 %v7292_v50  ;;  %v1592_v37 = vsub.f32 %v7637_v11, %v1574_v27  ;;  %v2851_v31 = vld [vmem:[%s8468_s8 + $0x30] sm:$0xff]  ;;  %v8885_v27 = vmov 1.0|1.0  }
 0x2b2   : > { %v1593_v33 = vsub.f32 %v7646_v22, %v1576_v15  ;;  %6075 = vpow2.f32 %v1619_v7  ;;  %5013 = vmatprep.mubr.f32.mxu1 %v7680_v42  ;;  %5681 = vmatprep.subr.bf16.mxu1 %v7260_v0  ;;  %v2852_v7 = vld [vmem:[%s8468_s8 + $0x38] sm:$0xff]  ;;  %v8886_v15 = vld [vmem:[#allocation19_spill] sm:$0xff] }
 0x2b3   : > { %v7689_v53 = vpop.eup %6065  ;;  %v1621_v34 = vmul.f32 1.442695, %v1592_v37  ;;  %5713 = vmatprep.subr.bf16.mxu0 %v7294_v46  ;;  %vm8887_vm13 = vnez %v8886_v15 }
 0x2b4   : > { %v1623_v25 = vmul.f32 1.442695, %v1593_v33  ;;  %v6068_v49 = vpop.eup %6067  ;;  %5014 = vmatmul.mubr.f32.gmra.mrb[38].mxu1 %v7689_v53  ;;  %v1578_v24 = vpop.xlane.xlu1 %1577 }
 0x2b5   : > { %6077 = vpow2.f32 %v1621_v34  ;;  %5683 = vmatpush3.bf16.msra.mxu1 %v7260_v0  ;;  %5715 = vmatpush3.bf16.msra.mxu0 %v7294_v46  ;;  %v1594_v50 = vsub.f32 %v7644_v43, %v1578_v24  ;;  %v8880_v43 = vld [vmem:[#allocation42_spill] sm:$0xff] }
 0x2b6   : > { %6079 = vpow2.f32 %v1623_v25  ;;  %5016 = vmatprep.mubr.f32.mxu1 %v6068_v49  ;;  %5685 = vmatprep.subr.bf16.mxu1 %v7271_v56 }
 0x2b7   : > { %v7697_v11 = vpop.eup %6069  ;;  %v1625_v22 = vmul.f32 1.442695, %v1594_v50  ;;  %5717 = vmatprep.subr.bf16.mxu0 %v7300_v58 }
 0x2b8   : > { %v7700_v29 = vpop.eup %6071  ;;  %5017 = vmatmul.mubr.f32.gmra.mrb[40].mxu1 %v7697_v11 }
 0x2b9   : > { %6081 = vpow2.f32 %v1625_v22  ;;  %5687 = vmatpush3.bf16.msra.mxu1 %v7271_v56  ;;  %5719 = vmatpush3.bf16.msra.mxu0 %v7300_v58  ;;  %v7875_v22 = vld [vmem:[%s8465_s5] ss:$0 sm:$0xff] }
 0x2ba   : > { %5019 = vmatprep.mubr.f32.mxu1 %v7700_v29  ;;  %5689 = vmatprep.subr.bf16.mxu1 %v7290_v52 }
 0x2bb   : > { %v7707_v46 = vpop.eup %6073  ;;  %5721 = vmatprep.subr.bf16.mxu0 %v7308_v51 }
 0x2bc   : > { %v6076_v0 = vpop.eup %6075  ;;  %5020 = vmatmul.mubr.f32.gmra.mrb[42].mxu1 %v7707_v46 }
 0x2bd   : > { %5691 = vmatpush3.bf16.msra.mxu1 %v7290_v52  ;;  %5723 = vmatpush3.bf16.msra.mxu0 %v7308_v51  ;;  %v8867_v51 = vld [vmem:[#allocation6_spill] sm:$0xff] }
 0x2be   : > { %5022 = vmatprep.mubr.f32.mxu1 %v6076_v0  ;;  %5693 = vmatprep.subr.bf16.mxu1 %v7302_v62 }
 0x2bf   : > { %v7714_v56 = vpop.eup %6077  ;;  %5725 = vmatprep.subr.bf16.mxu0 %v7316_v26 }
 0x2c0   : > { %v7717_v58 = vpop.eup %6079  ;;  %5023 = vmatmul.mubr.f32.gmra.mrb[44].mxu1 %v7714_v56 }
 0x2c1   : > { %5695 = vmatpush3.bf16.msra.mxu1 %v7302_v62  ;;  %5727 = vmatpush3.bf16.msra.mxu0 %v7316_v26  ;;  %v8864_v62 = vld [vmem:[#allocation3_spill] sm:$0xff] }
 0x2c2   : > { %5025 = vmatprep.mubr.f32.mxu1 %v7717_v58  ;;  %5697 = vmatprep.subr.bf16.mxu1 %v7324_v44  ;;  %v8868_v26 = vld [vmem:[#allocation7_spill] sm:$0xff] }
 0x2c3   : > { %v7724_v52 = vpop.eup %6081  ;;  %5729 = vmatprep.subr.bf16.mxu0 %v7332_v48 }
 0x2c4   : > { %5026 = vmatmul.mubr.f32.gmra.mrb[46].mxu1 %v7724_v52 }
 0x2c5   : > { %5699 = vmatpush3.bf16.msra.mxu1 %v7324_v44  ;;  %5731 = vmatpush3.bf16.msra.mxu0 %v7332_v48  ;;  %v8870_v44 = vld [vmem:[#allocation9_spill] sm:$0xff]  ;;  %v8871_v48 = vld [vmem:[#allocation10_spill] sm:$0xff] }
 0x2c6   : > { %5095 = vmatprep.mubr.f32.mxu1 %v7660_v54  ;;  %5733 = vmatprep.subr.bf16.mxu1 %v7334_v36  ;;  %v2642_v54 = vld [vmem:[%s8466_s6 + $0x38] sm:$0xff] }
 0x2c7   : > { %5765 = vmatprep.subr.bf16.mxu0 %v7356_v61  ;;  %v5904_v19 = vpack.c.bf16 %v2642_v54, %v2641_v16 }
 0x2c8   : > { %5131 = vmatmul.mubr.f32.vlgmr.msra.gmra.mrb[34].mxu0 %v7676_v17  ;;  %5096 = vmatmul.mubr.f32.vlgmr.msra.gmra.mrb[48].mxu1 %v7668_v28  ;;  %v2846_v28 = vld [vmem:[%s8468_s8 + $0x8] sm:$0xff]  ;;  %v5916_v17 = vpack.c.bf16 %v2850_v57, %v2849_v40 }
 0x2c9   : > { %5735 = vmatpush3.bf16.msra.mxu1 %v7334_v36  ;;  %5767 = vmatpush3.bf16.msra.mxu0 %v7356_v61  ;;  %v8863_v61 = vld [vmem:[#allocation2_spill] sm:$0xff]  ;;  %v8872_v36 = vld [vmem:[#allocation11_spill] sm:$0xff]  ;;  %v5908_v18 = vpack.c.bf16 %v2846_v28, %v2845_v32 }
 0x2ca   : > { %5200 = vmatprep.mubr.f32.mxu0 %v6068_v49  ;;  %5737 = vmatprep.subr.bf16.mxu1 %v7344_v63 }
 0x2cb   : > { %5165 = vmatprep.mubr.f32.mxu1 %v7680_v42  ;;  %5769 = vmatprep.subr.bf16.mxu0 %v7364_v30  ;;  %v5920_v42 = vpack.c.bf16 %v2852_v7, %v2851_v31 }
 0x2cd   : > { %5739 = vmatpush3.bf16.msra.mxu1 %v7344_v63  ;;  %5771 = vmatpush3.bf16.msra.mxu0 %v7364_v30  ;;  %v8865_v30 = vld [vmem:[#allocation4_spill] sm:$0xff] }
 0x2ce   : > { %5741 = vmatprep.subr.bf16.mxu1 %v7350_v60  ;;  %5773 = vmatprep.subr.bf16.mxu0 %v7366_v38  ;;  %v8873_v63 = vld [vmem:[#allocation12_spill] sm:$0xff] }
 0x2d1   : > { %5743 = vmatpush3.bf16.msra.mxu1 %v7350_v60  ;;  %5775 = vmatpush3.bf16.msra.mxu0 %v7366_v38  ;;  %v8874_v60 = vld [vmem:[#allocation13_spill] sm:$0xff]  ;;  %v8875_v38 = vld [vmem:[#allocation14_spill] sm:$0xff] }
 0x2d2   : > { %5745 = vmatprep.subr.bf16.mxu1 %v7372_v23  ;;  %5777 = vmatprep.subr.bf16.mxu0 %v7374_v5 }
 0x2d5   : > { %5747 = vmatpush3.bf16.msra.mxu1 %v7372_v23  ;;  %5779 = vmatpush3.bf16.msra.mxu0 %v7374_v5  ;;  %v8866_v5 = vld [vmem:[#allocation5_spill] sm:$0xff]  ;;  %v8876_v23 = vld [vmem:[#allocation15_spill] sm:$0xff] }
 0x2d6   : > { %5749 = vmatprep.subr.bf16.mxu1 %v8863_v61  ;;  %5781 = vmatprep.subr.bf16.mxu0 %v8864_v62 }
 0x2d9   : > { %5751 = vmatpush3.bf16.msra.mxu1 %v8863_v61  ;;  %5783 = vmatpush3.bf16.msra.mxu0 %v8864_v62 }
 0x2da   : > { %5753 = vmatprep.subr.bf16.mxu1 %v8865_v30  ;;  %5785 = vmatprep.subr.bf16.mxu0 %v7404_v4 }
 0x2dd   : > { %5755 = vmatpush3.bf16.msra.mxu1 %v8865_v30  ;;  %5787 = vmatpush3.bf16.msra.mxu0 %v7404_v4  ;;  %v8877_v4 = vld [vmem:[#allocation16_spill] sm:$0xff] }
 0x2de   : > { %5757 = vmatprep.subr.bf16.mxu1 %v7406_v2  ;;  %5789 = vmatprep.subr.bf16.mxu0 %v7412_v41 }
 0x2e1   : > { %5759 = vmatpush3.bf16.msra.mxu1 %v7406_v2  ;;  %5791 = vmatpush3.bf16.msra.mxu0 %v7412_v41  ;;  %v8869_v2 = vld [vmem:[#allocation8_spill] sm:$0xff] }
 0x2e2   : > { %5761 = vmatprep.subr.bf16.mxu1 %v7420_v3  ;;  %5793 = vmatprep.subr.bf16.mxu0 %v8866_v5  ;;  %v8878_v41 = vld [vmem:[#allocation40_spill] sm:$0xff] }
 0x2e5   : > { %5763 = vmatpush3.bf16.msra.mxu1 %v7420_v3  ;;  %5795 = vmatpush3.bf16.msra.mxu0 %v8866_v5  ;;  %v2635_v3 = vld [vmem:[%s8466_s6] sm:$0xff] }
 0x2e6   : > { %5797 = vmatprep.subr.bf16.mxu1 %v8867_v51  ;;  %5829 = vmatprep.subr.bf16.mxu0 %v8868_v26 }
 0x2e8   : > { %5166 = vmatmul.mubr.f32.vlgmr.msra.gmra.mrb[50].mxu1 %v7689_v53  ;;  %5201 = vmatmul.mubr.f32.vlgmr.msra.gmra.mrb[36].mxu0 %v7697_v11 }
 0x2e9   : > { %5799 = vmatpush3.bf16.msra.mxu1 %v8867_v51  ;;  %5235 = vmatprep.mubr.f32.mxu1 %v7700_v29 }
 0x2ea   : > { %5831 = vmatpush3.bf16.msra.mxu0 %v8868_v26  ;;  %5270 = vmatprep.mubr.f32.mxu0 %v6076_v0 }
 0x2eb   : > { %5801 = vmatprep.subr.bf16.mxu1 %v8869_v2  ;;  %5833 = vmatprep.subr.bf16.mxu0 %v8870_v44 }
 0x2ed   : > { %5803 = vmatpush3.bf16.msra.mxu1 %v8869_v2 }
 0x2ee   : > { %5835 = vmatpush3.bf16.msra.mxu0 %v8870_v44  ;;  %5805 = vmatprep.subr.bf16.mxu1 %v8871_v48 }
 0x2ef   : > { %5837 = vmatprep.subr.bf16.mxu0 %v8872_v36 }
 0x2f1   : > { %5807 = vmatpush3.bf16.msra.mxu1 %v8871_v48 }
 0x2f2   : > { %5839 = vmatpush3.bf16.msra.mxu0 %v8872_v36  ;;  %5809 = vmatprep.subr.bf16.mxu1 %v8873_v63 }
 0x2f3   : > { %5841 = vmatprep.subr.bf16.mxu0 %v8874_v60 }
 0x2f5   : > { %5811 = vmatpush3.bf16.msra.mxu1 %v8873_v63 }
 0x2f6   : > { %5843 = vmatpush3.bf16.msra.mxu0 %v8874_v60  ;;  %5813 = vmatprep.subr.bf16.mxu1 %v8875_v38 }
 0x2f7   : > { %5845 = vmatprep.subr.bf16.mxu0 %v8876_v23 }
 0x2f9   : > { %5815 = vmatpush3.bf16.msra.mxu1 %v8875_v38 }
 0x2fa   : > { %5847 = vmatpush3.bf16.msra.mxu0 %v8876_v23  ;;  %5817 = vmatprep.subr.bf16.mxu1 %v8877_v4 }
 0x2fb   : > { %5849 = vmatprep.subr.bf16.mxu0 %v7500_v21 }
 0x2fd   : > { %5819 = vmatpush3.bf16.msra.mxu1 %v8877_v4 }
 0x2fe   : > { %5851 = vmatpush3.bf16.msra.mxu0 %v7500_v21  ;;  %5821 = vmatprep.subr.bf16.mxu1 %v7502_v10 }
 0x2ff   : > { %5853 = vmatprep.subr.bf16.mxu0 %v7508_v9 }
 0x301   : > { %5823 = vmatpush3.bf16.msra.mxu1 %v7502_v10  ;;  %v2636_v10 = vld [vmem:[%s8466_s6 + $0x8] sm:$0xff] }
 0x302   : > { %5855 = vmatpush3.bf16.msra.mxu0 %v7508_v9  ;;  %5825 = vmatprep.subr.bf16.mxu1 %v7516_v1  ;;  %v5892_v21 = vpack.c.bf16 %v2636_v10, %v2635_v3  ;;  %v8879_v9 = vld [vmem:[#allocation41_spill] sm:$0xff] }
 0x303   : > { %5857 = vmatprep.subr.bf16.mxu0 %v7524_v6 }
 0x305   : > { %5827 = vmatpush3.bf16.msra.mxu1 %v7516_v1  ;;  %v2637_v1 = vld [vmem:[%s8466_s6 + $0x10] sm:$0xff] }
 0x306   : > { %5859 = vmatpush3.bf16.msra.mxu0 %v7524_v6  ;;  %5861 = vmatprep.subr.bf16.mxu1 %v7526_v12  ;;  %v2638_v6 = vld [vmem:[%s8466_s6 + $0x18] sm:$0xff] }
 0x307   : > { %5893 = vmatprep.subr.bf16.mxu0 %v5892_v21 }
 0x308   : > { %5236 = vmatmul.mubr.f32.vlgmr.msra.gmra.mrb[52].mxu1 %v7707_v46 }
 0x309   : > { %5271 = vmatmul.mubr.f32.vlgmr.msra.gmra.mrb[38].mxu0 %v7714_v56  ;;  %5863 = vmatpush3.bf16.msra.mxu1 %v7526_v12  ;;  %v5896_v12 = vpack.c.bf16 %v2638_v6, %v2637_v1 }
 0x30a   : > { %5305 = vmatprep.mubr.f32.mxu1 %v7717_v58  ;;  %5865 = vmatprep.subr.bf16.mxu1 %v8878_v41 }
 0x30b   : > { %5895 = vmatpush3.bf16.msra.mxu0 %v5892_v21 }
 0x30c   : > { %5897 = vmatprep.subr.bf16.mxu0 %v5896_v12 }
 0x30d   : > { %5867 = vmatpush3.bf16.msra.mxu1 %v8878_v41 }
 0x30e   : > { %5869 = vmatprep.subr.bf16.mxu1 %v8879_v9 }
 0x30f   : > { %5899 = vmatpush3.bf16.msra.mxu0 %v5896_v12 }
 0x310   : > { %5901 = vmatprep.subr.bf16.mxu0 %v5900_v45 }
 0x311   : > { %5871 = vmatpush3.bf16.msra.mxu1 %v8879_v9 }
 0x312   : > { %5873 = vmatprep.subr.bf16.mxu1 %v8880_v43 }
 0x313   : > { %5903 = vmatpush3.bf16.msra.mxu0 %v5900_v45 }
 0x314   : > { %5905 = vmatprep.subr.bf16.mxu0 %v5904_v19 }
 0x315   : > { %5875 = vmatpush3.bf16.msra.mxu1 %v8880_v43 }
 0x316   : > { %5877 = vmatprep.subr.bf16.mxu1 %v8881_v47 }
 0x317   : > { %5907 = vmatpush3.bf16.msra.mxu0 %v5904_v19 }
 0x319   : > { %5879 = vmatpush3.bf16.msra.mxu1 %v8881_v47 }
 0x31a   : > { %5881 = vmatprep.subr.bf16.mxu1 %v8882_v59 }
 0x31d   : > { %5883 = vmatpush3.bf16.msra.mxu1 %v8882_v59 }
 0x31e   : > { %5885 = vmatprep.subr.bf16.mxu1 %v8883_v55 }
 0x321   : > { %5887 = vmatpush3.bf16.msra.mxu1 %v8883_v55 }
 0x322   : > { %5889 = vmatprep.subr.bf16.mxu1 %v8884_v14 }
 0x325   : > { %5891 = vmatpush3.bf16.msra.mxu1 %v8884_v14 }
 0x326   : > { %5909 = vmatprep.subr.bf16.mxu1 %v5908_v18 }
 0x328   : > { %5306 = vmatmul.mubr.f32.vlgmr.msra.gmra.mrb[54].mxu1 %v7724_v52 }
 0x329   : > { %5911 = vmatpush3.bf16.msra.mxu1 %v5908_v18 }
 0x32a   : > { %5913 = vmatprep.subr.bf16.mxu1 %v5912_v13 }
 0x32d   : > { %5915 = vmatpush3.bf16.msra.mxu1 %v5912_v13 }
 0x32e   : > { %5917 = vmatprep.subr.bf16.mxu1 %v5916_v17 }
 0x331   : > { %5919 = vmatpush3.bf16.msra.mxu1 %v5916_v17 }
 0x332   : > { %5921 = vmatprep.subr.bf16.mxu1 %v5920_v42 }
 0x335   : > { %5923 = vmatpush3.bf16.msra.mxu1 %v5920_v42 }
 0x336   : > { %5973 = vmatprep.subr.msk.bf16.mxu1 %vm8887_vm13, %v8885_v27 }
 0x37b   : > { %v5006_v37 = vpop.f32.mrb[32].mxu1  ;;  %v5062_v33 = vpop.f32.mrb[32].mxu0 }
 0x37c   : > { %6083 = vrcp.f32 %v5006_v37  ;;  %v1693_v53 = vpop.f32.mrb[33].mxu1  ;;  %v1966_v34 = vpop.f32.mrb[33].mxu0 }
 0x37d   : > { %6085 = vrcp.f32 %v1693_v53 }
 0x37f   : > { %v5009_v25 = vpop.f32.mrb[34].mxu1 }
 0x380   : > { %v1703_v49 = vpop.f32.mrb[35].mxu1 }
 0x383   : > { %v5012_v24 = vpop.f32.mrb[36].mxu1 }
 0x384   : > { %v1713_v50 = vpop.f32.mrb[37].mxu1 }
 0x386   : > { %v6084_v11 = vpop.eup %6083 }
 0x387   : > { %v6086_v29 = vpop.eup %6085  ;;  %v2503_v46 = vmul.f32 %v6084_v11, %v5062_v33  ;;  %v5015_v0 = vpop.f32.mrb[38].mxu1 }
 0x388   : > { %v2501_v56 = vmul.f32 %v6086_v29, %v1966_v34  ;;  %v1723_v58 = vpop.f32.mrb[39].mxu1 }
 0x389   : > { %v2540_v52 = vadd.f32 %v7875_v22, %v2503_v46 }
 0x38a   : > { %v2539_v61 = vadd.f32 %v7875_v22, %v2501_v56 }
 0x38b   : > { %v2573_v62 = vmul.f32 1.442695, %v2540_v52  ;;  %v5018_v30 = vpop.f32.mrb[40].mxu1  ;;  %vm2556_vm14 = vcmp.gt.f32.partialorder %v2540_v52, 0.0 }
 0x38c   : > { %v2571_v5 = vmul.f32 1.442695, %v2539_v61  ;;  %v1733_v51 = vpop.f32.mrb[41].mxu1  ;;  %vm2555_vm5 = vcmp.gt.f32.partialorder %v2539_v61, 0.0 }
 0x38d   : > { %6087 = vpow2.f32 %v2573_v62 }
 0x38e   : > { %6089 = vpow2.f32 %v2571_v5 }
 0x38f   : > { %6091 = vrcp.f32 %v5009_v25  ;;  %v7879_v26 = vpop.f32.mrb[42].mxu1 }
 0x390   : > { %6093 = vrcp.f32 %v1703_v49  ;;  %v7881_v2 = vpop.f32.mrb[43].mxu1 }
 0x391   : > { %6095 = vrcp.f32 %v5012_v24 }
 0x392   : > { %6097 = vrcp.f32 %v1713_v50 }
 0x393   : > { %v7883_v44 = vpop.f32.mrb[44].mxu1 }
 0x394   : > { %v7885_v48 = vpop.f32.mrb[45].mxu1 }
 0x397   : > { %v6088_v36 = vpop.eup %6087  ;;  %v7887_v63 = vpop.f32.mrb[46].mxu1 }
 0x398   : > { %v6090_v60 = vpop.eup %6089  ;;  %v7889_v38 = vpop.f32.mrb[47].mxu1  ;;  %v4263_v23 = vadd.f32 -1.0, %v6088_v36 }
 0x399   : > { %v6092_v4 = vpop.eup %6091  ;;  %v4262_v41 = vadd.f32 -1.0, %v6090_v60 }
 0x39a   : > { %v6094_v3 = vpop.eup %6093  ;;  %v7897_v45 = vsel %vm2556_vm14, %v2540_v52, %v4263_v23 }
 0x39b   : > { %v6096_v10 = vpop.eup %6095  ;;  %v5132_v21 = vpop.f32.mrb[34].mxu0  ;;  %v7891_v1 = vsel %vm2555_vm5, %v2539_v61, %v4262_v41 }
 0x39c   : > { %v5097_v9 = vpop.f32.mrb[48].mxu1  ;;  %v6098_v6 = vpop.eup %6097  ;;  %v2511_v12 = vmul.f32 %v6096_v10, %v5132_v21  ;;  %5324 = vmatprep.mubr.msk.f32.mxu0 %vm8625_vm0, %v7891_v1  ;;  %5364 = vmatprep.mubr.msk.f32.mxu1 %vm8625_vm0, %v7891_v1 }
 0x39d   : > { %v2507_v43 = vmul.f32 %v6092_v4, %v5097_v9  ;;  %v2116_v35 = vpop.f32.mrb[35].mxu0  ;;  %v2041_v20 = vpop.f32.mrb[49].mxu1  ;;  %5325 = vmatmul.mubr.msk.f32.vlgmr.msra.gmra.mrb[40].mxu0 %vm8625_vm0, %v7897_v45  ;;  %5365 = vmatmul.mubr.msk.f32.vlgmr.msra.gmra.mrb[56].mxu1 %vm8625_vm0, %v7897_v45 }
 0x39e   : > { %v2509_v47 = vmul.f32 %v6098_v6, %v2116_v35  ;;  %v2505_v16 = vmul.f32 %v6094_v3, %v2041_v20  ;;  %v2544_v54 = vadd.f32 %v7875_v22, %v2511_v12  ;;  %5975 = vmatpush3.bf16.msk.msra.mxu1 %vm8887_vm13, %v8885_v27 }
 0x39f   : > { %v2542_v19 = vadd.f32 %v7875_v22, %v2507_v43 }
 0x3a0   : > { %v2543_v59 = vadd.f32 %v7875_v22, %v2509_v47  ;;  %v2541_v55 = vadd.f32 %v7875_v22, %v2505_v16  ;;  %v2581_v18 = vmul.f32 1.442695, %v2544_v54  ;;  %vm2560_vm2 = vcmp.gt.f32.partialorder %v2544_v54, 0.0 }
 0x3a1   : > { %v2577_v32 = vmul.f32 1.442695, %v2542_v19  ;;  %vm2558_vm3 = vcmp.gt.f32.partialorder %v2542_v19, 0.0 }
 0x3a2   : > { %v2579_v28 = vmul.f32 1.442695, %v2543_v59  ;;  %v2575_v14 = vmul.f32 1.442695, %v2541_v55  ;;  %vm2557_vm8 = vcmp.gt.f32.partialorder %v2541_v55, 0.0  ;;  %vm2559_vm4 = vcmp.gt.f32.partialorder %v2543_v59, 0.0 }
 0x3a3   : > { %6099 = vpow2.f32 %v2577_v32 }
 0x3a4   : > { %6101 = vpow2.f32 %v2579_v28 }
 0x3a5   : > { %6103 = vpow2.f32 %v2575_v14 }
 0x3a6   : > { %6105 = vpow2.f32 %v2581_v18 }
 0x3a7   : > { %6107 = vrcp.f32 %v5015_v0 }
 0x3a8   : > { %6109 = vrcp.f32 %v1723_v58 }
 0x3a9   : > { %6111 = vrcp.f32 %v5018_v30 }
 0x3aa   : > { %6113 = vrcp.f32 %v1733_v51 }
 0x3ad   : > { %v6100_v8 = vpop.eup %6099 }
 0x3ae   : > { %v6102_v39 = vpop.eup %6101  ;;  %v4265_v40 = vadd.f32 -1.0, %v6100_v8 }
 0x3af   : > { %v6104_v13 = vpop.eup %6103  ;;  %v4266_v31 = vadd.f32 -1.0, %v6102_v39 }
 0x3b0   : > { %v6106_v57 = vpop.eup %6105  ;;  %v4264_v17 = vadd.f32 -1.0, %v6104_v13  ;;  %v7916_v42 = vsel %vm2558_vm3, %v2542_v19, %v4265_v40 }
 0x3b1   : > { %v4267_v27 = vadd.f32 -1.0, %v6106_v57  ;;  %v7922_v15 = vsel %vm2559_vm4, %v2543_v59, %v4266_v31  ;;  %v6108_v33 = vpop.eup %6107 }
 0x3b2   : > { %v7910_v7 = vsel %vm2557_vm8, %v2541_v55, %v4264_v17  ;;  %v6110_v53 = vpop.eup %6109 }
 0x3b3   : > { %5327 = vmatprep.mubr.msk.f32.mxu0 %vm8625_vm0, %v7910_v7  ;;  %5367 = vmatprep.mubr.msk.f32.mxu1 %vm8625_vm0, %v7910_v7  ;;  %v7928_v37 = vsel %vm2560_vm2, %v2544_v54, %v4267_v27  ;;  %v6112_v34 = vpop.eup %6111 }
 0x3b4   : > { %5328 = vmatmul.mubr.msk.f32.gmra.mrb[42].mxu0 %vm8625_vm0, %v7916_v42  ;;  %5368 = vmatmul.mubr.msk.f32.gmra.mrb[58].mxu1 %vm8625_vm0, %v7916_v42  ;;  %v6114_v24 = vpop.eup %6113 }
 0x3b5   : > { %5330 = vmatprep.mubr.msk.f32.mxu0 %vm8625_vm0, %v7922_v15  ;;  %5370 = vmatprep.mubr.msk.f32.mxu1 %vm8625_vm0, %v7922_v15 }
 0x3b8   : > { %5331 = vmatmul.mubr.msk.f32.gmra.mrb[44].mxu0 %vm8625_vm0, %v7928_v37  ;;  %5371 = vmatmul.mubr.msk.f32.gmra.mrb[60].mxu1 %vm8625_vm0, %v7928_v37 }
 0x3bb   : > { %v5167_v25 = vpop.f32.mrb[50].mxu1  ;;  %v5202_v49 = vpop.f32.mrb[36].mxu0 }
 0x3bc   : > { %v2515_v50 = vmul.f32 %v6108_v33, %v5167_v25  ;;  %v2519_v11 = vmul.f32 %v6112_v34, %v5202_v49  ;;  %v2191_v29 = vpop.f32.mrb[51].mxu1  ;;  %v2266_v46 = vpop.f32.mrb[37].mxu0 }
 0x3bd   : > { %v2513_v0 = vmul.f32 %v6110_v53, %v2191_v29  ;;  %v2517_v56 = vmul.f32 %v6114_v24, %v2266_v46 }
 0x3be   : > { %v2546_v58 = vadd.f32 %v7875_v22, %v2515_v50  ;;  %v2548_v52 = vadd.f32 %v7875_v22, %v2519_v11 }
 0x3bf   : > { %v2545_v61 = vadd.f32 %v7875_v22, %v2513_v0  ;;  %v2547_v62 = vadd.f32 %v7875_v22, %v2517_v56 }
 0x3c0   : > { %v2585_v30 = vmul.f32 1.442695, %v2546_v58  ;;  %v2589_v5 = vmul.f32 1.442695, %v2548_v52  ;;  %vm2562_vm13 = vcmp.gt.f32.partialorder %v2546_v58, 0.0  ;;  %vm2564_vm14 = vcmp.gt.f32.partialorder %v2548_v52, 0.0 }
 0x3c1   : > { %v2583_v51 = vmul.f32 1.442695, %v2545_v61  ;;  %v2587_v36 = vmul.f32 1.442695, %v2547_v62  ;;  %vm2561_vm9 = vcmp.gt.f32.partialorder %v2545_v61, 0.0  ;;  %vm2563_vm5 = vcmp.gt.f32.partialorder %v2547_v62, 0.0 }
 0x3c2   : > { %6115 = vpow2.f32 %v2585_v30 }
 0x3c3   : > { %6117 = vpow2.f32 %v2589_v5 }
 0x3c4   : > { %6119 = vpow2.f32 %v2583_v51 }
 0x3c5   : > { %6121 = vpow2.f32 %v2587_v36 }
 0x3c6   : > { %6123 = vrcp.f32 %v7879_v26 }
 0x3c7   : > { %6125 = vrcp.f32 %v7881_v2 }
 0x3c8   : > { %6127 = vrcp.f32 %v7883_v44 }
 0x3c9   : > { %6129 = vrcp.f32 %v7885_v48 }
 0x3cc   : > { %v6116_v60 = vpop.eup %6115 }
 0x3cd   : > { %v6118_v23 = vpop.eup %6117  ;;  %v4269_v41 = vadd.f32 -1.0, %v6116_v60 }
 0x3ce   : > { %v6120_v4 = vpop.eup %6119  ;;  %v4271_v12 = vadd.f32 -1.0, %v6118_v23 }
 0x3cf   : > { %v6122_v3 = vpop.eup %6121  ;;  %v4268_v10 = vadd.f32 -1.0, %v6120_v4  ;;  %v7947_v6 = vsel %vm2562_vm13, %v2546_v58, %v4269_v41  ;;  %v8889_v41 = vld [vmem:[#allocation18_spill] sm:$0xff] }
 0x3d0   : > { %v4270_v21 = vadd.f32 -1.0, %v6122_v3  ;;  %v7960_v2 = vsel %vm2564_vm14, %v2548_v52, %v4271_v12  ;;  %v6124_v44 = vpop.eup %6123 }
 0x3d1   : > { %v7940_v9 = vsel %vm2561_vm9, %v2545_v61, %v4268_v10  ;;  %v6126_v48 = vpop.eup %6125 }
 0x3d2   : > { %5333 = vmatprep.mubr.msk.f32.mxu0 %vm8625_vm0, %v7940_v9  ;;  %5373 = vmatprep.mubr.msk.f32.mxu1 %vm8625_vm0, %v7940_v9  ;;  %v7954_v26 = vsel %vm2563_vm5, %v2547_v62, %v4270_v21  ;;  %v6128_v35 = vpop.eup %6127  ;;  %vm8890_vm5 = vnez %v8889_v41  ;;  %v8891_v21 = vld [vmem:[#allocation34_spill] sm:$0xff] }
 0x3d3   : > { %5334 = vmatmul.mubr.msk.f32.gmra.mrb[46].mxu0 %vm8625_vm0, %v7947_v6  ;;  %5374 = vmatmul.mubr.msk.f32.gmra.mrb[62].mxu1 %vm8625_vm0, %v7947_v6  ;;  %v6130_v54 = vpop.eup %6129 }
 0x3d4   : > { %5336 = vmatprep.mubr.msk.f32.mxu0 %vm8625_vm0, %v7954_v26  ;;  %5376 = vmatprep.mubr.msk.f32.mxu1 %vm8625_vm0, %v7954_v26 }
 0x3d7   : > { %5337 = vmatmul.mubr.msk.f32.gmra.mrb[48].mxu0 %vm8625_vm0, %v7960_v2  ;;  %5377 = vmatmul.mubr.msk.f32.gmra.mrb[64].mxu1 %vm8625_vm0, %v7960_v2 }
 0x3db   : > { %v5237_v43 = vpop.f32.mrb[52].mxu1 }
 0x3dc   : > { %v2523_v20 = vmul.f32 %v6124_v44, %v5237_v43  ;;  %v5272_v47 = vpop.f32.mrb[38].mxu0  ;;  %v2341_v16 = vpop.f32.mrb[53].mxu1 }
 0x3dd   : > { %v2527_v19 = vmul.f32 %v6128_v35, %v5272_v47  ;;  %v2521_v59 = vmul.f32 %v6126_v48, %v2341_v16  ;;  %v2416_v55 = vpop.f32.mrb[39].mxu0  ;;  %v8892_v35 = vld [vmem:[#allocation35_spill] sm:$0xff] }
 0x3de   : > { %v2550_v32 = vadd.f32 %v7875_v22, %v2523_v20  ;;  %v2525_v28 = vmul.f32 %v6130_v54, %v2416_v55 }
 0x3df   : > { %v2552_v14 = vadd.f32 %v7875_v22, %v2527_v19  ;;  %v2549_v18 = vadd.f32 %v7875_v22, %v2521_v59  ;;  %v8893_v19 = vld [vmem:[#allocation36_spill] sm:$0xff] }
 0x3e0   : > { %v2593_v8 = vmul.f32 1.442695, %v2550_v32  ;;  %v2551_v39 = vadd.f32 %v7875_v22, %v2525_v28  ;;  %vm2566_vm3 = vcmp.gt.f32.partialorder %v2550_v32, 0.0 }
 0x3e1   : > { %v2597_v13 = vmul.f32 1.442695, %v2552_v14  ;;  %v2591_v40 = vmul.f32 1.442695, %v2549_v18  ;;  %vm2565_vm8 = vcmp.gt.f32.partialorder %v2549_v18, 0.0  ;;  %vm2568_vm2 = vcmp.gt.f32.partialorder %v2552_v14, 0.0 }
 0x3e2   : > { %6131 = vpow2.f32 %v2593_v8  ;;  %v2595_v57 = vmul.f32 1.442695, %v2551_v39  ;;  %vm2567_vm4 = vcmp.gt.f32.partialorder %v2551_v39, 0.0 }
 0x3e3   : > { %6133 = vpow2.f32 %v2597_v13 }
 0x3e4   : > { %6135 = vpow2.f32 %v2591_v40  ;;  %v8895_v40 = vld [vmem:[#allocation38_spill] sm:$0xff] }
 0x3e5   : > { %6137 = vpow2.f32 %v2595_v57 }
 0x3e6   : > { %6139 = vrcp.f32 %v7887_v63 }
 0x3e7   : > { %6141 = vrcp.f32 %v7889_v38 }
 0x3ec   : > { %v6132_v17 = vpop.eup %6131 }
 0x3ed   : > { %v6134_v31 = vpop.eup %6133  ;;  %v4273_v33 = vadd.f32 -1.0, %v6132_v17 }
 0x3ee   : > { %v6136_v27 = vpop.eup %6135  ;;  %v4275_v50 = vadd.f32 -1.0, %v6134_v31 }
 0x3ef   : > { %v6138_v53 = vpop.eup %6137  ;;  %v4272_v34 = vadd.f32 -1.0, %v6136_v27  ;;  %v7978_v24 = vsel %vm2566_vm3, %v2550_v32, %v4273_v33  ;;  %v8896_v33 = vld [vmem:[#allocation39_spill] sm:$0xff] }
 0x3f0   : > { %v4274_v25 = vadd.f32 -1.0, %v6138_v53  ;;  %v7990_v38 = vsel %vm2568_vm2, %v2552_v14, %v4275_v50  ;;  %v6140_v11 = vpop.eup %6139  ;;  %v8894_v14 = vld [vmem:[#allocation37_spill] sm:$0xff] }
 0x3f1   : > { %v7971_v49 = vsel %vm2565_vm8, %v2549_v18, %v4272_v34  ;;  %v6142_v46 = vpop.eup %6141 }
 0x3f2   : > { %5339 = vmatprep.mubr.msk.f32.mxu0 %vm8625_vm0, %v7971_v49  ;;  %5379 = vmatprep.mubr.msk.f32.mxu1 %vm8625_vm0, %v7971_v49  ;;  %v7984_v63 = vsel %vm2567_vm4, %v2551_v39, %v4274_v25 }
 0x3f3   : > { %5340 = vmatmul.mubr.msk.f32.gmra.mrb[50].mxu0 %vm8625_vm0, %v7978_v24  ;;  %5380 = vmatmul.mubr.msk.f32.gmra.mrb[66].mxu1 %vm8625_vm0, %v7978_v24 }
 0x3f4   : > { %5342 = vmatprep.mubr.msk.f32.mxu0 %vm8625_vm0, %v7984_v63  ;;  %5382 = vmatprep.mubr.msk.f32.mxu1 %vm8625_vm0, %v7984_v63 }
 0x3f7   : > { %5343 = vmatmul.mubr.msk.f32.gmra.mrb[52].mxu0 %vm8625_vm0, %v7990_v38  ;;  %5383 = vmatmul.mubr.msk.f32.gmra.mrb[68].mxu1 %vm8625_vm0, %v7990_v38 }
 0x3fb   : > { %v5307_v29 = vpop.f32.mrb[54].mxu1 }
 0x3fc   : > { %v2531_v0 = vmul.f32 %v6140_v11, %v5307_v29  ;;  %v2491_v56 = vpop.f32.mrb[55].mxu1  ;;  %v8897_v11 = vld [vmem:[#allocation48_spill] sm:$0xff] }
 0x3fd   : > { %v2529_v58 = vmul.f32 %v6142_v46, %v2491_v56 }
 0x3fe   : > { %v2554_v52 = vadd.f32 %v7875_v22, %v2531_v0 }
 0x3ff   : > { %v2553_v61 = vadd.f32 %v7875_v22, %v2529_v58  ;;  %v8888_v22 = vmov 1.0   ;;  %v8898_v58 = vld [vmem:[#allocation49_spill] sm:$0xff] }
 0x400   : > { %v2601_v62 = vmul.f32 1.442695, %v2554_v52  ;;  %vm2570_vm13 = vcmp.gt.f32.partialorder %v2554_v52, 0.0 }
 0x401   : > { %v2599_v30 = vmul.f32 1.442695, %v2553_v61  ;;  %vm2569_vm9 = vcmp.gt.f32.partialorder %v2553_v61, 0.0 }
 0x402   : > { %6143 = vpow2.f32 %v2601_v62 }
 0x403   : > { %6145 = vpow2.f32 %v2599_v30 }
 0x40c   : > { %v6144_v5 = vpop.eup %6143 }
 0x40d   : > { %v6146_v51 = vpop.eup %6145  ;;  %v4277_v36 = vadd.f32 -1.0, %v6144_v5  ;;  %v8899_v5 = vld [vmem:[#allocation50_spill] sm:$0xff] }
 0x40e   : > { %v4276_v60 = vadd.f32 -1.0, %v6146_v51 }
 0x40f   : > { %v8004_v4 = vsel %vm2570_vm13, %v2554_v52, %v4277_v36 }
 0x410   : > { %v7998_v23 = vsel %vm2569_vm9, %v2553_v61, %v4276_v60 }
 0x411   : > { %5345 = vmatprep.mubr.msk.f32.mxu0 %vm8625_vm0, %v7998_v23  ;;  %5385 = vmatprep.mubr.msk.f32.mxu1 %vm8625_vm0, %v7998_v23 }
 0x412   : > { %5346 = vmatmul.mubr.msk.f32.gmra.mrb[54].mxu0 %vm8625_vm0, %v8004_v4  ;;  %5386 = vmatmul.mubr.msk.f32.gmra.mrb[70].mxu1 %vm8625_vm0, %v8004_v4 }
 0x413   : > { %5420 = vmatprep.mubr.msk.f32.mxu0 %vm8890_vm5, %v8888_v22 }
 0x470   : > { %v5326_v3 = vpop.f32.mrb[40].mxu0  ;;  %v5366_v10 = vpop.f32.mrb[56].mxu1 }
 0x471   : > { %v2999_v12 = vmul.f32 %v5366_v10, %v8891_v21  ;;  %v2758_v44 = vpop.f32.mrb[41].mxu0  ;;  %v2919_v48 = vpop.f32.mrb[57].mxu1  ;;  %v8900_v10 = vld [vmem:[#allocation51_spill] sm:$0xff] }
 0x472   : > { %v8014_v43 = vpack.c.bf16 %v5326_v3, %v2758_v44  ;;  %v2998_v20 = vmul.f32 %v8892_v35, %v2919_v48  ;;  %v8901_v35 = vld [vmem:[#allocation52_spill] sm:$0xff] }
 0x474   : > { %v5924_v47 = vpack.c.bf16 %v2999_v12, %v2998_v20  ;;  %5977 = vmatprep.subr.bf16.mxu1 %v8014_v43 }
 0x476   : > { %5925 = vmatprep.subr.bf16.mxu0 %v5924_v47 }
 0x477   : > { %5927 = vmatpush3.bf16.msra.mxu0 %v5924_v47 }
 0x487   : > { %v5329_v16 = vpop.f32.mrb[42].mxu0  ;;  %v5369_v54 = vpop.f32.mrb[58].mxu1 }
 0x488   : > { %v3001_v59 = vmul.f32 %v5369_v54, %v8893_v19  ;;  %v2768_v55 = vpop.f32.mrb[43].mxu0  ;;  %v2929_v32 = vpop.f32.mrb[59].mxu1  ;;  %v8902_v19 = vld [vmem:[#allocation53_spill] sm:$0xff] }
 0x489   : > { %v8019_v28 = vpack.c.bf16 %v5329_v16, %v2768_v55  ;;  %v3000_v18 = vmul.f32 %v8894_v14, %v2929_v32 }
 0x48b   : > { %v5928_v8 = vpack.c.bf16 %v3001_v59, %v3000_v18  ;;  %v5332_v39 = vpop.f32.mrb[44].mxu0  ;;  %v5372_v13 = vpop.f32.mrb[60].mxu1  ;;  %v8903_v18 = vld [vmem:[#allocation54_spill] sm:$0xff] }
 0x48c   : > { %v3003_v57 = vmul.f32 %v5372_v13, %v8895_v40  ;;  %v2778_v17 = vpop.f32.mrb[45].mxu0  ;;  %v2939_v31 = vpop.f32.mrb[61].mxu1 }
 0x48d   : > { %v8023_v27 = vpack.c.bf16 %v5332_v39, %v2778_v17  ;;  %v3002_v53 = vmul.f32 %v8896_v33, %v2939_v31  ;;  %5929 = vmatprep.subr.bf16.mxu0 %v5928_v8 }
 0x48e   : > { %5931 = vmatpush3.bf16.msra.mxu0 %v5928_v8 }
 0x48f   : > { %v5932_v34 = vpack.c.bf16 %v3003_v57, %v3002_v53  ;;  %v8904_v57 = vld [vmem:[#allocation55_spill] sm:$0xff] }
 0x491   : > { %5933 = vmatprep.subr.bf16.mxu0 %v5932_v34 }
 0x492   : > { %5935 = vmatpush3.bf16.msra.mxu0 %v5932_v34  ;;  %v8905_v34 = vld [vmem:[#allocation56_spill] sm:$0xff] }
 0x4a6   : > { %v5335_v25 = vpop.f32.mrb[46].mxu0  ;;  %v5375_v50 = vpop.f32.mrb[62].mxu1 }
 0x4a7   : > { %v3005_v29 = vmul.f32 %v5375_v50, %v8897_v11  ;;  %v2788_v46 = vpop.f32.mrb[47].mxu0  ;;  %v2949_v0 = vpop.f32.mrb[63].mxu1 }
 0x4a8   : > { %v8027_v56 = vpack.c.bf16 %v5335_v25, %v2788_v46  ;;  %v3004_v52 = vmul.f32 %v8898_v58, %v2949_v0  ;;  %v2838_v46 = vld [vmem:[%s8467_s7 + $0x8] sm:$0xff]  ;;  %v8906_v58 = vld [vmem:[#allocation57_spill] sm:$0xff] }
 0x4aa   : > { %v5936_v61 = vpack.c.bf16 %v3005_v29, %v3004_v52  ;;  %v5338_v62 = vpop.f32.mrb[48].mxu0  ;;  %v5378_v30 = vpop.f32.mrb[64].mxu1  ;;  %v2837_v29 = vld [vmem:[%s8467_s7] sm:$0xff] }
 0x4ab   : > { %v3007_v51 = vmul.f32 %v5378_v30, %v8899_v5  ;;  %v2798_v36 = vpop.f32.mrb[49].mxu0  ;;  %v2959_v60 = vpop.f32.mrb[65].mxu1  ;;  %v2839_v30 = vld [vmem:[%s8467_s7 + $0x10] sm:$0xff]  ;;  %v2840_v5 = vld [vmem:[%s8467_s7 + $0x18] sm:$0xff] }
 0x4ac   : > { %v8031_v3 = vpack.c.bf16 %v5338_v62, %v2798_v36  ;;  %v3006_v21 = vmul.f32 %v8900_v10, %v2959_v60  ;;  %5937 = vmatprep.subr.bf16.mxu0 %v5936_v61  ;;  %v5956_v62 = vpack.c.bf16 %v2838_v46, %v2837_v29  ;;  %v2841_v36 = vld [vmem:[%s8467_s7 + $0x20] sm:$0xff]  ;;  %v2842_v60 = vld [vmem:[%s8467_s7 + $0x28] sm:$0xff] }
 0x4ad   : > { %5939 = vmatpush3.bf16.msra.mxu0 %v5936_v61  ;;  %v6247_v29 = vld [vmem:[%s6671_s26 + $0x28] sm:$0xff] }
 0x4ae   : > { %v5940_v12 = vpack.c.bf16 %v3007_v51, %v3006_v21  ;;  %v5960_v51 = vpack.c.bf16 %v2840_v5, %v2839_v30 }
 0x4b0   : > { %5941 = vmatprep.subr.bf16.mxu0 %v5940_v12 }
 0x4b1   : > { %5943 = vmatpush3.bf16.msra.mxu0 %v5940_v12  ;;  %v5964_v12 = vpack.c.bf16 %v2842_v60, %v2841_v36 }
 0x4c6   : > { %v5341_v44 = vpop.f32.mrb[50].mxu0  ;;  %v5381_v48 = vpop.f32.mrb[66].mxu1 }
 0x4c7   : > { %v3009_v20 = vmul.f32 %v5381_v48, %v8901_v35  ;;  %v2808_v47 = vpop.f32.mrb[51].mxu0  ;;  %v2969_v16 = vpop.f32.mrb[67].mxu1  ;;  %v2844_v48 = vld [vmem:[%s8467_s7 + $0x38] sm:$0xff] }
 0x4c8   : > { %v8035_v54 = vpack.c.bf16 %v5341_v44, %v2808_v47  ;;  %v3008_v59 = vmul.f32 %v8902_v19, %v2969_v16  ;;  %v2843_v44 = vld [vmem:[%s8467_s7 + $0x30] sm:$0xff] }
 0x4c9   : > { %v5968_v47 = vpack.c.bf16 %v2844_v48, %v2843_v44  ;;  %v6249_v44 = vld [vmem:[%s6671_s26 + $0x38] sm:$0xff] }
 0x4ca   : > { %v5944_v55 = vpack.c.bf16 %v3009_v20, %v3008_v59  ;;  %v5344_v32 = vpop.f32.mrb[52].mxu0  ;;  %v5384_v14 = vpop.f32.mrb[68].mxu1  ;;  %v8913_v59 = vld [vmem:[#allocation25_spill] sm:$0xff] }
 0x4cb   : > { %v3011_v8 = vmul.f32 %v5384_v14, %v8903_v18  ;;  %v2818_v39 = vpop.f32.mrb[53].mxu0  ;;  %v2979_v13 = vpop.f32.mrb[69].mxu1  ;;  %v8918_v14 = vld [vmem:[#allocation28_spill] sm:$0xff]  ;;  %v8920_v18 = vld [vmem:[#allocation29_spill] sm:$0xff] }
 0x4cc   : > { %v8039_v40 = vpack.c.bf16 %v5344_v32, %v2818_v39  ;;  %v3010_v17 = vmul.f32 %v8904_v57, %v2979_v13  ;;  %5945 = vmatprep.subr.bf16.mxu0 %v5944_v55  ;;  %v8916_v32 = vld [vmem:[#allocation27_spill] sm:$0xff]  ;;  %vm8919_vm3 = vnez %v8918_v14  ;;  %vm8921_vm4 = vnez %v8920_v18  ;;  %v8926_v13 = vld [vmem:[#allocation32_spill] sm:$0xff]  ;;  %v8928_v57 = vld [vmem:[#allocation33_spill] sm:$0xff] }
 0x4cd   : > { %5947 = vmatpush3.bf16.msra.mxu0 %v5944_v55  ;;  %v8914_v55 = vld [vmem:[#allocation26_spill] sm:$0xff]  ;;  %vm8917_vm8 = vnez %v8916_v32  ;;  %v8924_v39 = vld [vmem:[#allocation31_spill] sm:$0xff]  ;;  %vm8927_vm13 = vnez %v8926_v13  ;;  %vm8929_vm0 = vnez %v8928_v57 }
 0x4ce   : > { %v5948_v31 = vpack.c.bf16 %v3011_v8, %v3010_v17  ;;  %vm8915_vm14 = vnez %v8914_v55  ;;  %v8922_v8 = vld [vmem:[#allocation30_spill] sm:$0xff]  ;;  %vm8925_vm9 = vnez %v8924_v39 }
 0x4cf   : > { %vm8923_vm2 = vnez %v8922_v8 }
 0x4d0   : > { %5949 = vmatprep.subr.bf16.mxu0 %v5948_v31 }
 0x4d1   : > { %5951 = vmatpush3.bf16.msra.mxu0 %v5948_v31  ;;  %v6246_v31 = vld [vmem:[%s6671_s26 + $0x10] sm:$0xff] }
 0x4e5   : > { %v5347_v33 = vpop.f32.mrb[54].mxu0  ;;  %v5387_v53 = vpop.f32.mrb[70].mxu1 }
 0x4e6   : > { %v3013_v25 = vmul.f32 %v5387_v53, %v8905_v34  ;;  %v2828_v50 = vpop.f32.mrb[55].mxu0  ;;  %v2989_v11 = vpop.f32.mrb[71].mxu1 }
 0x4e7   : > { %v8049_v0 = vpack.c.bf16 %v5347_v33, %v2828_v50  ;;  %v3012_v52 = vmul.f32 %v8906_v58, %v2989_v11 }
 0x4e9   : > { %v5952_v61 = vpack.c.bf16 %v3013_v25, %v3012_v52 }
 0x4eb   : > { %5953 = vmatprep.subr.bf16.mxu0 %v5952_v61 }
 0x4ec   : > { %5955 = vmatpush3.bf16.msra.mxu0 %v5952_v61 }
 0x4ed   : > { %5957 = vmatprep.subr.bf16.mxu0 %v5956_v62 }
 0x4ef   : > { %5421 = vmatmul.mubr.msk.f32.vlgmr.msra.gmra.mrb[56].mxu0 %vm7140_vm1, %v8888_v22 }
 0x4f0   : > { %5959 = vmatpush3.bf16.msra.mxu0 %v5956_v62  ;;  %5423 = vmatprep.mubr.msk.f32.mxu0 %vm8788_vm10, %v8888_v22  ;;  %v6248_v62 = vld [vmem:[%s6671_s26 + $0x20] sm:$0xff] }
 0x4f1   : > { %5961 = vmatprep.subr.bf16.mxu0 %v5960_v51 }
 0x4f3   : > { %5424 = vmatmul.mubr.msk.f32.gmra.mrb[58].mxu0 %vm8789_vm11, %v8888_v22 }
 0x4f4   : > { %5426 = vmatprep.mubr.msk.f32.mxu0 %vm8790_vm15, %v8888_v22  ;;  %5963 = vmatpush3.bf16.msra.mxu0 %v5960_v51 }
 0x4f5   : > { %5965 = vmatprep.subr.bf16.mxu0 %v5964_v12 }
 0x4f7   : > { %5427 = vmatmul.mubr.msk.f32.gmra.mrb[60].mxu0 %vm8791_vm12, %v8888_v22 }
 0x4f8   : > { %5429 = vmatprep.mubr.msk.f32.mxu0 %vm8792_vm7, %v8888_v22  ;;  %5967 = vmatpush3.bf16.msra.mxu0 %v5964_v12 }
 0x4f9   : > { %5969 = vmatprep.subr.bf16.mxu0 %v5968_v47 }
 0x4fb   : > { %5430 = vmatmul.mubr.msk.f32.gmra.mrb[62].mxu0 %vm8793_vm6, %v8888_v22 }
 0x4fc   : > { %5432 = vmatprep.mubr.msk.f32.mxu0 %vm8915_vm14, %v8888_v22  ;;  %5971 = vmatpush3.bf16.msra.mxu0 %v5968_v47 }
 0x4ff   : > { %5433 = vmatmul.mubr.msk.f32.gmra.mrb[64].mxu0 %vm8917_vm8, %v8888_v22 }
 0x500   : > { %5435 = vmatprep.mubr.msk.f32.mxu0 %vm8919_vm3, %v8888_v22  ;;  %vm8930_vm3 = vcmask 523264  }
 0x503   : > { %5436 = vmatmul.mubr.msk.f32.gmra.mrb[66].mxu0 %vm8921_vm4, %v8888_v22  ;;  %vm8931_vm4 = vmmov %vm8930_vm3 }
 0x504   : > { %5438 = vmatprep.mubr.msk.f32.mxu0 %vm8923_vm2, %v8888_v22  ;;  %vm8932_vm2 = vmmov %vm8930_vm3 }
 0x505   : > { %vm8933_vm8 = vmmov %vm8932_vm2 }
 0x507   : > { %5439 = vmatmul.mubr.msk.f32.gmra.mrb[68].mxu0 %vm8925_vm9, %v8888_v22  ;;  %vm8934_vm9 = vmmov %vm8932_vm2 }
 0x508   : > { %5441 = vmatprep.mubr.msk.f32.mxu0 %vm8927_vm13, %v8888_v22  ;;  %vm8935_vm13 = vmmov %vm8932_vm2 }
 0x50b   : > { %5442 = vmatmul.mubr.msk.f32.gmra.mrb[70].mxu0 %vm8929_vm0, %v8888_v22  ;;  %vm8936_vm0 = vmmov %vm8932_vm2 }
 0x50c   : > { %5460 = vmatprep.mubr.msk.f32.mxu0 %vm8930_vm3, %v7891_v1  ;;  %vm8937_vm3 = vmmov %vm8936_vm0 }
 0x50f   : > { %5461 = vmatmul.mubr.msk.f32.vlgmr.msra.gmra.mrb[56].mxu0 %vm8931_vm4, %v7897_v45  ;;  %vm8938_vm4 = vmmov %vm8936_vm0 }
 0x510   : > { %5463 = vmatprep.mubr.msk.f32.mxu0 %vm8932_vm2, %v7910_v7  ;;  %vm8939_vm2 = vmmov %vm8936_vm0 }
 0x513   : > { %5464 = vmatmul.mubr.msk.f32.gmra.mrb[58].mxu0 %vm8933_vm8, %v7916_v42  ;;  %vm8940_vm8 = vmmov %vm8936_vm0  ;;  %v6243_v42 = vld [vmem:[%s6671_s26 + $0x8] sm:$0xff] }
 0x514   : > { %5466 = vmatprep.mubr.msk.f32.mxu0 %vm8934_vm9, %v7922_v15  ;;  %vm8941_vm9 = vmmov %vm8936_vm0 }
 0x517   : > { %5467 = vmatmul.mubr.msk.f32.gmra.mrb[60].mxu0 %vm8935_vm13, %v7928_v37  ;;  %vm8942_vm13 = vmmov %vm8936_vm0 }
 0x518   : > { %5469 = vmatprep.mubr.msk.f32.mxu0 %vm8936_vm0, %v7940_v9  ;;  %v6244_v9 = vld [vmem:[%s6671_s26] sm:$0xff] }
 0x51b   : > { %5470 = vmatmul.mubr.msk.f32.gmra.mrb[62].mxu0 %vm8937_vm3, %v7947_v6  ;;  %vm8943_vm3 = vmmov %vm8936_vm0 }
 0x51c   : > { %5472 = vmatprep.mubr.msk.f32.mxu0 %vm8938_vm4, %v7954_v26  ;;  %vm8944_vm4 = vmmov %vm8936_vm0 }
 0x51f   : > { %5473 = vmatmul.mubr.msk.f32.gmra.mrb[64].mxu0 %vm8939_vm2, %v7960_v2 }
 0x520   : > { %5475 = vmatprep.mubr.msk.f32.mxu0 %vm8940_vm8, %v7971_v49  ;;  %vm3353_vm8 = vcmp.gt.f32.partialorder %v6243_v42, 0.0 }
 0x523   : > { %5476 = vmatmul.mubr.msk.f32.gmra.mrb[66].mxu0 %vm8941_vm9, %v7978_v24 }
 0x524   : > { %5478 = vmatprep.mubr.msk.f32.mxu0 %vm8942_vm13, %v7984_v63  ;;  %vm3352_vm13 = vcmp.gt.f32.partialorder %v6244_v9, 0.0 }
 0x527   : > { %5479 = vmatmul.mubr.msk.f32.gmra.mrb[68].mxu0 %vm8936_vm0, %v7990_v38  ;;  %v6245_v38 = vld [vmem:[%s6671_s26 + $0x18] sm:$0xff] }
 0x528   : > { %5481 = vmatprep.mubr.msk.f32.mxu0 %vm8943_vm3, %v7998_v23  ;;  %vm8945_vm3 = vcmask 130048  }
 0x52b   : > { %5482 = vmatmul.mubr.msk.f32.gmra.mrb[70].mxu0 %vm8944_vm4, %v8004_v4  ;;  %vm3355_vm4 = vcmp.gt.f32.partialorder %v6245_v38, 0.0 }
 0x5e2   : > { %v5462_v1 = vpop.f32.mrb[56].mxu0 }
 0x5e3   : > { %vm3305_vm2 = vcmp.gt.f32.partialorder %v5462_v1, 0.0  ;;  %v3321_v45 = vmul.f32 0.2, %v5462_v1  ;;  %v3225_v7 = vpop.f32.mrb[57].mxu0 }
 0x5e4   : > { %vm3304_vm9 = vcmp.gt.f32.partialorder %v3225_v7, 0.0  ;;  %v3320_v15 = vmul.f32 0.2, %v3225_v7 }
 0x5e5   : > { %v3337_v37 = vsel %vm3305_vm2, %v5462_v1, %v3321_v45  ;;  %vm8946_vm2 = vmmov %vm8945_vm3 }
 0x5e6   : > { %v5465_v6 = vpop.f32.mrb[58].mxu0  ;;  %v8149_v26 = vsel %vm3353_vm8, %v3337_v37, -1e+30  ;;  %v3336_v2 = vsel %vm3304_vm9, %v3225_v7, %v3320_v15  ;;  %vm3354_vm8 = vcmp.gt.f32.partialorder %v6246_v31, 0.0  ;;  %v6250_v7 = vld [vmem:[%s6671_s26 + $0x30] sm:$0xff] }
 0x5e7   : > { %vm3307_vm0 = vcmp.gt.f32.partialorder %v5465_v6, 0.0  ;;  %v3323_v49 = vmul.f32 0.2, %v5465_v6  ;;  %v3235_v24 = vpop.f32.mrb[59].mxu0  ;;  %v3387_v63 = vsel %vm8945_vm3, %v8149_v26, -inf  ;;  %vm8947_vm3 = vmmov %vm8946_vm2 }
 0x5e8   : > { %vm3306_vm14 = vcmp.gt.f32.partialorder %v3235_v24, 0.0  ;;  %v3322_v23 = vmul.f32 0.2, %v3235_v24  ;;  %3388 = vmax.xlane.f32.xlu1 %v3387_v63  ;;  %v8154_v4 = vsel %vm3352_vm13, %v3336_v2, -1e+30  ;;  %vm3357_vm13 = vcmp.gt.f32.partialorder %v6247_v29, 0.0 }
 0x5e9   : > { %v3384_v22 = vsel %vm8946_vm2, %v8154_v4, -inf  ;;  %v3339_v17 = vsel %vm3307_vm0, %v5465_v6, %v3323_v49  ;;  %vm8948_vm0 = vmmov %vm8946_vm2  ;;  %v6251_v49 = vld [vmem:[%s6671_s26 + $0x48] sm:$0xff] }
 0x5ea   : > { %3385 = vmax.xlane.f32.xlu0 %v3384_v22  ;;  %v5468_v33 = vpop.f32.mrb[60].mxu0  ;;  %v8159_v53 = vsel %vm3355_vm4, %v3339_v17, -1e+30  ;;  %v3338_v34 = vsel %vm3306_vm14, %v3235_v24, %v3322_v23  ;;  %vm3356_vm14 = vcmp.gt.f32.partialorder %v6248_v62, 0.0  ;;  %vm8949_vm2 = vmmov %vm8948_vm0  ;;  %v6252_v22 = vld [vmem:[%s6671_s26 + $0x40] sm:$0xff]  ;;  %v6254_v62 = vld [vmem:[%s6671_s26 + $0x50] sm:$0xff] }
 0x5eb   : > { %vm3309_vm9 = vcmp.gt.f32.partialorder %v5468_v33, 0.0  ;;  %v3325_v25 = vmul.f32 0.2, %v5468_v33  ;;  %v3245_v50 = vpop.f32.mrb[61].mxu0  ;;  %v3393_v11 = vsel %vm8947_vm3, %v8159_v53, -inf }
 0x5ec   : > { %vm3308_vm6 = vcmp.gt.f32.partialorder %v3245_v50, 0.0  ;;  %v3324_v46 = vmul.f32 0.2, %v3245_v50  ;;  %3394 = vmax.xlane.f32.xlu1 %v3393_v11  ;;  %v8164_v58 = vsel %vm3354_vm8, %v3338_v34, -1e+30  ;;  %vm3359_vm8 = vcmp.gt.f32.partialorder %v6249_v44, 0.0 }
 0x5ed   : > { %v3390_v52 = vsel %vm8948_vm0, %v8164_v58, -inf  ;;  %v3341_v61 = vsel %vm3309_vm9, %v5468_v33, %v3325_v25  ;;  %vm8950_vm9 = vmmov %vm8948_vm0  ;;  %v6253_v11 = vld [vmem:[%s6671_s26 + $0x58] sm:$0xff] }
 0x5ee   : > { %3391 = vmax.xlane.f32.xlu0 %v3390_v52  ;;  %v5471_v30 = vpop.f32.mrb[62].mxu0  ;;  %v8169_v5 = vsel %vm3357_vm13, %v3341_v61, -1e+30  ;;  %v3340_v51 = vsel %vm3308_vm6, %v3245_v50, %v3324_v46  ;;  %vm3358_vm6 = vcmp.gt.f32.partialorder %v6250_v7, 0.0 }
 0x5ef   : > { %vm3311_vm4 = vcmp.gt.f32.partialorder %v5471_v30, 0.0  ;;  %v3327_v36 = vmul.f32 0.2, %v5471_v30  ;;  %v3255_v60 = vpop.f32.mrb[63].mxu0  ;;  %v3399_v12 = vsel %vm8949_vm2, %v8169_v5, -inf }
 0x5f0   : > { %vm3310_vm3 = vcmp.gt.f32.partialorder %v3255_v60, 0.0  ;;  %v3326_v48 = vmul.f32 0.2, %v3255_v60  ;;  %3400 = vmax.xlane.f32.xlu1 %v3399_v12  ;;  %v8174_v47 = vsel %vm3356_vm14, %v3340_v51, -1e+30  ;;  %vm3361_vm14 = vcmp.gt.f32.partialorder %v6251_v49, 0.0 }
 0x5f1   : > { %v3396_v1 = vsel %vm8950_vm9, %v8174_v47, -inf  ;;  %v3343_v45 = vsel %vm3311_vm4, %v5471_v30, %v3327_v36  ;;  %vm8951_vm4 = vmmov %vm8948_vm0 }
 0x5f2   : > { %3397 = vmax.xlane.f32.xlu0 %v3396_v1  ;;  %v5474_v42 = vpop.f32.mrb[64].mxu0  ;;  %v8179_v15 = vsel %vm3359_vm8, %v3343_v45, -1e+30  ;;  %v3342_v37 = vsel %vm3310_vm3, %v3255_v60, %v3326_v48  ;;  %vm3360_vm8 = vcmp.gt.f32.partialorder %v6252_v22, 0.0  ;;  %vm8952_vm9 = vmmov %vm8948_vm0  ;;  %v6255_v48 = vld [vmem:[%s6671_s26 + $0x68] sm:$0xff] }
 0x5f3   : > { %vm3313_vm13 = vcmp.gt.f32.partialorder %v5474_v42, 0.0  ;;  %v3329_v9 = vmul.f32 0.2, %v5474_v42  ;;  %v3265_v6 = vpop.f32.mrb[65].mxu0  ;;  %v3405_v2 = vsel %vm8948_vm0, %v8179_v15, -inf }
 0x5f4   : > { %vm3312_vm2 = vcmp.gt.f32.partialorder %v3265_v6, 0.0  ;;  %v3328_v24 = vmul.f32 0.2, %v3265_v6  ;;  %3406 = vmax.xlane.f32.xlu1 %v3405_v2  ;;  %v8184_v63 = vsel %vm3358_vm6, %v3342_v37, -1e+30  ;;  %vm3363_vm6 = vcmp.gt.f32.partialorder %v6253_v11, 0.0 }
 0x5f5   : > { %v3402_v38 = vsel %vm8951_vm4, %v8184_v63, -inf  ;;  %v3345_v23 = vsel %vm3313_vm13, %v5474_v42, %v3329_v9  ;;  %vm8953_vm13 = vmmov %vm8951_vm4  ;;  %v6256_v37 = vld [vmem:[%s6671_s26 + $0x60] sm:$0xff] }
 0x5f6   : > { %3403 = vmax.xlane.f32.xlu0 %v3402_v38  ;;  %v5477_v17 = vpop.f32.mrb[66].mxu0  ;;  %v8189_v31 = vsel %vm3361_vm14, %v3345_v23, -1e+30  ;;  %v3344_v33 = vsel %vm3312_vm2, %v3265_v6, %v3328_v24  ;;  %vm3362_vm14 = vcmp.gt.f32.partialorder %v6254_v62, 0.0  ;;  %v6257_v23 = vld [vmem:[%s6671_s26 + $0x78] sm:$0xff] }
 0x5f7   : > { %vm3315_vm3 = vcmp.gt.f32.partialorder %v5477_v17, 0.0  ;;  %v3331_v34 = vmul.f32 0.2, %v5477_v17  ;;  %v3275_v25 = vpop.f32.mrb[67].mxu0  ;;  %v3411_v50 = vsel %vm8952_vm9, %v8189_v31, -inf }
 0x5f8   : > { %vm3314_vm0 = vcmp.gt.f32.partialorder %v3275_v25, 0.0  ;;  %v3330_v29 = vmul.f32 0.2, %v3275_v25  ;;  %3412 = vmax.xlane.f32.xlu1 %v3411_v50  ;;  %v8194_v46 = vsel %vm3360_vm8, %v3344_v33, -1e+30  ;;  %vm3365_vm8 = vcmp.gt.f32.partialorder %v6255_v48, 0.0 }
 0x5f9   : > { %v3408_v52 = vsel %vm8953_vm13, %v8194_v46, -inf  ;;  %v3347_v61 = vsel %vm3315_vm3, %v5477_v17, %v3331_v34  ;;  %vm8954_vm3 = vmmov %vm8951_vm4  ;;  %v6258_v33 = vld [vmem:[%s6671_s26 + $0x70] sm:$0xff] }
 0x5fa   : > { %3409 = vmax.xlane.f32.xlu0 %v3408_v52  ;;  %v5480_v30 = vpop.f32.mrb[68].mxu0  ;;  %v8199_v51 = vsel %vm3363_vm6, %v3347_v61, -1e+30  ;;  %v3346_v36 = vsel %vm3314_vm0, %v3275_v25, %v3330_v29  ;;  %vm3364_vm6 = vcmp.gt.f32.partialorder %v6256_v37, 0.0  ;;  %vm8955_vm13 = vmmov %vm8954_vm3 }
 0x5fb   : > { %vm3317_vm2 = vcmp.gt.f32.partialorder %v5480_v30, 0.0  ;;  %v3333_v60 = vmul.f32 0.2, %v5480_v30  ;;  %v3285_v12 = vpop.f32.mrb[69].mxu0  ;;  %v3417_v44 = vsel %vm8951_vm4, %v8199_v51, -inf }
 0x5fc   : > { %vm3316_vm9 = vcmp.gt.f32.partialorder %v3285_v12, 0.0  ;;  %v3332_v1 = vmul.f32 0.2, %v3285_v12  ;;  %3418 = vmax.xlane.f32.xlu1 %v3417_v44  ;;  %v8204_v45 = vsel %vm3362_vm14, %v3346_v36, -1e+30  ;;  %vm3367_vm14 = vcmp.gt.f32.partialorder %v6257_v23, 0.0 }
 0x5fd   : > { %v3414_v7 = vsel %vm8954_vm3, %v8204_v45, -inf  ;;  %v3349_v42 = vsel %vm3317_vm2, %v5480_v30, %v3333_v60  ;;  %vm3366_vm2 = vcmp.gt.f32.partialorder %v6258_v33, 0.0 }
 0x5fe   : > { %3415 = vmax.xlane.f32.xlu0 %v3414_v7  ;;  %v5483_v9 = vpop.f32.mrb[70].mxu0  ;;  %v8209_v6 = vsel %vm3365_vm8, %v3349_v42, -1e+30  ;;  %v3348_v2 = vsel %vm3316_vm9, %v3285_v12, %v3332_v1  ;;  %vm8956_vm8 = vmmov %vm8954_vm3 }
 0x5ff   : > { %vm3319_vm0 = vcmp.gt.f32.partialorder %v5483_v9, 0.0  ;;  %v3335_v49 = vmul.f32 0.2, %v5483_v9  ;;  %v3295_v24 = vpop.f32.mrb[71].mxu0  ;;  %v3423_v38 = vsel %vm8955_vm13, %v8209_v6, -inf  ;;  %vm8957_vm9 = vmmov %vm8954_vm3 }
 0x600   : > { %vm3318_vm4 = vcmp.gt.f32.partialorder %v3295_v24, 0.0  ;;  %v3334_v22 = vmul.f32 0.2, %v3295_v24  ;;  %3424 = vmax.xlane.f32.xlu1 %v3423_v38  ;;  %v8214_v17 = vsel %vm3364_vm6, %v3348_v2, -1e+30  ;;  %vm8958_vm6 = vmmov %vm8954_vm3 }
 0x601   : > { %v3420_v34 = vsel %vm8954_vm3, %v8214_v17, -inf  ;;  %v3351_v25 = vsel %vm3319_vm0, %v5483_v9, %v3335_v49  ;;  %vm8959_vm0 = vmmov %vm8954_vm3 }
 0x602   : > { %v3350_v50 = vsel %vm3318_vm4, %v3295_v24, %v3334_v22  ;;  %3421 = vmax.xlane.f32.xlu0 %v3420_v34  ;;  %v8219_v11 = vsel %vm3367_vm14, %v3351_v25, -1e+30  ;;  %vm8960_vm13 = vmmov %vm8959_vm0 }
 0x603   : > { %v3429_v29 = vsel %vm8956_vm8, %v8219_v11, -inf  ;;  %v8223_v52 = vsel %vm3366_vm2, %v3350_v50, -1e+30  ;;  %vm8961_vm14 = vmmov %vm8959_vm0 }
 0x604   : > { %3430 = vmax.xlane.f32.xlu1 %v3429_v29  ;;  %v3426_v61 = vsel %vm8957_vm9, %v8223_v52, -inf  ;;  %vm8962_vm4 = vmmov %vm8959_vm0 }
 0x605   : > { %vm8963_vm2 = vmmov %vm8959_vm0 }
 0x606   : > { %3427 = vmax.xlane.f32.xlu0 %v3426_v61  ;;  %vm8964_vm3 = vmmov %vm8959_vm0 }
 0x607   : > { %vm8965_vm8 = vmmov %vm8959_vm0 }
 0x608   : > { %vm8966_vm9 = vmmov %vm8959_vm0 }
 0x675   : > { %v3389_v62 = vpop.xlane.xlu1 %3388 }
 0x676   : > { %v3433_v30 = vsub.f32 %v8149_v26, %v3389_v62 }
 0x677   : > { %v3386_v36 = vpop.xlane.xlu0 %3385 }
 0x678   : > { %v3450_v60 = vmul.f32 1.442695, %v3433_v30  ;;  %v3432_v12 = vsub.f32 %v8154_v4, %v3386_v36 }
 0x679   : > { %v3395_v44 = vpop.xlane.xlu1 %3394 }
 0x67a   : > { %6147 = vpow2.f32 %v3450_v60  ;;  %v3448_v48 = vmul.f32 1.442695, %v3432_v12  ;;  %v3435_v1 = vsub.f32 %v8159_v53, %v3395_v44 }
 0x67b   : > { %v3392_v7 = vpop.xlane.xlu0 %3391 }
 0x67c   : > { %6149 = vpow2.f32 %v3448_v48  ;;  %v3454_v42 = vmul.f32 1.442695, %v3435_v1  ;;  %v3434_v37 = vsub.f32 %v8164_v58, %v3392_v7 }
 0x67d   : > { %v3401_v9 = vpop.xlane.xlu1 %3400 }
 0x67e   : > { %6151 = vpow2.f32 %v3454_v42  ;;  %v3452_v2 = vmul.f32 1.442695, %v3434_v37  ;;  %v3437_v49 = vsub.f32 %v8169_v5, %v3401_v9 }
 0x67f   : > { %v3398_v26 = vpop.xlane.xlu0 %3397 }
 0x680   : > { %6153 = vpow2.f32 %v3452_v2  ;;  %v3458_v24 = vmul.f32 1.442695, %v3437_v49  ;;  %v3436_v4 = vsub.f32 %v8174_v47, %v3398_v26 }
 0x681   : > { %v3407_v38 = vpop.xlane.xlu1 %3406 }
 0x682   : > { %6155 = vpow2.f32 %v3458_v24  ;;  %v3456_v23 = vmul.f32 1.442695, %v3436_v4  ;;  %v3439_v53 = vsub.f32 %v8179_v15, %v3407_v38 }
 0x683   : > { %v3404_v22 = vpop.xlane.xlu0 %3403 }
 0x684   : > { %v6148_v33 = vpop.eup %6147  ;;  %6157 = vpow2.f32 %v3456_v23  ;;  %v3462_v34 = vmul.f32 1.442695, %v3439_v53  ;;  %v3438_v58 = vsub.f32 %v8184_v63, %v3404_v22 }
 0x685   : > { %v3413_v25 = vpop.xlane.xlu1 %3412  ;;  %v3483_v50 = vsel %vm8958_vm6, %v6148_v33, 0.0  ;;  %vm8967_vm6 = vmmov %vm8959_vm0 }
 0x686   : > { %v6150_v5 = vpop.eup %6149  ;;  %6159 = vpow2.f32 %v3462_v34  ;;  %v3460_v29 = vmul.f32 1.442695, %v3438_v58  ;;  %v3441_v61 = vsub.f32 %v8189_v31, %v3413_v25  ;;  %3484 = vadd.xlane.f32.xlu1 %v3483_v50 }
 0x687   : > { %5488 = vmatprep.mubr.msk.f32.mxu1 %vm8959_vm0, %v6150_v5  ;;  %v3410_v47 = vpop.xlane.xlu0 %3409  ;;  %v3480_v15 = vsel %vm8960_vm13, %v6150_v5, 0.0  ;;  %vm8968_vm13 = vmmov %vm8959_vm0 }
 0x688   : > { %v6152_v62 = vpop.eup %6151  ;;  %6161 = vpow2.f32 %v3460_v29  ;;  %v3466_v30 = vmul.f32 1.442695, %v3441_v61  ;;  %v3440_v36 = vsub.f32 %v8194_v46, %v3410_v47  ;;  %5489 = vmatmul.mubr.msk.f32.vlgmr.msra.gmra.mrb[72].mxu1 %vm8961_vm14, %v6148_v33  ;;  %3481 = vadd.xlane.f32.xlu0 %v3480_v15  ;;  %vm8969_vm14 = vmmov %vm8959_vm0 }
 0x689   : > { %5979 = vmatpush3.bf16.msra.mxu1 %v8014_v43  ;;  %v3419_v63 = vpop.xlane.xlu1 %3418  ;;  %v3489_v60 = vsel %vm8962_vm4, %v6152_v62, 0.0  ;;  %vm8970_vm4 = vmmov %vm8959_vm0 }
 0x68a   : > { %v6154_v31 = vpop.eup %6153  ;;  %6163 = vpow2.f32 %v3466_v30  ;;  %v3464_v12 = vmul.f32 1.442695, %v3440_v36  ;;  %5981 = vmatprep.subr.bf16.mxu1 %v8019_v28  ;;  %v3443_v44 = vsub.f32 %v8199_v51, %v3419_v63  ;;  %3490 = vadd.xlane.f32.xlu1 %v3489_v60  ;;  %v8987_v63 = vmov 0.0  }
 0x68b   : > { %5491 = vmatprep.mubr.msk.f32.mxu1 %vm8963_vm2, %v6154_v31  ;;  %v3416_v48 = vpop.xlane.xlu0 %3415  ;;  %v3486_v46 = vsel %vm8964_vm3, %v6154_v31, 0.0  ;;  %vm8971_vm2 = vmmov %vm8959_vm0  ;;  %v4112_v60 = vsel %vm8890_vm5, 1.0, %v8987_v63  ;;  %v4116_v10 = vsel %vm8790_vm15, 1.0, %v8987_v63  ;;  %vm8991_vm15 = vnez %v8918_v14 }
 0x68c   : > { %v6156_v1 = vpop.eup %6155  ;;  %6165 = vpow2.f32 %v3464_v12  ;;  %v3470_v7 = vmul.f32 1.442695, %v3443_v44  ;;  %v3442_v43 = vsub.f32 %v8204_v45, %v3416_v48  ;;  %5492 = vmatmul.mubr.msk.f32.gmra.mrb[74].mxu1 %vm8965_vm8, %v6152_v62  ;;  %3487 = vadd.xlane.f32.xlu0 %v3486_v46  ;;  %vm8972_vm3 = vmmov %vm8959_vm0  ;;  %v4114_v46 = vsel %vm8788_vm10, 1.0, %v8987_v63 }
 0x68d   : > { %5983 = vmatpush3.bf16.msra.mxu1 %v8019_v28  ;;  %v3425_v42 = vpop.xlane.xlu1 %3424  ;;  %v3495_v37 = vsel %vm8966_vm9, %v6156_v1, 0.0  ;;  %vm8973_vm8 = vmmov %vm8959_vm0  ;;  %vm8989_vm10 = vnez %v8914_v55  ;;  %vm8994_vm5 = vnez %v8924_v39 }
 0x68e   : > { %v6158_v51 = vpop.eup %6157  ;;  %6167 = vpow2.f32 %v3470_v7  ;;  %v3468_v9 = vmul.f32 1.442695, %v3442_v43  ;;  %5985 = vmatprep.subr.bf16.mxu1 %v8023_v27  ;;  %v3445_v2 = vsub.f32 %v8209_v6, %v3425_v42  ;;  %3496 = vadd.xlane.f32.xlu1 %v3495_v37  ;;  %vm8974_vm9 = vmmov %vm8959_vm0  ;;  %v4117_v42 = vsel %vm8791_vm12, 1.0, %v8987_v63 }
 0x68f   : > { %5494 = vmatprep.mubr.msk.f32.mxu1 %vm8967_vm6, %v6158_v51  ;;  %v3422_v49 = vpop.xlane.xlu0 %3421  ;;  %v3492_v45 = vsel %vm8959_vm0, %v6158_v51, 0.0  ;;  %vm8975_vm6 = vmmov %vm8959_vm0  ;;  %vm8992_vm12 = vnez %v8920_v18 }
 0x690   : > { %v6160_v26 = vpop.eup %6159  ;;  %6169 = vpow2.f32 %v3468_v9  ;;  %v3474_v24 = vmul.f32 1.442695, %v3445_v2  ;;  %v3444_v28 = vsub.f32 %v8214_v17, %v3422_v49  ;;  %5495 = vmatmul.mubr.msk.f32.gmra.mrb[76].mxu1 %vm8968_vm13, %v6156_v1  ;;  %3493 = vadd.xlane.f32.xlu0 %v3492_v45  ;;  %vm8976_vm13 = vmmov %vm8959_vm0  ;;  %v4118_v9 = vsel %vm8792_vm7, 1.0, %v8987_v63 }
 0x691   : > { %5987 = vmatpush3.bf16.msra.mxu1 %v8023_v27  ;;  %v3431_v4 = vpop.xlane.xlu1 %3430  ;;  %v3501_v38 = vsel %vm8969_vm14, %v6160_v26, 0.0  ;;  %vm8977_vm14 = vmmov %vm8959_vm0  ;;  %vm8993_vm7 = vnez %v8922_v8 }
 0x692   : > { %v6162_v6 = vpop.eup %6161  ;;  %6171 = vpow2.f32 %v3474_v24  ;;  %v3472_v23 = vmul.f32 1.442695, %v3444_v28  ;;  %5989 = vmatprep.subr.bf16.mxu1 %v8027_v56  ;;  %v3447_v53 = vsub.f32 %v8219_v11, %v3431_v4  ;;  %3502 = vadd.xlane.f32.xlu1 %v3501_v38  ;;  %v4122_v38 = vsel %vm8991_vm15, 1.0, %v8987_v63 }
 0x693   : > { %5497 = vmatprep.mubr.msk.f32.mxu1 %vm8970_vm4, %v6162_v6  ;;  %v3428_v22 = vpop.xlane.xlu0 %3427  ;;  %v3498_v17 = vsel %vm8971_vm2, %v6162_v6, 0.0  ;;  %vm8978_vm4 = vmmov %vm8959_vm0  ;;  %v4123_v6 = vsel %vm8992_vm12, 1.0, %v8987_v63 }
 0x694   : > { %v6164_v33 = vpop.eup %6163  ;;  %6173 = vpow2.f32 %v3472_v23  ;;  %v3478_v34 = vmul.f32 1.442695, %v3447_v53  ;;  %v3446_v27 = vsub.f32 %v8223_v52, %v3428_v22  ;;  %5498 = vmatmul.mubr.msk.f32.gmra.mrb[78].mxu1 %vm8972_vm3, %v6160_v26  ;;  %3499 = vadd.xlane.f32.xlu0 %v3498_v17  ;;  %vm8979_vm2 = vmmov %vm8959_vm0  ;;  %v4120_v26 = vsel %vm8989_vm10, 1.0, %v8987_v63 }
 0x695   : > { %5991 = vmatpush3.bf16.msra.mxu1 %v8027_v56  ;;  %v3507_v58 = vsel %vm8973_vm8, %v6164_v33, 0.0  ;;  %vm8980_vm3 = vmmov %vm8959_vm0  ;;  %v4124_v22 = vsel %vm8993_vm7, 1.0, %v8987_v63  ;;  %v4125_v17 = vsel %vm8994_vm5, 1.0, %v8987_v63 }
 0x696   : > { %v6166_v25 = vpop.eup %6165  ;;  %6175 = vpow2.f32 %v3478_v34  ;;  %v3476_v11 = vmul.f32 1.442695, %v3446_v27  ;;  %5993 = vmatprep.subr.bf16.mxu1 %v8031_v3  ;;  %3508 = vadd.xlane.f32.xlu1 %v3507_v58  ;;  %vm8981_vm8 = vmmov %vm8959_vm0 }
 0x697   : > { %5500 = vmatprep.mubr.msk.f32.mxu1 %vm8974_vm9, %v6166_v25  ;;  %v3504_v50 = vsel %vm8975_vm6, %v6166_v25, 0.0  ;;  %vm8982_vm9 = vmmov %vm8959_vm0 }
 0x698   : > { %v6168_v5 = vpop.eup %6167  ;;  %6177 = vpow2.f32 %v3476_v11  ;;  %5501 = vmatmul.mubr.msk.f32.gmra.mrb[80].mxu1 %vm8959_vm0, %v6164_v33  ;;  %3505 = vadd.xlane.f32.xlu0 %v3504_v50  ;;  %vm8983_vm6 = vmmov %vm8959_vm0 }
 0x699   : > { %5995 = vmatpush3.bf16.msra.mxu1 %v8031_v3  ;;  %v3513_v56 = vsel %vm8976_vm13, %v6168_v5, 0.0  ;;  %vm8984_vm13 = vmmov %vm8959_vm0 }
 0x69a   : > { %v6170_v52 = vpop.eup %6169  ;;  %5997 = vmatprep.subr.bf16.mxu1 %v8035_v54  ;;  %3514 = vadd.xlane.f32.xlu1 %v3513_v56 }
 0x69b   : > { %5503 = vmatprep.mubr.msk.f32.mxu1 %vm8977_vm14, %v6170_v52  ;;  %v3510_v29 = vsel %vm8978_vm4, %v6170_v52, 0.0  ;;  %vm8985_vm14 = vmmov %vm8959_vm0 }
 0x69c   : > { %v6172_v61 = vpop.eup %6171  ;;  %5504 = vmatmul.mubr.msk.f32.gmra.mrb[82].mxu1 %vm8979_vm2, %v6168_v5  ;;  %3511 = vadd.xlane.f32.xlu0 %v3510_v29  ;;  %vm8986_vm4 = vmmov %vm8959_vm0  ;;  %vm8995_vm2 = vnez %v8926_v13 }
 0x69d   : > { %5999 = vmatpush3.bf16.msra.mxu1 %v8035_v54  ;;  %v3519_v47 = vsel %vm8980_vm3, %v6172_v61, 0.0  ;;  %v4126_v27 = vsel %vm8995_vm2, 1.0, %v8987_v63  ;;  %vm8996_vm3 = vnez %v8928_v57 }
 0x69e   : > { %v6174_v15 = vpop.eup %6173  ;;  %6001 = vmatprep.subr.bf16.mxu1 %v8039_v40  ;;  %3520 = vadd.xlane.f32.xlu1 %v3519_v47  ;;  %v4127_v58 = vsel %vm8996_vm3, 1.0, %v8987_v63 }
 0x69f   : > { %5506 = vmatprep.mubr.msk.f32.mxu1 %vm8981_vm8, %v6174_v15  ;;  %v3516_v3 = vsel %vm8982_vm9, %v6174_v15, 0.0 }
 0x6a0   : > { %v6176_v62 = vpop.eup %6175  ;;  %5507 = vmatmul.mubr.msk.f32.gmra.mrb[84].mxu1 %vm8983_vm6, %v6172_v61  ;;  %3517 = vadd.xlane.f32.xlu0 %v3516_v3  ;;  %vm8997_vm6 = vcmask 31744  }
 0x6a1   : > { %6003 = vmatpush3.bf16.msra.mxu1 %v8039_v40  ;;  %v3525_v30 = vsel %vm8959_vm0, %v6176_v62, 0.0  ;;  %v4113_v40 = vsel %vm7140_vm1, 1.0, %v8987_v63  ;;  %vm8988_vm1 = vnez %v8913_v59  ;;  %vm8998_vm0 = vmmov %vm8997_vm6 }
 0x6a2   : > { %v6178_v36 = vpop.eup %6177  ;;  %6005 = vmatprep.subr.bf16.mxu1 %v8049_v0  ;;  %3526 = vadd.xlane.f32.xlu1 %v3525_v30  ;;  %v4119_v2 = vsel %vm8988_vm1, 1.0, %v8987_v63  ;;  %v8341_v30 = vld [vmem:[%s8469_s9] ss:$0 sm:$0xff]  ;;  %vm9000_vm1 = vmmov %vm8998_vm0 }
 0x6a3   : > { %5509 = vmatprep.mubr.msk.f32.mxu1 %vm8984_vm13, %v6178_v36  ;;  %v3522_v54 = vsel %vm8985_vm14, %v6178_v36, 0.0  ;;  %vm9001_vm15 = vmmov %vm8998_vm0 }
 0x6a4   : > { %5510 = vmatmul.mubr.msk.f32.gmra.mrb[86].mxu1 %vm8986_vm4, %v6176_v62  ;;  %3523 = vadd.xlane.f32.xlu0 %v3522_v54  ;;  %vm8999_vm4 = vmmov %vm8998_vm0 }
 0x6a5   : > { %6007 = vmatpush3.bf16.msra.mxu1 %v8049_v0  ;;  %v4115_v0 = vsel %vm8789_vm11, 1.0, %v8987_v63  ;;  %vm8990_vm11 = vnez %v8916_v32  ;;  %vm9002_vm12 = vmmov %vm8998_vm0 }
 0x6a6   : > { %v4121_v24 = vsel %vm8990_vm11, 1.0, %v8987_v63  ;;  %vm9003_vm2 = vmmov %vm8998_vm0 }
 0x6a7   : > { %vm9004_vm3 = vmmov %vm8998_vm0 }
 0x713   : > { %v3485_v50 = vpop.xlane.xlu1 %3484 }
 0x714   : > { %6179 = vrcp.f32 %v3485_v50 }
 0x715   : > { %v3482_v5 = vpop.xlane.xlu0 %3481 }
 0x716   : > { %6181 = vrcp.f32 %v3482_v5 }
 0x717   : > { %v3491_v56 = vpop.xlane.xlu1 %3490 }
 0x718   : > { %6183 = vrcp.f32 %v3491_v56 }
 0x719   : > { %v3488_v52 = vpop.xlane.xlu0 %3487 }
 0x71a   : > { %6185 = vrcp.f32 %v3488_v52 }
 0x71b   : > { %v3497_v29 = vpop.xlane.xlu1 %3496 }
 0x71c   : > { %6187 = vrcp.f32 %v3497_v29 }
 0x71d   : > { %v3494_v61 = vpop.xlane.xlu0 %3493 }
 0x71e   : > { %6189 = vrcp.f32 %v3494_v61  ;;  %v6180_v3 = vpop.eup %6179 }
 0x71f   : > { %v3503_v13 = vpop.xlane.xlu1 %3502 }
 0x720   : > { %v6182_v36 = vpop.eup %6181  ;;  %6191 = vrcp.f32 %v3503_v13 }
 0x721   : > { %v3500_v47 = vpop.xlane.xlu0 %3499 }
 0x722   : > { %6193 = vrcp.f32 %v3500_v47 }
 0x723   : > { %v3509_v57 = vpop.xlane.xlu1 %3508 }
 0x724   : > { %6195 = vrcp.f32 %v3509_v57 }
 0x725   : > { %v3506_v15 = vpop.xlane.xlu0 %3505 }
 0x726   : > { %6197 = vrcp.f32 %v3506_v15 }
 0x75b   : > { %v5490_v31 = vpop.f32.mrb[72].mxu1 }
 0x75c   : > { %v3642_v12 = vpop.f32.mrb[73].mxu1  ;;  %v3722_v48 = vmul.f32 %v5490_v31, %v4113_v40  ;;  %v3512_v31 = vpop.xlane.xlu0 %3511 }
 0x75d   : > { %v3721_v44 = vmul.f32 %v4112_v60, %v3642_v12  ;;  %v3515_v60 = vpop.xlane.xlu1 %3514 }
 0x75f   : > { %v5493_v1 = vpop.f32.mrb[74].mxu1  ;;  %5544 = vmatprep.mubr.f32.mxu1 %v3721_v44  ;;  %v6184_v44 = vpop.eup %6183 }
 0x760   : > { %v3652_v41 = vpop.f32.mrb[75].mxu1  ;;  %5545 = vmatmul.mubr.f32.vlgmr.msra.gmra.mrb[88].mxu1 %v3722_v48  ;;  %v3724_v43 = vmul.f32 %v5493_v1, %v4115_v0  ;;  %v6186_v0 = vpop.eup %6185 }
 0x761   : > { %v3723_v7 = vmul.f32 %v4114_v46, %v3652_v41 }
 0x763   : > { %v5496_v21 = vpop.f32.mrb[76].mxu1  ;;  %5547 = vmatprep.mubr.f32.mxu1 %v3723_v7 }
 0x764   : > { %v3662_v37 = vpop.f32.mrb[77].mxu1  ;;  %5548 = vmatmul.mubr.f32.gmra.mrb[90].mxu1 %v3724_v43  ;;  %v3726_v51 = vmul.f32 %v5496_v21, %v4117_v42  ;;  %v6188_v21 = vpop.eup %6187 }
 0x765   : > { %v3725_v35 = vmul.f32 %v4116_v10, %v3662_v37  ;;  %v3521_v37 = vpop.xlane.xlu1 %3520 }
 0x767   : > { %v5499_v20 = vpop.f32.mrb[78].mxu1  ;;  %5550 = vmatprep.mubr.f32.mxu1 %v3725_v35 }
 0x768   : > { %v3672_v49 = vpop.f32.mrb[79].mxu1  ;;  %5551 = vmatmul.mubr.f32.gmra.mrb[92].mxu1 %v3726_v51  ;;  %v3728_v45 = vmul.f32 %v5499_v20, %v4119_v2  ;;  %v3518_v2 = vpop.xlane.xlu0 %3517 }
 0x769   : > { %v3727_v16 = vmul.f32 %v4118_v9, %v3672_v49  ;;  %v6190_v9 = vpop.eup %6189 }
 0x76b   : > { %v5502_v19 = vpop.f32.mrb[80].mxu1  ;;  %5553 = vmatprep.mubr.f32.mxu1 %v3727_v16 }
 0x76c   : > { %v3682_v28 = vpop.f32.mrb[81].mxu1  ;;  %5554 = vmatmul.mubr.f32.gmra.mrb[94].mxu1 %v3728_v45  ;;  %v3730_v4 = vmul.f32 %v5502_v19, %v4121_v24  ;;  %v6192_v19 = vpop.eup %6191 }
 0x76d   : > { %v3729_v59 = vmul.f32 %v4120_v26, %v3682_v28 }
 0x76f   : > { %v5505_v55 = vpop.f32.mrb[82].mxu1  ;;  %5556 = vmatprep.mubr.f32.mxu1 %v3729_v59 }
 0x770   : > { %v3692_v23 = vpop.f32.mrb[83].mxu1  ;;  %5557 = vmatmul.mubr.f32.gmra.mrb[96].mxu1 %v3730_v4  ;;  %v3732_v53 = vmul.f32 %v5505_v55, %v4123_v6  ;;  %v6194_v4 = vpop.eup %6193 }
 0x771   : > { %v3731_v32 = vmul.f32 %v4122_v38, %v3692_v23  ;;  %v3527_v23 = vpop.xlane.xlu1 %3526 }
 0x773   : > { %v5508_v14 = vpop.f32.mrb[84].mxu1  ;;  %5559 = vmatprep.mubr.f32.mxu1 %v3731_v32 }
 0x774   : > { %v3702_v33 = vpop.f32.mrb[85].mxu1  ;;  %5560 = vmatmul.mubr.f32.gmra.mrb[98].mxu1 %v3732_v53  ;;  %v3734_v34 = vmul.f32 %v5508_v14, %v4125_v17  ;;  %v3524_v17 = vpop.xlane.xlu0 %3523 }
 0x775   : > { %v3733_v18 = vmul.f32 %v4124_v22, %v3702_v33  ;;  %v6196_v22 = vpop.eup %6195 }
 0x776   : > { %v6198_v33 = vpop.eup %6197 }
 0x777   : > { %v5511_v8 = vpop.f32.mrb[86].mxu1  ;;  %5562 = vmatprep.mubr.f32.mxu1 %v3733_v18 }
 0x778   : > { %v3712_v25 = vpop.f32.mrb[87].mxu1  ;;  %5563 = vmatmul.mubr.f32.gmra.mrb[100].mxu1 %v3734_v34  ;;  %v3736_v11 = vmul.f32 %v5511_v8, %v4127_v58 }
 0x779   : > { %v3735_v39 = vmul.f32 %v4126_v27, %v3712_v25 }
 0x77b   : > { %5565 = vmatprep.mubr.f32.mxu1 %v3735_v39 }
 0x77c   : > { %5566 = vmatmul.mubr.f32.gmra.mrb[102].mxu1 %v3736_v11 }
 0x833   : > { %v5546_v62 = vpop.f32.mrb[88].mxu1 }
 0x834   : > { %v3885_v54 = vmul.f32 %v6180_v3, %v5546_v62  ;;  %v3803_v63 = vpop.f32.mrb[89].mxu1 }
 0x835   : > { %v3883_v40 = vmul.f32 %v6182_v36, %v3803_v63 }
 0x836   : > { %v8344_v12 = vadd.f32 %v8341_v30, %v3885_v54 }
 0x837   : > { %v8347_v48 = vadd.f32 %v8341_v30, %v3883_v40  ;;  %v5549_v46 = vpop.f32.mrb[90].mxu1 }
 0x838   : > { %v3955_v1 = vmul.f32 1.442695, %v8344_v12  ;;  %v3889_v41 = vmul.f32 %v6184_v44, %v5549_v46  ;;  %v3813_v7 = vpop.f32.mrb[91].mxu1  ;;  %vm3938_vm8 = vcmp.gt.f32.partialorder %v8344_v12, 0.0 }
 0x839   : > { %v3953_v43 = vmul.f32 1.442695, %v8347_v48  ;;  %v3887_v10 = vmul.f32 %v6186_v0, %v3813_v7  ;;  %vm3937_vm9 = vcmp.gt.f32.partialorder %v8347_v48, 0.0 }
 0x83a   : > { %6199 = vpow2.f32 %v3955_v1  ;;  %v8352_v42 = vadd.f32 %v8341_v30, %v3889_v41 }
 0x83b   : > { %6201 = vpow2.f32 %v3953_v43  ;;  %v8355_v35 = vadd.f32 %v8341_v30, %v3887_v10  ;;  %v5552_v51 = vpop.f32.mrb[92].mxu1 }
 0x83c   : > { %6203 = vrcp.f32 %v3515_v60  ;;  %v3959_v20 = vmul.f32 1.442695, %v8352_v42  ;;  %v3893_v49 = vmul.f32 %v6188_v21, %v5552_v51  ;;  %v3823_v16 = vpop.f32.mrb[93].mxu1  ;;  %vm3940_vm13 = vcmp.gt.f32.partialorder %v8352_v42, 0.0 }
 0x83d   : > { %6205 = vrcp.f32 %v3512_v31  ;;  %v3957_v45 = vmul.f32 1.442695, %v8355_v35  ;;  %v3891_v26 = vmul.f32 %v6190_v9, %v3823_v16  ;;  %vm3939_vm14 = vcmp.gt.f32.partialorder %v8355_v35, 0.0 }
 0x83e   : > { %6207 = vpow2.f32 %v3959_v20  ;;  %v8360_v24 = vadd.f32 %v8341_v30, %v3893_v49 }
 0x83f   : > { %6209 = vpow2.f32 %v3957_v45  ;;  %v8363_v28 = vadd.f32 %v8341_v30, %v3891_v26  ;;  %v5555_v59 = vpop.f32.mrb[94].mxu1 }
 0x840   : > { %6211 = vrcp.f32 %v3521_v37  ;;  %v3963_v38 = vmul.f32 1.442695, %v8360_v24  ;;  %v3897_v6 = vmul.f32 %v6192_v19, %v5555_v59  ;;  %v3833_v55 = vpop.f32.mrb[95].mxu1  ;;  %vm3942_vm10 = vcmp.gt.f32.partialorder %v8360_v24, 0.0 }
 0x841   : > { %6213 = vrcp.f32 %v3518_v2  ;;  %v3961_v32 = vmul.f32 1.442695, %v8363_v28  ;;  %v3895_v53 = vmul.f32 %v6194_v4, %v3833_v55  ;;  %vm3941_vm11 = vcmp.gt.f32.partialorder %v8363_v28, 0.0 }
 0x842   : > { %6215 = vpow2.f32 %v3963_v38  ;;  %v8368_v14 = vadd.f32 %v8341_v30, %v3897_v6 }
 0x843   : > { %6217 = vpow2.f32 %v3961_v32  ;;  %v8371_v18 = vadd.f32 %v8341_v30, %v3895_v53  ;;  %v5558_v34 = vpop.f32.mrb[96].mxu1 }
 0x844   : > { %v6200_v27 = vpop.eup %6199  ;;  %6219 = vrcp.f32 %v3527_v23  ;;  %v3967_v58 = vmul.f32 1.442695, %v8368_v14  ;;  %v3901_v8 = vmul.f32 %v6196_v22, %v5558_v34  ;;  %v3843_v25 = vpop.f32.mrb[97].mxu1  ;;  %vm3944_vm7 = vcmp.gt.f32.partialorder %v8368_v14, 0.0 }
 0x845   : > { %v6202_v39 = vpop.eup %6201  ;;  %6221 = vrcp.f32 %v3524_v17  ;;  %v4362_v11 = vadd.f32 -1.0, %v6200_v27  ;;  %v3965_v50 = vmul.f32 1.442695, %v8371_v18  ;;  %v3899_v5 = vmul.f32 %v6198_v33, %v3843_v25 }
 0x846   : > { %v6204_v56 = vpop.eup %6203  ;;  %v4361_v52 = vadd.f32 -1.0, %v6202_v39  ;;  %6223 = vpow2.f32 %v3967_v58  ;;  %v8383_v29 = vadd.f32 %v8341_v30, %v3901_v8  ;;  %vm3943_vm5 = vcmp.gt.f32.partialorder %v8371_v18, 0.0 }
 0x847   : > { %v6206_v61 = vpop.eup %6205  ;;  %v4002_v13 = vsel %vm3938_vm8, %v8344_v12, %v4362_v11  ;;  %6225 = vpow2.f32 %v3965_v50  ;;  %v8388_v47 = vadd.f32 %v8341_v30, %v3899_v5  ;;  %v5561_v57 = vpop.f32.mrb[98].mxu1 }
 0x848   : > { %v6208_v15 = vpop.eup %6207  ;;  %4018 = vst.msk [vmem:[%s8378_s11 + $0x8] sm:$0xff] %vm8997_vm6, %v4002_v13  ;;  %v4001_v3 = vsel %vm3937_vm9, %v8347_v48, %v4361_v52  ;;  %v3971_v62 = vmul.f32 1.442695, %v8383_v29  ;;  %v3905_v36 = vmul.f32 %v6204_v56, %v5561_v57  ;;  %v3853_v54 = vpop.f32.mrb[99].mxu1  ;;  %vm3946_vm8 = vcmp.gt.f32.partialorder %v8383_v29, 0.0  ;;  %vm9005_vm6 = vmmov %vm8998_vm0 }
 0x849   : > { %v6210_v63 = vpop.eup %6209  ;;  %4017 = vst.msk [vmem:[%s8378_s11] sm:$0xff] %vm8998_vm0, %v4001_v3  ;;  %v4364_v60 = vadd.f32 -1.0, %v6208_v15  ;;  %v3969_v40 = vmul.f32 1.442695, %v8388_v47  ;;  %v3903_v31 = vmul.f32 %v6206_v61, %v3853_v54  ;;  %vm3945_vm9 = vcmp.gt.f32.partialorder %v8388_v47, 0.0 }
 0x84a   : > { %v6212_v12 = vpop.eup %6211  ;;  %v4363_v44 = vadd.f32 -1.0, %v6210_v63  ;;  %6227 = vpow2.f32 %v3971_v62  ;;  %v8399_v48 = vadd.f32 %v8341_v30, %v3905_v36 }
 0x84b   : > { %v6214_v46 = vpop.eup %6213  ;;  %v4004_v0 = vsel %vm3940_vm13, %v8352_v42, %v4364_v60  ;;  %6229 = vpow2.f32 %v3969_v40  ;;  %v8404_v1 = vadd.f32 %v8341_v30, %v3903_v31  ;;  %v5564_v41 = vpop.f32.mrb[100].mxu1 }
 0x84c   : > { %v6216_v7 = vpop.eup %6215  ;;  %4020 = vst.msk [vmem:[%s8378_s11 + $0x18] sm:$0xff] %vm8999_vm4, %v4004_v0  ;;  %v4003_v43 = vsel %vm3939_vm14, %v8355_v35, %v4363_v44  ;;  %v3975_v10 = vmul.f32 1.442695, %v8399_v48  ;;  %v3909_v21 = vmul.f32 %v6212_v12, %v5564_v41  ;;  %v3863_v37 = vpop.f32.mrb[101].mxu1  ;;  %vm3948_vm13 = vcmp.gt.f32.partialorder %v8399_v48, 0.0  ;;  %vm9006_vm4 = vmmov %vm8998_vm0 }
 0x84d   : > { %v6218_v51 = vpop.eup %6217  ;;  %4019 = vst.msk [vmem:[%s8378_s11 + $0x10] sm:$0xff] %vm9000_vm1, %v4003_v43  ;;  %v4366_v42 = vadd.f32 -1.0, %v6216_v7  ;;  %v3973_v9 = vmul.f32 1.442695, %v8404_v1  ;;  %v3907_v2 = vmul.f32 %v6214_v46, %v3863_v37  ;;  %vm3947_vm14 = vcmp.gt.f32.partialorder %v8404_v1, 0.0  ;;  %vm9007_vm1 = vmmov %vm8998_vm0 }
 0x84e   : > { %v6220_v20 = vpop.eup %6219  ;;  %v4365_v49 = vadd.f32 -1.0, %v6218_v51  ;;  %6231 = vpow2.f32 %v3975_v10  ;;  %v3934_v35 = vadd.f32 %v8341_v30, %v3909_v21 }
 0x84f   : > { %v6222_v16 = vpop.eup %6221  ;;  %v4006_v45 = vsel %vm3942_vm10, %v8360_v24, %v4366_v42  ;;  %6233 = vpow2.f32 %v3973_v9  ;;  %v3933_v26 = vadd.f32 %v8341_v30, %v3907_v2  ;;  %v5567_v19 = vpop.f32.mrb[102].mxu1 }
 0x850   : > { %v6224_v59 = vpop.eup %6223  ;;  %4022 = vst.msk [vmem:[%s8378_s11 + $0x28] sm:$0xff] %vm9001_vm15, %v4006_v45  ;;  %v4005_v4 = vsel %vm3941_vm11, %v8363_v28, %v4365_v49  ;;  %v3979_v38 = vmul.f32 1.442695, %v3934_v35  ;;  %v3913_v6 = vmul.f32 %v6220_v20, %v5567_v19  ;;  %v3873_v55 = vpop.f32.mrb[103].mxu1  ;;  %vm3950_vm10 = vcmp.gt.f32.partialorder %v3934_v35, 0.0  ;;  %vm9008_vm15 = vmmov %vm8998_vm0 }
 0x851   : > { %v6226_v23 = vpop.eup %6225  ;;  %4021 = vst.msk [vmem:[%s8378_s11 + $0x20] sm:$0xff] %vm9002_vm12, %v4005_v4  ;;  %v4368_v32 = vadd.f32 -1.0, %v6224_v59  ;;  %v3977_v24 = vmul.f32 1.442695, %v3933_v26  ;;  %v3911_v53 = vmul.f32 %v6222_v16, %v3873_v55  ;;  %vm3949_vm11 = vcmp.gt.f32.partialorder %v3933_v26, 0.0  ;;  %vm9009_vm12 = vmmov %vm8998_vm0 }
 0x852   : > { %v4367_v22 = vadd.f32 -1.0, %v6226_v23  ;;  %6235 = vpow2.f32 %v3979_v38  ;;  %v3936_v17 = vadd.f32 %v8341_v30, %v3913_v6 }
 0x853   : > { %v4008_v33 = vsel %vm3944_vm7, %v8368_v14, %v4368_v32  ;;  %6237 = vpow2.f32 %v3977_v24  ;;  %v3935_v28 = vadd.f32 %v8341_v30, %v3911_v53 }
 0x854   : > { %v6228_v34 = vpop.eup %6227  ;;  %4024 = vst.msk [vmem:[%s8378_s11 + $0x38] sm:$0xff] %vm9003_vm2, %v4008_v33  ;;  %v4007_v27 = vsel %vm3943_vm5, %v8371_v18, %v4367_v22  ;;  %v3983_v58 = vmul.f32 1.442695, %v3936_v17  ;;  %vm3952_vm7 = vcmp.gt.f32.partialorder %v3936_v17, 0.0  ;;  %vm9010_vm2 = vmmov %vm8998_vm0 }
 0x855   : > { %v6230_v8 = vpop.eup %6229  ;;  %4023 = vst.msk [vmem:[%s8378_s11 + $0x30] sm:$0xff] %vm9004_vm3, %v4007_v27  ;;  %v4370_v25 = vadd.f32 -1.0, %v6228_v34  ;;  %v3981_v39 = vmul.f32 1.442695, %v3935_v28  ;;  %vm3951_vm5 = vcmp.gt.f32.partialorder %v3935_v28, 0.0  ;;  %vm9011_vm3 = vmmov %vm8998_vm0 }
 0x856   : > { %v4369_v14 = vadd.f32 -1.0, %v6230_v8  ;;  %6239 = vpow2.f32 %v3983_v58 }
 0x857   : > { %v4010_v30 = vsel %vm3946_vm8, %v8383_v29, %v4370_v25  ;;  %6241 = vpow2.f32 %v3981_v39 }
 0x858   : > { %v6232_v11 = vpop.eup %6231  ;;  %4026 = vst.msk [vmem:[%s8378_s11 + $0x48] sm:$0xff] %vm9005_vm6, %v4010_v30  ;;  %v4009_v18 = vsel %vm3945_vm9, %v8388_v47, %v4369_v14 }
 0x859   : > { %v6234_v50 = vpop.eup %6233  ;;  %4025 = vst.msk [vmem:[%s8378_s11 + $0x40] sm:$0xff] %vm8998_vm0, %v4009_v18  ;;  %v4372_v5 = vadd.f32 -1.0, %v6232_v11 }
 0x85a   : > { %v4371_v56 = vadd.f32 -1.0, %v6234_v50 }
 0x85b   : > { %v4012_v52 = vsel %vm3948_vm13, %v8399_v48, %v4372_v5 }
 0x85c   : > { %v6236_v29 = vpop.eup %6235  ;;  %4028 = vst.msk [vmem:[%s8378_s11 + $0x58] sm:$0xff] %vm9006_vm4, %v4012_v52  ;;  %v4011_v61 = vsel %vm3947_vm14, %v8404_v1, %v4371_v56 }
 0x85d   : > { %v6238_v13 = vpop.eup %6237  ;;  %4027 = vst.msk [vmem:[%s8378_s11 + $0x50] sm:$0xff] %vm9007_vm1, %v4011_v61  ;;  %v4374_v47 = vadd.f32 -1.0, %v6236_v29 }
 0x85e   : > { %v4373_v57 = vadd.f32 -1.0, %v6238_v13 }
 0x85f   : > { %v4014_v15 = vsel %vm3950_vm10, %v3934_v35, %v4374_v47 }
 0x860   : > { %v6240_v3 = vpop.eup %6239  ;;  %4030 = vst.msk [vmem:[%s8378_s11 + $0x68] sm:$0xff] %vm9008_vm15, %v4014_v15  ;;  %v4013_v62 = vsel %vm3949_vm11, %v3933_v26, %v4373_v57 }
 0x861   : > { %v6242_v36 = vpop.eup %6241  ;;  %4029 = vst.msk [vmem:[%s8378_s11 + $0x60] sm:$0xff] %vm9009_vm12, %v4013_v62  ;;  %v4376_v54 = vadd.f32 -1.0, %v6240_v3 }
 0x862   : > { %v4375_v63 = vadd.f32 -1.0, %v6242_v36 }
 0x863   : > { %v4016_v60 = vsel %vm3952_vm7, %v3936_v17, %v4376_v54 }
 0x864   : > { %4032 = vst.msk [vmem:[%s8378_s11 + $0x78] sm:$0xff] %vm9010_vm2, %v4016_v60  ;;  %v4015_v40 = vsel %vm3951_vm5, %v3935_v28, %v4375_v63 }
 0x865   : > { %4031 = vst.msk [vmem:[%s8378_s11 + $0x70] sm:$0xff] %vm9011_vm3, %v4015_v40 }
 0x866 PF: > { %s20_s13 = sadd.s32 1, %s6265_s13  }
 0x867   : > { %p17_p4 = scmp.ge.s32.totalorder %s20_s13, 4  }
 0x869   :  { %19 = sbr.rel (!%p17_p4) target bundleno = 1 (0x1), region = 93 }

</bundles_post_ra>
